<compile_context>
chip_gen: v6e
topology: v6e:2x2x1
jax: 0.10.0
libtpu: 0.0.40
codegen_flags: <defaults>
</compile_context>

<pallas_src>
import functools

import jax
import jax.numpy as jnp
from jax.experimental import pallas as pl
from jax.experimental.pallas import tpu as pltpu


def _sa_kernel(x_ref, p_ref, o_ref, pad_a_ref, pad_m_ref, sflat_ref,
               *, K, P, C, H, W, NB):
    """One grid step: NB batch elements.

    x_ref:     (NB, C, H*W)          VMEM  lane-dense input block
    p_ref:     (2*K*K + 1,)          SMEM  BN-folded conv weights, then bias
    o_ref:     (NB, C, H*W)          VMEM  lane-dense output block
    pad_a/m:   (NB, H+2P, W+2P)      VMEM  zero-padded avg / max maps
    sflat_ref: (NB, 1, H*W)          VMEM  flattened sigmoid map
    """
    # ---- single pass over x: channel sum & max (lane-dense) -------------
    xf = x_ref[...].astype(jnp.float32)         # (NB, C, HW)
    avg = jnp.sum(xf, axis=1) * (1.0 / C)       # (NB, HW) == torch.mean(dim=1)
    mx = jnp.max(xf, axis=1)                    # (NB, HW) == torch.max(dim=1)

    # ---- zero-padded 2-channel map for the 'same' conv ------------------
    # NOTE: zeroed every step, NOT guarded on program_id == 0: under megacore
    # 'parallel' partitioning each core has its own scratch and the core
    # owning the upper half of the grid never sees program_id 0.  The fill is
    # only a few tiny vreg stores, so it is essentially free.
    pad_a_ref[...] = jnp.zeros_like(pad_a_ref)
    pad_m_ref[...] = jnp.zeros_like(pad_m_ref)
    for h in range(H):                          # un-flatten the small maps
        pad_a_ref[:, P + h, P:P + W] = avg[:, h * W:(h + 1) * W]
        pad_m_ref[:, P + h, P:P + W] = mx[:, h * W:(h + 1) * W]

    # ---- unrolled 2-in / 1-out KxK conv, BN folded in --------------------
    # Lane shifts hoisted: one lane-offset strip per (channel, j); the inner
    # i loop only takes sublane-offset slices of the loaded strip.
    bias = p_ref[2 * K * K]
    acc = jnp.full((NB, H, W), bias, dtype=jnp.float32)
    for c, pref in enumerate((pad_a_ref, pad_m_ref)):
        for j in range(K):
            strip = pref[:, :, j:j + W]         # (NB, H+2P, W)
            for i in range(K):
                w = p_ref[c * K * K + i * K + j]
                acc = acc + strip[:, i:i + H, :] * w

    # ---- sigmoid, flatten back to lane-dense, scale x --------------------
    sig = jax.nn.sigmoid(acc)                   # (NB, H, W), f32
    for h in range(H):
        sflat_ref[:, 0, h * W:(h + 1) * W] = sig[:, h, :]
    s = sflat_ref[...].astype(o_ref.dtype)      # (NB, 1, HW)
    o_ref[...] = x_ref[...] * s                 # broadcast over C, dense store


def _pick_batch_block(n, per_batch_bytes, target_bytes=2 << 20, min_grid=2):
    """Largest divisor of n whose block stays <= target_bytes while keeping at
    least `min_grid` grid steps (megacore sharding) whenever n allows it."""
    nb = 1
    for cand in range(1, n + 1):
        if n % cand:
            continue
        if cand * per_batch_bytes > target_bytes:
            break
        if n // cand >= min_grid or n < min_grid:
            nb = cand
    return nb


def spatial_attention(x, conv_w, bn_gamma, bn_beta, bn_mean, bn_var,
                      *, kernel_size=7, eps=1e-5):
    assert kernel_size in (3, 7), "kernel size must be 3 or 7"
    N, C, H, W = x.shape
    K = kernel_size
    P = 3 if kernel_size == 7 else 1
    HW = H * W

    # Fold BN (inference) into the conv:  bn(conv(m)) == conv_{w*scale}(m) + bias
    scale = (bn_gamma / jnp.sqrt(bn_var + eps)).astype(jnp.float32)     # (1,)
    bias = (bn_beta - bn_mean * scale).astype(jnp.float32)              # (1,)
    w_folded = (conv_w.astype(jnp.float32) * scale[0]).reshape(-1)      # (2*K*K,)
    params = jnp.concatenate([w_folded, bias])                          # (2*K*K+1,)

    # Lane-dense view; free for contiguous NCHW.
    x_flat = x.reshape(N, C, HW)

    per_batch_bytes = C * HW * x.dtype.itemsize
    nb = _pick_batch_block(N, per_batch_bytes)
    grid = (N // nb,)

    block_bytes = nb * per_batch_bytes
    scratch_bytes = nb * (2 * (H + 2 * P) * (W + 2 * P) + HW) * 4
    # in + out, double-buffered, plus scratch and slack.
    needed = 4 * block_bytes + scratch_bytes + (8 << 20)
    vmem_limit = int(min(100 << 20, max(32 << 20, needed)))

    kernel = functools.partial(_sa_kernel, K=K, P=P, C=C, H=H, W=W, NB=nb)

    out_flat = pl.pallas_call(
        kernel,
        out_shape=jax.ShapeDtypeStruct((N, C, HW), x.dtype),
        grid=grid,
        in_specs=[
            pl.BlockSpec((nb, C, HW), lambda b: (b, 0, 0)),
            pl.BlockSpec(memory_space=pltpu.MemorySpace.SMEM),
        ],
        out_specs=pl.BlockSpec((nb, C, HW), lambda b: (b, 0, 0)),
        scratch_shapes=[
            pltpu.VMEM((nb, H + 2 * P, W + 2 * P), jnp.float32),
            pltpu.VMEM((nb, H + 2 * P, W + 2 * P), jnp.float32),
            pltpu.VMEM((nb, 1, HW), jnp.float32),
        ],
        compiler_params=pltpu.CompilerParams(
            dimension_semantics=("parallel",),
            vmem_limit_bytes=vmem_limit),
    )(x_flat, params)

    return out_flat.reshape(N, C, H, W)


def spatial_attention_reference(x, conv_w, bn_gamma, bn_beta, bn_mean, bn_var,
                                *, kernel_size=7, eps=1e-5):
    P = 3 if kernel_size == 7 else 1
    avg = jnp.mean(x, axis=1, keepdims=True)
    mx = jnp.max(x, axis=1, keepdims=True)
    out = jnp.concatenate([avg, mx], axis=1)
    out = jax.lax.conv_general_dilated(
        out, conv_w, window_strides=(1, 1), padding=[(P, P), (P, P)],
        dimension_numbers=("NCHW", "OIHW", "NCHW"))
    g = bn_gamma.reshape(1, -1, 1, 1)
    b = bn_beta.reshape(1, -1, 1, 1)
    m = bn_mean.reshape(1, -1, 1, 1)
    v = bn_var.reshape(1, -1, 1, 1)
    out = (out - m) / jnp.sqrt(v + eps) * g + b
    return x * jax.nn.sigmoid(out)


if __name__ == "__main__":
    key = jax.random.PRNGKey(0)
    kx, kw = jax.random.split(key)

    N, C, H, W = 2, 4, 16, 16
    KSIZE = 7

    x = jax.random.normal(kx, (N, C, H, W), dtype=jnp.float32)

    # nn.Conv2d(2, 1, 7, bias=False) + nn.BatchNorm2d(1) parameters.
    conv_w = 0.05 * jax.random.normal(kw, (1, 2, KSIZE, KSIZE), dtype=jnp.float32)
    bn_gamma = jnp.array([1.1], jnp.float32)
    bn_beta = jnp.array([0.05], jnp.float32)
    bn_mean = jnp.array([0.02], jnp.float32)
    bn_var = jnp.array([0.9], jnp.float32)

    out = spatial_attention(x, conv_w, bn_gamma, bn_beta, bn_mean, bn_var,
                            kernel_size=KSIZE)
    out = jax.block_until_ready(out)

    ref = spatial_attention_reference(x, conv_w, bn_gamma, bn_beta, bn_mean,
                                      bn_var, kernel_size=KSIZE)
    assert out.shape == (N, C, H, W)
    err = jnp.max(jnp.abs(out - ref))
    assert jnp.allclose(out, ref, atol=1e-5, rtol=1e-5), f"max abs err {err}"

    print("KERNEL_OK")
</pallas_src>

<mosaic_0001>
module attributes {stable_mosaic.version = 11 : i64} {
  func.func @_sa_kernel(%arg0: i32, %arg1: memref<1x4x256xf32, #tpu.memory_space<vmem>>, %arg2: memref<99xf32, #tpu.memory_space<smem>>, %arg3: memref<1x4x256xf32, #tpu.memory_space<vmem>>, %arg4: memref<1x22x22xf32, #tpu.memory_space<vmem>>, %arg5: memref<1x22x22xf32, #tpu.memory_space<vmem>>, %arg6: memref<1x1x256xf32, #tpu.memory_space<vmem>>) attributes {dimension_semantics = [#tpu.dimension_semantics<parallel>], iteration_bounds = array<i64: 2>, scalar_prefetch = 0 : i64, scratch_operands = 3 : i64, tpu.core_type = #tpu.core_type<tc>, window_params = [{transform_indices = @transform_0, window_bounds = array<i64: 1, 4, 256>}, {transform_indices = @transform_1, window_bounds = array<i64: 99>}, {transform_indices = @transform_2, window_bounds = array<i64: 1, 4, 256>}]} {
    %c0 = arith.constant 0 : index
    %c0_0 = arith.constant 0 : index
    %c0_1 = arith.constant 0 : index
    %0 = vector.load %arg1[%c0, %c0_0, %c0_1] : memref<1x4x256xf32, #tpu.memory_space<vmem>>, vector<1x4x256xf32>
    %cst = arith.constant dense<0.000000e+00> : vector<1x256xf32>
    %1 = vector.multi_reduction <add>, %0, %cst [1] : vector<1x4x256xf32> to vector<1x256xf32>
    %cst_2 = arith.constant 2.500000e-01 : f32
    %2 = vector.broadcast %cst_2 : f32 to vector<1x256xf32>
    %3 = arith.mulf %1, %2 : vector<1x256xf32>
    %cst_3 = arith.constant dense<0xFF800000> : vector<1x256xf32>
    %4 = vector.multi_reduction <maximumf>, %0, %cst_3 [1] : vector<1x4x256xf32> to vector<1x256xf32>
    %cst_4 = arith.constant 0.000000e+00 : f32
    %5 = vector.broadcast %cst_4 : f32 to vector<1x22x22xf32>
    %c0_5 = arith.constant 0 : index
    %c0_6 = arith.constant 0 : index
    %c0_7 = arith.constant 0 : index
    %6 = vector.load %arg4[%c0_5, %c0_6, %c0_7] : memref<1x22x22xf32, #tpu.memory_space<vmem>>, vector<1x22x22xf32>
    tpu.vector_store %arg4[%c0_5, %c0_6, %c0_7], %5 {strides = array<i32>} : memref<1x22x22xf32, #tpu.memory_space<vmem>>, vector<1x22x22xf32>,
    %cst_8 = arith.constant 0.000000e+00 : f32
    %7 = vector.broadcast %cst_8 : f32 to vector<1x22x22xf32>
    %c0_9 = arith.constant 0 : index
    %c0_10 = arith.constant 0 : index
    %c0_11 = arith.constant 0 : index
    %8 = vector.load %arg5[%c0_9, %c0_10, %c0_11] : memref<1x22x22xf32, #tpu.memory_space<vmem>>, vector<1x22x22xf32>
    tpu.vector_store %arg5[%c0_9, %c0_10, %c0_11], %7 {strides = array<i32>} : memref<1x22x22xf32, #tpu.memory_space<vmem>>, vector<1x22x22xf32>,
    %9 = vector.extract_strided_slice %3 {offsets = [0, 0], sizes = [1, 16], strides = [1, 1]} : vector<1x256xf32> to vector<1x16xf32>
    %c0_12 = arith.constant 0 : index
    %c3 = arith.constant 3 : index
    %c3_13 = arith.constant 3 : index
    %10 = vector.load %arg4[%c0_12, %c3, %c3_13] : memref<1x22x22xf32, #tpu.memory_space<vmem>>, vector<1x1x16xf32>
    %11 = vector.shape_cast %10 : vector<1x1x16xf32> to vector<1x16xf32>
    %12 = vector.shape_cast %9 : vector<1x16xf32> to vector<1x1x16xf32>
    tpu.vector_store %arg4[%c0_12, %c3, %c3_13], %12 {strides = array<i32>} : memref<1x22x22xf32, #tpu.memory_space<vmem>>, vector<1x1x16xf32>,
    %13 = vector.extract_strided_slice %4 {offsets = [0, 0], sizes = [1, 16], strides = [1, 1]} : vector<1x256xf32> to vector<1x16xf32>
    %c0_14 = arith.constant 0 : index
    %c3_15 = arith.constant 3 : index
    %c3_16 = arith.constant 3 : index
    %14 = vector.load %arg5[%c0_14, %c3_15, %c3_16] : memref<1x22x22xf32, #tpu.memory_space<vmem>>, vector<1x1x16xf32>
    %15 = vector.shape_cast %14 : vector<1x1x16xf32> to vector<1x16xf32>
    %16 = vector.shape_cast %13 : vector<1x16xf32> to vector<1x1x16xf32>
    tpu.vector_store %arg5[%c0_14, %c3_15, %c3_16], %16 {strides = array<i32>} : memref<1x22x22xf32, #tpu.memory_space<vmem>>, vector<1x1x16xf32>,
    %17 = vector.extract_strided_slice %3 {offsets = [0, 16], sizes = [1, 16], strides = [1, 1]} : vector<1x256xf32> to vector<1x16xf32>
    %c0_17 = arith.constant 0 : index
    %c4 = arith.constant 4 : index
    %c3_18 = arith.constant 3 : index
    %18 = vector.load %arg4[%c0_17, %c4, %c3_18] : memref<1x22x22xf32, #tpu.memory_space<vmem>>, vector<1x1x16xf32>
    %19 = vector.shape_cast %18 : vector<1x1x16xf32> to vector<1x16xf32>
    %20 = vector.shape_cast %17 : vector<1x16xf32> to vector<1x1x16xf32>
    tpu.vector_store %arg4[%c0_17, %c4, %c3_18], %20 {strides = array<i32>} : memref<1x22x22xf32, #tpu.memory_space<vmem>>, vector<1x1x16xf32>,
    %21 = vector.extract_strided_slice %4 {offsets = [0, 16], sizes = [1, 16], strides = [1, 1]} : vector<1x256xf32> to vector<1x16xf32>
    %c0_19 = arith.constant 0 : index
    %c4_20 = arith.constant 4 : index
    %c3_21 = arith.constant 3 : index
    %22 = vector.load %arg5[%c0_19, %c4_20, %c3_21] : memref<1x22x22xf32, #tpu.memory_space<vmem>>, vector<1x1x16xf32>
    %23 = vector.shape_cast %22 : vector<1x1x16xf32> to vector<1x16xf32>
    %24 = vector.shape_cast %21 : vector<1x16xf32> to vector<1x1x16xf32>
    tpu.vector_store %arg5[%c0_19, %c4_20, %c3_21], %24 {strides = array<i32>} : memref<1x22x22xf32, #tpu.memory_space<vmem>>, vector<1x1x16xf32>,
    %25 = vector.extract_strided_slice %3 {offsets = [0, 32], sizes = [1, 16], strides = [1, 1]} : vector<1x256xf32> to vector<1x16xf32>
    %c0_22 = arith.constant 0 : index
    %c5 = arith.constant 5 : index
    %c3_23 = arith.constant 3 : index
    %26 = vector.load %arg4[%c0_22, %c5, %c3_23] : memref<1x22x22xf32, #tpu.memory_space<vmem>>, vector<1x1x16xf32>
    %27 = vector.shape_cast %26 : vector<1x1x16xf32> to vector<1x16xf32>
    %28 = vector.shape_cast %25 : vector<1x16xf32> to vector<1x1x16xf32>
    tpu.vector_store %arg4[%c0_22, %c5, %c3_23], %28 {strides = array<i32>} : memref<1x22x22xf32, #tpu.memory_space<vmem>>, vector<1x1x16xf32>,
    %29 = vector.extract_strided_slice %4 {offsets = [0, 32], sizes = [1, 16], strides = [1, 1]} : vector<1x256xf32> to vector<1x16xf32>
    %c0_24 = arith.constant 0 : index
    %c5_25 = arith.constant 5 : index
    %c3_26 = arith.constant 3 : index
    %30 = vector.load %arg5[%c0_24, %c5_25, %c3_26] : memref<1x22x22xf32, #tpu.memory_space<vmem>>, vector<1x1x16xf32>
    %31 = vector.shape_cast %30 : vector<1x1x16xf32> to vector<1x16xf32>
    %32 = vector.shape_cast %29 : vector<1x16xf32> to vector<1x1x16xf32>
    tpu.vector_store %arg5[%c0_24, %c5_25, %c3_26], %32 {strides = array<i32>} : memref<1x22x22xf32, #tpu.memory_space<vmem>>, vector<1x1x16xf32>,
    %33 = vector.extract_strided_slice %3 {offsets = [0, 48], sizes = [1, 16], strides = [1, 1]} : vector<1x256xf32> to vector<1x16xf32>
    %c0_27 = arith.constant 0 : index
    %c6 = arith.constant 6 : index
    %c3_28 = arith.constant 3 : index
    %34 = vector.load %arg4[%c0_27, %c6, %c3_28] : memref<1x22x22xf32, #tpu.memory_space<vmem>>, vector<1x1x16xf32>
    %35 = vector.shape_cast %34 : vector<1x1x16xf32> to vector<1x16xf32>
    %36 = vector.shape_cast %33 : vector<1x16xf32> to vector<1x1x16xf32>
    tpu.vector_store %arg4[%c0_27, %c6, %c3_28], %36 {strides = array<i32>} : memref<1x22x22xf32, #tpu.memory_space<vmem>>, vector<1x1x16xf32>,
    %37 = vector.extract_strided_slice %4 {offsets = [0, 48], sizes = [1, 16], strides = [1, 1]} : vector<1x256xf32> to vector<1x16xf32>
    %c0_29 = arith.constant 0 : index
    %c6_30 = arith.constant 6 : index
    %c3_31 = arith.constant 3 : index
    %38 = vector.load %arg5[%c0_29, %c6_30, %c3_31] : memref<1x22x22xf32, #tpu.memory_space<vmem>>, vector<1x1x16xf32>
    %39 = vector.shape_cast %38 : vector<1x1x16xf32> to vector<1x16xf32>
    %40 = vector.shape_cast %37 : vector<1x16xf32> to vector<1x1x16xf32>
    tpu.vector_store %arg5[%c0_29, %c6_30, %c3_31], %40 {strides = array<i32>} : memref<1x22x22xf32, #tpu.memory_space<vmem>>, vector<1x1x16xf32>,
    %41 = vector.extract_strided_slice %3 {offsets = [0, 64], sizes = [1, 16], strides = [1, 1]} : vector<1x256xf32> to vector<1x16xf32>
    %c0_32 = arith.constant 0 : index
    %c7 = arith.constant 7 : index
    %c3_33 = arith.constant 3 : index
    %42 = vector.load %arg4[%c0_32, %c7, %c3_33] : memref<1x22x22xf32, #tpu.memory_space<vmem>>, vector<1x1x16xf32>
    %43 = vector.shape_cast %42 : vector<1x1x16xf32> to vector<1x16xf32>
    %44 = vector.shape_cast %41 : vector<1x16xf32> to vector<1x1x16xf32>
    tpu.vector_store %arg4[%c0_32, %c7, %c3_33], %44 {strides = array<i32>} : memref<1x22x22xf32, #tpu.memory_space<vmem>>, vector<1x1x16xf32>,
    %45 = vector.extract_strided_slice %4 {offsets = [0, 64], sizes = [1, 16], strides = [1, 1]} : vector<1x256xf32> to vector<1x16xf32>
    %c0_34 = arith.constant 0 : index
    %c7_35 = arith.constant 7 : index
    %c3_36 = arith.constant 3 : index
    %46 = vector.load %arg5[%c0_34, %c7_35, %c3_36] : memref<1x22x22xf32, #tpu.memory_space<vmem>>, vector<1x1x16xf32>
    %47 = vector.shape_cast %46 : vector<1x1x16xf32> to vector<1x16xf32>
    %48 = vector.shape_cast %45 : vector<1x16xf32> to vector<1x1x16xf32>
    tpu.vector_store %arg5[%c0_34, %c7_35, %c3_36], %48 {strides = array<i32>} : memref<1x22x22xf32, #tpu.memory_space<vmem>>, vector<1x1x16xf32>,
    %49 = vector.extract_strided_slice %3 {offsets = [0, 80], sizes = [1, 16], strides = [1, 1]} : vector<1x256xf32> to vector<1x16xf32>
    %c0_37 = arith.constant 0 : index
    %c8 = arith.constant 8 : index
    %c3_38 = arith.constant 3 : index
    %50 = vector.load %arg4[%c0_37, %c8, %c3_38] : memref<1x22x22xf32, #tpu.memory_space<vmem>>, vector<1x1x16xf32>
    %51 = vector.shape_cast %50 : vector<1x1x16xf32> to vector<1x16xf32>
    %52 = vector.shape_cast %49 : vector<1x16xf32> to vector<1x1x16xf32>
    tpu.vector_store %arg4[%c0_37, %c8, %c3_38], %52 {strides = array<i32>} : memref<1x22x22xf32, #tpu.memory_space<vmem>>, vector<1x1x16xf32>,
    %53 = vector.extract_strided_slice %4 {offsets = [0, 80], sizes = [1, 16], strides = [1, 1]} : vector<1x256xf32> to vector<1x16xf32>
    %c0_39 = arith.constant 0 : index
    %c8_40 = arith.constant 8 : index
    %c3_41 = arith.constant 3 : index
    %54 = vector.load %arg5[%c0_39, %c8_40, %c3_41] : memref<1x22x22xf32, #tpu.memory_space<vmem>>, vector<1x1x16xf32>
    %55 = vector.shape_cast %54 : vector<1x1x16xf32> to vector<1x16xf32>
    %56 = vector.shape_cast %53 : vector<1x16xf32> to vector<1x1x16xf32>
    tpu.vector_store %arg5[%c0_39, %c8_40, %c3_41], %56 {strides = array<i32>} : memref<1x22x22xf32, #tpu.memory_space<vmem>>, vector<1x1x16xf32>,
    %57 = vector.extract_strided_slice %3 {offsets = [0, 96], sizes = [1, 16], strides = [1, 1]} : vector<1x256xf32> to vector<1x16xf32>
    %c0_42 = arith.constant 0 : index
    %c9 = arith.constant 9 : index
    %c3_43 = arith.constant 3 : index
    %58 = vector.load %arg4[%c0_42, %c9, %c3_43] : memref<1x22x22xf32, #tpu.memory_space<vmem>>, vector<1x1x16xf32>
    %59 = vector.shape_cast %58 : vector<1x1x16xf32> to vector<1x16xf32>
    %60 = vector.shape_cast %57 : vector<1x16xf32> to vector<1x1x16xf32>
    tpu.vector_store %arg4[%c0_42, %c9, %c3_43], %60 {strides = array<i32>} : memref<1x22x22xf32, #tpu.memory_space<vmem>>, vector<1x1x16xf32>,
    %61 = vector.extract_strided_slice %4 {offsets = [0, 96], sizes = [1, 16], strides = [1, 1]} : vector<1x256xf32> to vector<1x16xf32>
    %c0_44 = arith.constant 0 : index
    %c9_45 = arith.constant 9 : index
    %c3_46 = arith.constant 3 : index
    %62 = vector.load %arg5[%c0_44, %c9_45, %c3_46] : memref<1x22x22xf32, #tpu.memory_space<vmem>>, vector<1x1x16xf32>
    %63 = vector.shape_cast %62 : vector<1x1x16xf32> to vector<1x16xf32>
    %64 = vector.shape_cast %61 : vector<1x16xf32> to vector<1x1x16xf32>
    tpu.vector_store %arg5[%c0_44, %c9_45, %c3_46], %64 {strides = array<i32>} : memref<1x22x22xf32, #tpu.memory_space<vmem>>, vector<1x1x16xf32>,
    %65 = vector.extract_strided_slice %3 {offsets = [0, 112], sizes = [1, 16], strides = [1, 1]} : vector<1x256xf32> to vector<1x16xf32>
    %c0_47 = arith.constant 0 : index
    %c10 = arith.constant 10 : index
    %c3_48 = arith.constant 3 : index
    %66 = vector.load %arg4[%c0_47, %c10, %c3_48] : memref<1x22x22xf32, #tpu.memory_space<vmem>>, vector<1x1x16xf32>
    %67 = vector.shape_cast %66 : vector<1x1x16xf32> to vector<1x16xf32>
    %68 = vector.shape_cast %65 : vector<1x16xf32> to vector<1x1x16xf32>
    tpu.vector_store %arg4[%c0_47, %c10, %c3_48], %68 {strides = array<i32>} : memref<1x22x22xf32, #tpu.memory_space<vmem>>, vector<1x1x16xf32>,
    %69 = vector.extract_strided_slice %4 {offsets = [0, 112], sizes = [1, 16], strides = [1, 1]} : vector<1x256xf32> to vector<1x16xf32>
    %c0_49 = arith.constant 0 : index
    %c10_50 = arith.constant 10 : index
    %c3_51 = arith.constant 3 : index
    %70 = vector.load %arg5[%c0_49, %c10_50, %c3_51] : memref<1x22x22xf32, #tpu.memory_space<vmem>>, vector<1x1x16xf32>
    %71 = vector.shape_cast %70 : vector<1x1x16xf32> to vector<1x16xf32>
    %72 = vector.shape_cast %69 : vector<1x16xf32> to vector<1x1x16xf32>
    tpu.vector_store %arg5[%c0_49, %c10_50, %c3_51], %72 {strides = array<i32>} : memref<1x22x22xf32, #tpu.memory_space<vmem>>, vector<1x1x16xf32>,
    %73 = vector.extract_strided_slice %3 {offsets = [0, 128], sizes = [1, 16], strides = [1, 1]} : vector<1x256xf32> to vector<1x16xf32>
    %c0_52 = arith.constant 0 : index
    %c11 = arith.constant 11 : index
    %c3_53 = arith.constant 3 : index
    %74 = vector.load %arg4[%c0_52, %c11, %c3_53] : memref<1x22x22xf32, #tpu.memory_space<vmem>>, vector<1x1x16xf32>
    %75 = vector.shape_cast %74 : vector<1x1x16xf32> to vector<1x16xf32>
    %76 = vector.shape_cast %73 : vector<1x16xf32> to vector<1x1x16xf32>
    tpu.vector_store %arg4[%c0_52, %c11, %c3_53], %76 {strides = array<i32>} : memref<1x22x22xf32, #tpu.memory_space<vmem>>, vector<1x1x16xf32>,
    %77 = vector.extract_strided_slice %4 {offsets = [0, 128], sizes = [1, 16], strides = [1, 1]} : vector<1x256xf32> to vector<1x16xf32>
    %c0_54 = arith.constant 0 : index
    %c11_55 = arith.constant 11 : index
    %c3_56 = arith.constant 3 : index
    %78 = vector.load %arg5[%c0_54, %c11_55, %c3_56] : memref<1x22x22xf32, #tpu.memory_space<vmem>>, vector<1x1x16xf32>
    %79 = vector.shape_cast %78 : vector<1x1x16xf32> to vector<1x16xf32>
    %80 = vector.shape_cast %77 : vector<1x16xf32> to vector<1x1x16xf32>
    tpu.vector_store %arg5[%c0_54, %c11_55, %c3_56], %80 {strides = array<i32>} : memref<1x22x22xf32, #tpu.memory_space<vmem>>, vector<1x1x16xf32>,
    %81 = vector.extract_strided_slice %3 {offsets = [0, 144], sizes = [1, 16], strides = [1, 1]} : vector<1x256xf32> to vector<1x16xf32>
    %c0_57 = arith.constant 0 : index
    %c12 = arith.constant 12 : index
    %c3_58 = arith.constant 3 : index
    %82 = vector.load %arg4[%c0_57, %c12, %c3_58] : memref<1x22x22xf32, #tpu.memory_space<vmem>>, vector<1x1x16xf32>
    %83 = vector.shape_cast %82 : vector<1x1x16xf32> to vector<1x16xf32>
    %84 = vector.shape_cast %81 : vector<1x16xf32> to vector<1x1x16xf32>
    tpu.vector_store %arg4[%c0_57, %c12, %c3_58], %84 {strides = array<i32>} : memref<1x22x22xf32, #tpu.memory_space<vmem>>, vector<1x1x16xf32>,
    %85 = vector.extract_strided_slice %4 {offsets = [0, 144], sizes = [1, 16], strides = [1, 1]} : vector<1x256xf32> to vector<1x16xf32>
    %c0_59 = arith.constant 0 : index
    %c12_60 = arith.constant 12 : index
    %c3_61 = arith.constant 3 : index
    %86 = vector.load %arg5[%c0_59, %c12_60, %c3_61] : memref<1x22x22xf32, #tpu.memory_space<vmem>>, vector<1x1x16xf32>
    %87 = vector.shape_cast %86 : vector<1x1x16xf32> to vector<1x16xf32>
    %88 = vector.shape_cast %85 : vector<1x16xf32> to vector<1x1x16xf32>
    tpu.vector_store %arg5[%c0_59, %c12_60, %c3_61], %88 {strides = array<i32>} : memref<1x22x22xf32, #tpu.memory_space<vmem>>, vector<1x1x16xf32>,
    %89 = vector.extract_strided_slice %3 {offsets = [0, 160], sizes = [1, 16], strides = [1, 1]} : vector<1x256xf32> to vector<1x16xf32>
    %c0_62 = arith.constant 0 : index
    %c13 = arith.constant 13 : index
    %c3_63 = arith.constant 3 : index
    %90 = vector.load %arg4[%c0_62, %c13, %c3_63] : memref<1x22x22xf32, #tpu.memory_space<vmem>>, vector<1x1x16xf32>
    %91 = vector.shape_cast %90 : vector<1x1x16xf32> to vector<1x16xf32>
    %92 = vector.shape_cast %89 : vector<1x16xf32> to vector<1x1x16xf32>
    tpu.vector_store %arg4[%c0_62, %c13, %c3_63], %92 {strides = array<i32>} : memref<1x22x22xf32, #tpu.memory_space<vmem>>, vector<1x1x16xf32>,
    %93 = vector.extract_strided_slice %4 {offsets = [0, 160], sizes = [1, 16], strides = [1, 1]} : vector<1x256xf32> to vector<1x16xf32>
    %c0_64 = arith.constant 0 : index
    %c13_65 = arith.constant 13 : index
    %c3_66 = arith.constant 3 : index
    %94 = vector.load %arg5[%c0_64, %c13_65, %c3_66] : memref<1x22x22xf32, #tpu.memory_space<vmem>>, vector<1x1x16xf32>
    %95 = vector.shape_cast %94 : vector<1x1x16xf32> to vector<1x16xf32>
    %96 = vector.shape_cast %93 : vector<1x16xf32> to vector<1x1x16xf32>
    tpu.vector_store %arg5[%c0_64, %c13_65, %c3_66], %96 {strides = array<i32>} : memref<1x22x22xf32, #tpu.memory_space<vmem>>, vector<1x1x16xf32>,
    %97 = vector.extract_strided_slice %3 {offsets = [0, 176], sizes = [1, 16], strides = [1, 1]} : vector<1x256xf32> to vector<1x16xf32>
    %c0_67 = arith.constant 0 : index
    %c14 = arith.constant 14 : index
    %c3_68 = arith.constant 3 : index
    %98 = vector.load %arg4[%c0_67, %c14, %c3_68] : memref<1x22x22xf32, #tpu.memory_space<vmem>>, vector<1x1x16xf32>
    %99 = vector.shape_cast %98 : vector<1x1x16xf32> to vector<1x16xf32>
    %100 = vector.shape_cast %97 : vector<1x16xf32> to vector<1x1x16xf32>
    tpu.vector_store %arg4[%c0_67, %c14, %c3_68], %100 {strides = array<i32>} : memref<1x22x22xf32, #tpu.memory_space<vmem>>, vector<1x1x16xf32>,
    %101 = vector.extract_strided_slice %4 {offsets = [0, 176], sizes = [1, 16], strides = [1, 1]} : vector<1x256xf32> to vector<1x16xf32>
    %c0_69 = arith.constant 0 : index
    %c14_70 = arith.constant 14 : index
    %c3_71 = arith.constant 3 : index
    %102 = vector.load %arg5[%c0_69, %c14_70, %c3_71] : memref<1x22x22xf32, #tpu.memory_space<vmem>>, vector<1x1x16xf32>
    %103 = vector.shape_cast %102 : vector<1x1x16xf32> to vector<1x16xf32>
    %104 = vector.shape_cast %101 : vector<1x16xf32> to vector<1x1x16xf32>
    tpu.vector_store %arg5[%c0_69, %c14_70, %c3_71], %104 {strides = array<i32>} : memref<1x22x22xf32, #tpu.memory_space<vmem>>, vector<1x1x16xf32>,
    %105 = vector.extract_strided_slice %3 {offsets = [0, 192], sizes = [1, 16], strides = [1, 1]} : vector<1x256xf32> to vector<1x16xf32>
    %c0_72 = arith.constant 0 : index
    %c15 = arith.constant 15 : index
    %c3_73 = arith.constant 3 : index
    %106 = vector.load %arg4[%c0_72, %c15, %c3_73] : memref<1x22x22xf32, #tpu.memory_space<vmem>>, vector<1x1x16xf32>
    %107 = vector.shape_cast %106 : vector<1x1x16xf32> to vector<1x16xf32>
    %108 = vector.shape_cast %105 : vector<1x16xf32> to vector<1x1x16xf32>
    tpu.vector_store %arg4[%c0_72, %c15, %c3_73], %108 {strides = array<i32>} : memref<1x22x22xf32, #tpu.memory_space<vmem>>, vector<1x1x16xf32>,
    %109 = vector.extract_strided_slice %4 {offsets = [0, 192], sizes = [1, 16], strides = [1, 1]} : vector<1x256xf32> to vector<1x16xf32>
    %c0_74 = arith.constant 0 : index
    %c15_75 = arith.constant 15 : index
    %c3_76 = arith.constant 3 : index
    %110 = vector.load %arg5[%c0_74, %c15_75, %c3_76] : memref<1x22x22xf32, #tpu.memory_space<vmem>>, vector<1x1x16xf32>
    %111 = vector.shape_cast %110 : vector<1x1x16xf32> to vector<1x16xf32>
    %112 = vector.shape_cast %109 : vector<1x16xf32> to vector<1x1x16xf32>
    tpu.vector_store %arg5[%c0_74, %c15_75, %c3_76], %112 {strides = array<i32>} : memref<1x22x22xf32, #tpu.memory_space<vmem>>, vector<1x1x16xf32>,
    %113 = vector.extract_strided_slice %3 {offsets = [0, 208], sizes = [1, 16], strides = [1, 1]} : vector<1x256xf32> to vector<1x16xf32>
    %c0_77 = arith.constant 0 : index
    %c16 = arith.constant 16 : index
    %c3_78 = arith.constant 3 : index
    %114 = vector.load %arg4[%c0_77, %c16, %c3_78] : memref<1x22x22xf32, #tpu.memory_space<vmem>>, vector<1x1x16xf32>
    %115 = vector.shape_cast %114 : vector<1x1x16xf32> to vector<1x16xf32>
    %116 = vector.shape_cast %113 : vector<1x16xf32> to vector<1x1x16xf32>
    tpu.vector_store %arg4[%c0_77, %c16, %c3_78], %116 {strides = array<i32>} : memref<1x22x22xf32, #tpu.memory_space<vmem>>, vector<1x1x16xf32>,
    %117 = vector.extract_strided_slice %4 {offsets = [0, 208], sizes = [1, 16], strides = [1, 1]} : vector<1x256xf32> to vector<1x16xf32>
    %c0_79 = arith.constant 0 : index
    %c16_80 = arith.constant 16 : index
    %c3_81 = arith.constant 3 : index
    %118 = vector.load %arg5[%c0_79, %c16_80, %c3_81] : memref<1x22x22xf32, #tpu.memory_space<vmem>>, vector<1x1x16xf32>
    %119 = vector.shape_cast %118 : vector<1x1x16xf32> to vector<1x16xf32>
    %120 = vector.shape_cast %117 : vector<1x16xf32> to vector<1x1x16xf32>
    tpu.vector_store %arg5[%c0_79, %c16_80, %c3_81], %120 {strides = array<i32>} : memref<1x22x22xf32, #tpu.memory_space<vmem>>, vector<1x1x16xf32>,
    %121 = vector.extract_strided_slice %3 {offsets = [0, 224], sizes = [1, 16], strides = [1, 1]} : vector<1x256xf32> to vector<1x16xf32>
    %c0_82 = arith.constant 0 : index
    %c17 = arith.constant 17 : index
    %c3_83 = arith.constant 3 : index
    %122 = vector.load %arg4[%c0_82, %c17, %c3_83] : memref<1x22x22xf32, #tpu.memory_space<vmem>>, vector<1x1x16xf32>
    %123 = vector.shape_cast %122 : vector<1x1x16xf32> to vector<1x16xf32>
    %124 = vector.shape_cast %121 : vector<1x16xf32> to vector<1x1x16xf32>
    tpu.vector_store %arg4[%c0_82, %c17, %c3_83], %124 {strides = array<i32>} : memref<1x22x22xf32, #tpu.memory_space<vmem>>, vector<1x1x16xf32>,
    %125 = vector.extract_strided_slice %4 {offsets = [0, 224], sizes = [1, 16], strides = [1, 1]} : vector<1x256xf32> to vector<1x16xf32>
    %c0_84 = arith.constant 0 : index
    %c17_85 = arith.constant 17 : index
    %c3_86 = arith.constant 3 : index
    %126 = vector.load %arg5[%c0_84, %c17_85, %c3_86] : memref<1x22x22xf32, #tpu.memory_space<vmem>>, vector<1x1x16xf32>
    %127 = vector.shape_cast %126 : vector<1x1x16xf32> to vector<1x16xf32>
    %128 = vector.shape_cast %125 : vector<1x16xf32> to vector<1x1x16xf32>
    tpu.vector_store %arg5[%c0_84, %c17_85, %c3_86], %128 {strides = array<i32>} : memref<1x22x22xf32, #tpu.memory_space<vmem>>, vector<1x1x16xf32>,
    %129 = vector.extract_strided_slice %3 {offsets = [0, 240], sizes = [1, 16], strides = [1, 1]} : vector<1x256xf32> to vector<1x16xf32>
    %c0_87 = arith.constant 0 : index
    %c18 = arith.constant 18 : index
    %c3_88 = arith.constant 3 : index
    %130 = vector.load %arg4[%c0_87, %c18, %c3_88] : memref<1x22x22xf32, #tpu.memory_space<vmem>>, vector<1x1x16xf32>
    %131 = vector.shape_cast %130 : vector<1x1x16xf32> to vector<1x16xf32>
    %132 = vector.shape_cast %129 : vector<1x16xf32> to vector<1x1x16xf32>
    tpu.vector_store %arg4[%c0_87, %c18, %c3_88], %132 {strides = array<i32>} : memref<1x22x22xf32, #tpu.memory_space<vmem>>, vector<1x1x16xf32>,
    %133 = vector.extract_strided_slice %4 {offsets = [0, 240], sizes = [1, 16], strides = [1, 1]} : vector<1x256xf32> to vector<1x16xf32>
    %c0_89 = arith.constant 0 : index
    %c18_90 = arith.constant 18 : index
    %c3_91 = arith.constant 3 : index
    %134 = vector.load %arg5[%c0_89, %c18_90, %c3_91] : memref<1x22x22xf32, #tpu.memory_space<vmem>>, vector<1x1x16xf32>
    %135 = vector.shape_cast %134 : vector<1x1x16xf32> to vector<1x16xf32>
    %136 = vector.shape_cast %133 : vector<1x16xf32> to vector<1x1x16xf32>
    tpu.vector_store %arg5[%c0_89, %c18_90, %c3_91], %136 {strides = array<i32>} : memref<1x22x22xf32, #tpu.memory_space<vmem>>, vector<1x1x16xf32>,
    %c98 = arith.constant 98 : index
    %137 = memref.load %arg2[%c98] : memref<99xf32, #tpu.memory_space<smem>>
    %138 = vector.broadcast %137 : f32 to vector<1x16x16xf32>
    %c0_92 = arith.constant 0 : index
    %c0_93 = arith.constant 0 : index
    %c0_94 = arith.constant 0 : index
    %139 = vector.load %arg4[%c0_92, %c0_93, %c0_94] : memref<1x22x22xf32, #tpu.memory_space<vmem>>, vector<1x22x16xf32>
    %c0_95 = arith.constant 0 : index
    %140 = memref.load %arg2[%c0_95] : memref<99xf32, #tpu.memory_space<smem>>
    %141 = vector.extract_strided_slice %139 {offsets = [0, 0, 0], sizes = [1, 16, 16], strides = [1, 1, 1]} : vector<1x22x16xf32> to vector<1x16x16xf32>
    %142 = vector.broadcast %140 : f32 to vector<1x16x16xf32>
    %143 = arith.mulf %141, %142 : vector<1x16x16xf32>
    %144 = arith.addf %138, %143 : vector<1x16x16xf32>
    %c7_96 = arith.constant 7 : index
    %145 = memref.load %arg2[%c7_96] : memref<99xf32, #tpu.memory_space<smem>>
    %146 = vector.extract_strided_slice %139 {offsets = [0, 1, 0], sizes = [1, 16, 16], strides = [1, 1, 1]} : vector<1x22x16xf32> to vector<1x16x16xf32>
    %147 = vector.broadcast %145 : f32 to vector<1x16x16xf32>
    %148 = arith.mulf %146, %147 : vector<1x16x16xf32>
    %149 = arith.addf %144, %148 : vector<1x16x16xf32>
    %c14_97 = arith.constant 14 : index
    %150 = memref.load %arg2[%c14_97] : memref<99xf32, #tpu.memory_space<smem>>
    %151 = vector.extract_strided_slice %139 {offsets = [0, 2, 0], sizes = [1, 16, 16], strides = [1, 1, 1]} : vector<1x22x16xf32> to vector<1x16x16xf32>
    %152 = vector.broadcast %150 : f32 to vector<1x16x16xf32>
    %153 = arith.mulf %151, %152 : vector<1x16x16xf32>
    %154 = arith.addf %149, %153 : vector<1x16x16xf32>
    %c21 = arith.constant 21 : index
    %155 = memref.load %arg2[%c21] : memref<99xf32, #tpu.memory_space<smem>>
    %156 = vector.extract_strided_slice %139 {offsets = [0, 3, 0], sizes = [1, 16, 16], strides = [1, 1, 1]} : vector<1x22x16xf32> to vector<1x16x16xf32>
    %157 = vector.broadcast %155 : f32 to vector<1x16x16xf32>
    %158 = arith.mulf %156, %157 : vector<1x16x16xf32>
    %159 = arith.addf %154, %158 : vector<1x16x16xf32>
    %c28 = arith.constant 28 : index
    %160 = memref.load %arg2[%c28] : memref<99xf32, #tpu.memory_space<smem>>
    %161 = vector.extract_strided_slice %139 {offsets = [0, 4, 0], sizes = [1, 16, 16], strides = [1, 1, 1]} : vector<1x22x16xf32> to vector<1x16x16xf32>
    %162 = vector.broadcast %160 : f32 to vector<1x16x16xf32>
    %163 = arith.mulf %161, %162 : vector<1x16x16xf32>
    %164 = arith.addf %159, %163 : vector<1x16x16xf32>
    %c35 = arith.constant 35 : index
    %165 = memref.load %arg2[%c35] : memref<99xf32, #tpu.memory_space<smem>>
    %166 = vector.extract_strided_slice %139 {offsets = [0, 5, 0], sizes = [1, 16, 16], strides = [1, 1, 1]} : vector<1x22x16xf32> to vector<1x16x16xf32>
    %167 = vector.broadcast %165 : f32 to vector<1x16x16xf32>
    %168 = arith.mulf %166, %167 : vector<1x16x16xf32>
    %169 = arith.addf %164, %168 : vector<1x16x16xf32>
    %c42 = arith.constant 42 : index
    %170 = memref.load %arg2[%c42] : memref<99xf32, #tpu.memory_space<smem>>
    %171 = vector.extract_strided_slice %139 {offsets = [0, 6, 0], sizes = [1, 16, 16], strides = [1, 1, 1]} : vector<1x22x16xf32> to vector<1x16x16xf32>
    %172 = vector.broadcast %170 : f32 to vector<1x16x16xf32>
    %173 = arith.mulf %171, %172 : vector<1x16x16xf32>
    %174 = arith.addf %169, %173 : vector<1x16x16xf32>
    %c0_98 = arith.constant 0 : index
    %c0_99 = arith.constant 0 : index
    %c1 = arith.constant 1 : index
    %175 = vector.load %arg4[%c0_98, %c0_99, %c1] : memref<1x22x22xf32, #tpu.memory_space<vmem>>, vector<1x22x16xf32>
    %c1_100 = arith.constant 1 : index
    %176 = memref.load %arg2[%c1_100] : memref<99xf32, #tpu.memory_space<smem>>
    %177 = vector.extract_strided_slice %175 {offsets = [0, 0, 0], sizes = [1, 16, 16], strides = [1, 1, 1]} : vector<1x22x16xf32> to vector<1x16x16xf32>
    %178 = vector.broadcast %176 : f32 to vector<1x16x16xf32>
    %179 = arith.mulf %177, %178 : vector<1x16x16xf32>
    %180 = arith.addf %174, %179 : vector<1x16x16xf32>
    %c8_101 = arith.constant 8 : index
    %181 = memref.load %arg2[%c8_101] : memref<99xf32, #tpu.memory_space<smem>>
    %182 = vector.extract_strided_slice %175 {offsets = [0, 1, 0], sizes = [1, 16, 16], strides = [1, 1, 1]} : vector<1x22x16xf32> to vector<1x16x16xf32>
    %183 = vector.broadcast %181 : f32 to vector<1x16x16xf32>
    %184 = arith.mulf %182, %183 : vector<1x16x16xf32>
    %185 = arith.addf %180, %184 : vector<1x16x16xf32>
    %c15_102 = arith.constant 15 : index
    %186 = memref.load %arg2[%c15_102] : memref<99xf32, #tpu.memory_space<smem>>
    %187 = vector.extract_strided_slice %175 {offsets = [0, 2, 0], sizes = [1, 16, 16], strides = [1, 1, 1]} : vector<1x22x16xf32> to vector<1x16x16xf32>
    %188 = vector.broadcast %186 : f32 to vector<1x16x16xf32>
    %189 = arith.mulf %187, %188 : vector<1x16x16xf32>
    %190 = arith.addf %185, %189 : vector<1x16x16xf32>
    %c22 = arith.constant 22 : index
    %191 = memref.load %arg2[%c22] : memref<99xf32, #tpu.memory_space<smem>>
    %192 = vector.extract_strided_slice %175 {offsets = [0, 3, 0], sizes = [1, 16, 16], strides = [1, 1, 1]} : vector<1x22x16xf32> to vector<1x16x16xf32>
    %193 = vector.broadcast %191 : f32 to vector<1x16x16xf32>
    %194 = arith.mulf %192, %193 : vector<1x16x16xf32>
    %195 = arith.addf %190, %194 : vector<1x16x16xf32>
    %c29 = arith.constant 29 : index
    %196 = memref.load %arg2[%c29] : memref<99xf32, #tpu.memory_space<smem>>
    %197 = vector.extract_strided_slice %175 {offsets = [0, 4, 0], sizes = [1, 16, 16], strides = [1, 1, 1]} : vector<1x22x16xf32> to vector<1x16x16xf32>
    %198 = vector.broadcast %196 : f32 to vector<1x16x16xf32>
    %199 = arith.mulf %197, %198 : vector<1x16x16xf32>
    %200 = arith.addf %195, %199 : vector<1x16x16xf32>
    %c36 = arith.constant 36 : index
    %201 = memref.load %arg2[%c36] : memref<99xf32, #tpu.memory_space<smem>>
    %202 = vector.extract_strided_slice %175 {offsets = [0, 5, 0], sizes = [1, 16, 16], strides = [1, 1, 1]} : vector<1x22x16xf32> to vector<1x16x16xf32>
    %203 = vector.broadcast %201 : f32 to vector<1x16x16xf32>
    %204 = arith.mulf %202, %203 : vector<1x16x16xf32>
    %205 = arith.addf %200, %204 : vector<1x16x16xf32>
    %c43 = arith.constant 43 : index
    %206 = memref.load %arg2[%c43] : memref<99xf32, #tpu.memory_space<smem>>
    %207 = vector.extract_strided_slice %175 {offsets = [0, 6, 0], sizes = [1, 16, 16], strides = [1, 1, 1]} : vector<1x22x16xf32> to vector<1x16x16xf32>
    %208 = vector.broadcast %206 : f32 to vector<1x16x16xf32>
    %209 = arith.mulf %207, %208 : vector<1x16x16xf32>
    %210 = arith.addf %205, %209 : vector<1x16x16xf32>
    %c0_103 = arith.constant 0 : index
    %c0_104 = arith.constant 0 : index
    %c2 = arith.constant 2 : index
    %211 = vector.load %arg4[%c0_103, %c0_104, %c2] : memref<1x22x22xf32, #tpu.memory_space<vmem>>, vector<1x22x16xf32>
    %c2_105 = arith.constant 2 : index
    %212 = memref.load %arg2[%c2_105] : memref<99xf32, #tpu.memory_space<smem>>
    %213 = vector.extract_strided_slice %211 {offsets = [0, 0, 0], sizes = [1, 16, 16], strides = [1, 1, 1]} : vector<1x22x16xf32> to vector<1x16x16xf32>
    %214 = vector.broadcast %212 : f32 to vector<1x16x16xf32>
    %215 = arith.mulf %213, %214 : vector<1x16x16xf32>
    %216 = arith.addf %210, %215 : vector<1x16x16xf32>
    %c9_106 = arith.constant 9 : index
    %217 = memref.load %arg2[%c9_106] : memref<99xf32, #tpu.memory_space<smem>>
    %218 = vector.extract_strided_slice %211 {offsets = [0, 1, 0], sizes = [1, 16, 16], strides = [1, 1, 1]} : vector<1x22x16xf32> to vector<1x16x16xf32>
    %219 = vector.broadcast %217 : f32 to vector<1x16x16xf32>
    %220 = arith.mulf %218, %219 : vector<1x16x16xf32>
    %221 = arith.addf %216, %220 : vector<1x16x16xf32>
    %c16_107 = arith.constant 16 : index
    %222 = memref.load %arg2[%c16_107] : memref<99xf32, #tpu.memory_space<smem>>
    %223 = vector.extract_strided_slice %211 {offsets = [0, 2, 0], sizes = [1, 16, 16], strides = [1, 1, 1]} : vector<1x22x16xf32> to vector<1x16x16xf32>
    %224 = vector.broadcast %222 : f32 to vector<1x16x16xf32>
    %225 = arith.mulf %223, %224 : vector<1x16x16xf32>
    %226 = arith.addf %221, %225 : vector<1x16x16xf32>
    %c23 = arith.constant 23 : index
    %227 = memref.load %arg2[%c23] : memref<99xf32, #tpu.memory_space<smem>>
    %228 = vector.extract_strided_slice %211 {offsets = [0, 3, 0], sizes = [1, 16, 16], strides = [1, 1, 1]} : vector<1x22x16xf32> to vector<1x16x16xf32>
    %229 = vector.broadcast %227 : f32 to vector<1x16x16xf32>
    %230 = arith.mulf %228, %229 : vector<1x16x16xf32>
    %231 = arith.addf %226, %230 : vector<1x16x16xf32>
    %c30 = arith.constant 30 : index
    %232 = memref.load %arg2[%c30] : memref<99xf32, #tpu.memory_space<smem>>
    %233 = vector.extract_strided_slice %211 {offsets = [0, 4, 0], sizes = [1, 16, 16], strides = [1, 1, 1]} : vector<1x22x16xf32> to vector<1x16x16xf32>
    %234 = vector.broadcast %232 : f32 to vector<1x16x16xf32>
    %235 = arith.mulf %233, %234 : vector<1x16x16xf32>
    %236 = arith.addf %231, %235 : vector<1x16x16xf32>
    %c37 = arith.constant 37 : index
    %237 = memref.load %arg2[%c37] : memref<99xf32, #tpu.memory_space<smem>>
    %238 = vector.extract_strided_slice %211 {offsets = [0, 5, 0], sizes = [1, 16, 16], strides = [1, 1, 1]} : vector<1x22x16xf32> to vector<1x16x16xf32>
    %239 = vector.broadcast %237 : f32 to vector<1x16x16xf32>
    %240 = arith.mulf %238, %239 : vector<1x16x16xf32>
    %241 = arith.addf %236, %240 : vector<1x16x16xf32>
    %c44 = arith.constant 44 : index
    %242 = memref.load %arg2[%c44] : memref<99xf32, #tpu.memory_space<smem>>
    %243 = vector.extract_strided_slice %211 {offsets = [0, 6, 0], sizes = [1, 16, 16], strides = [1, 1, 1]} : vector<1x22x16xf32> to vector<1x16x16xf32>
    %244 = vector.broadcast %242 : f32 to vector<1x16x16xf32>
    %245 = arith.mulf %243, %244 : vector<1x16x16xf32>
    %246 = arith.addf %241, %245 : vector<1x16x16xf32>
    %c0_108 = arith.constant 0 : index
    %c0_109 = arith.constant 0 : index
    %c3_110 = arith.constant 3 : index
    %247 = vector.load %arg4[%c0_108, %c0_109, %c3_110] : memref<1x22x22xf32, #tpu.memory_space<vmem>>, vector<1x22x16xf32>
    %c3_111 = arith.constant 3 : index
    %248 = memref.load %arg2[%c3_111] : memref<99xf32, #tpu.memory_space<smem>>
    %249 = vector.extract_strided_slice %247 {offsets = [0, 0, 0], sizes = [1, 16, 16], strides = [1, 1, 1]} : vector<1x22x16xf32> to vector<1x16x16xf32>
    %250 = vector.broadcast %248 : f32 to vector<1x16x16xf32>
    %251 = arith.mulf %249, %250 : vector<1x16x16xf32>
    %252 = arith.addf %246, %251 : vector<1x16x16xf32>
    %c10_112 = arith.constant 10 : index
    %253 = memref.load %arg2[%c10_112] : memref<99xf32, #tpu.memory_space<smem>>
    %254 = vector.extract_strided_slice %247 {offsets = [0, 1, 0], sizes = [1, 16, 16], strides = [1, 1, 1]} : vector<1x22x16xf32> to vector<1x16x16xf32>
    %255 = vector.broadcast %253 : f32 to vector<1x16x16xf32>
    %256 = arith.mulf %254, %255 : vector<1x16x16xf32>
    %257 = arith.addf %252, %256 : vector<1x16x16xf32>
    %c17_113 = arith.constant 17 : index
    %258 = memref.load %arg2[%c17_113] : memref<99xf32, #tpu.memory_space<smem>>
    %259 = vector.extract_strided_slice %247 {offsets = [0, 2, 0], sizes = [1, 16, 16], strides = [1, 1, 1]} : vector<1x22x16xf32> to vector<1x16x16xf32>
    %260 = vector.broadcast %258 : f32 to vector<1x16x16xf32>
    %261 = arith.mulf %259, %260 : vector<1x16x16xf32>
    %262 = arith.addf %257, %261 : vector<1x16x16xf32>
    %c24 = arith.constant 24 : index
    %263 = memref.load %arg2[%c24] : memref<99xf32, #tpu.memory_space<smem>>
    %264 = vector.extract_strided_slice %247 {offsets = [0, 3, 0], sizes = [1, 16, 16], strides = [1, 1, 1]} : vector<1x22x16xf32> to vector<1x16x16xf32>
    %265 = vector.broadcast %263 : f32 to vector<1x16x16xf32>
    %266 = arith.mulf %264, %265 : vector<1x16x16xf32>
    %267 = arith.addf %262, %266 : vector<1x16x16xf32>
    %c31 = arith.constant 31 : index
    %268 = memref.load %arg2[%c31] : memref<99xf32, #tpu.memory_space<smem>>
    %269 = vector.extract_strided_slice %247 {offsets = [0, 4, 0], sizes = [1, 16, 16], strides = [1, 1, 1]} : vector<1x22x16xf32> to vector<1x16x16xf32>
    %270 = vector.broadcast %268 : f32 to vector<1x16x16xf32>
    %271 = arith.mulf %269, %270 : vector<1x16x16xf32>
    %272 = arith.addf %267, %271 : vector<1x16x16xf32>
    %c38 = arith.constant 38 : index
    %273 = memref.load %arg2[%c38] : memref<99xf32, #tpu.memory_space<smem>>
    %274 = vector.extract_strided_slice %247 {offsets = [0, 5, 0], sizes = [1, 16, 16], strides = [1, 1, 1]} : vector<1x22x16xf32> to vector<1x16x16xf32>
    %275 = vector.broadcast %273 : f32 to vector<1x16x16xf32>
    %276 = arith.mulf %274, %275 : vector<1x16x16xf32>
    %277 = arith.addf %272, %276 : vector<1x16x16xf32>
    %c45 = arith.constant 45 : index
    %278 = memref.load %arg2[%c45] : memref<99xf32, #tpu.memory_space<smem>>
    %279 = vector.extract_strided_slice %247 {offsets = [0, 6, 0], sizes = [1, 16, 16], strides = [1, 1, 1]} : vector<1x22x16xf32> to vector<1x16x16xf32>
    %280 = vector.broadcast %278 : f32 to vector<1x16x16xf32>
    %281 = arith.mulf %279, %280 : vector<1x16x16xf32>
    %282 = arith.addf %277, %281 : vector<1x16x16xf32>
    %c0_114 = arith.constant 0 : index
    %c0_115 = arith.constant 0 : index
    %c4_116 = arith.constant 4 : index
    %283 = vector.load %arg4[%c0_114, %c0_115, %c4_116] : memref<1x22x22xf32, #tpu.memory_space<vmem>>, vector<1x22x16xf32>
    %c4_117 = arith.constant 4 : index
    %284 = memref.load %arg2[%c4_117] : memref<99xf32, #tpu.memory_space<smem>>
    %285 = vector.extract_strided_slice %283 {offsets = [0, 0, 0], sizes = [1, 16, 16], strides = [1, 1, 1]} : vector<1x22x16xf32> to vector<1x16x16xf32>
    %286 = vector.broadcast %284 : f32 to vector<1x16x16xf32>
    %287 = arith.mulf %285, %286 : vector<1x16x16xf32>
    %288 = arith.addf %282, %287 : vector<1x16x16xf32>
    %c11_118 = arith.constant 11 : index
    %289 = memref.load %arg2[%c11_118] : memref<99xf32, #tpu.memory_space<smem>>
    %290 = vector.extract_strided_slice %283 {offsets = [0, 1, 0], sizes = [1, 16, 16], strides = [1, 1, 1]} : vector<1x22x16xf32> to vector<1x16x16xf32>
    %291 = vector.broadcast %289 : f32 to vector<1x16x16xf32>
    %292 = arith.mulf %290, %291 : vector<1x16x16xf32>
    %293 = arith.addf %288, %292 : vector<1x16x16xf32>
    %c18_119 = arith.constant 18 : index
    %294 = memref.load %arg2[%c18_119] : memref<99xf32, #tpu.memory_space<smem>>
    %295 = vector.extract_strided_slice %283 {offsets = [0, 2, 0], sizes = [1, 16, 16], strides = [1, 1, 1]} : vector<1x22x16xf32> to vector<1x16x16xf32>
    %296 = vector.broadcast %294 : f32 to vector<1x16x16xf32>
    %297 = arith.mulf %295, %296 : vector<1x16x16xf32>
    %298 = arith.addf %293, %297 : vector<1x16x16xf32>
    %c25 = arith.constant 25 : index
    %299 = memref.load %arg2[%c25] : memref<99xf32, #tpu.memory_space<smem>>
    %300 = vector.extract_strided_slice %283 {offsets = [0, 3, 0], sizes = [1, 16, 16], strides = [1, 1, 1]} : vector<1x22x16xf32> to vector<1x16x16xf32>
    %301 = vector.broadcast %299 : f32 to vector<1x16x16xf32>
    %302 = arith.mulf %300, %301 : vector<1x16x16xf32>
    %303 = arith.addf %298, %302 : vector<1x16x16xf32>
    %c32 = arith.constant 32 : index
    %304 = memref.load %arg2[%c32] : memref<99xf32, #tpu.memory_space<smem>>
    %305 = vector.extract_strided_slice %283 {offsets = [0, 4, 0], sizes = [1, 16, 16], strides = [1, 1, 1]} : vector<1x22x16xf32> to vector<1x16x16xf32>
    %306 = vector.broadcast %304 : f32 to vector<1x16x16xf32>
    %307 = arith.mulf %305, %306 : vector<1x16x16xf32>
    %308 = arith.addf %303, %307 : vector<1x16x16xf32>
    %c39 = arith.constant 39 : index
    %309 = memref.load %arg2[%c39] : memref<99xf32, #tpu.memory_space<smem>>
    %310 = vector.extract_strided_slice %283 {offsets = [0, 5, 0], sizes = [1, 16, 16], strides = [1, 1, 1]} : vector<1x22x16xf32> to vector<1x16x16xf32>
    %311 = vector.broadcast %309 : f32 to vector<1x16x16xf32>
    %312 = arith.mulf %310, %311 : vector<1x16x16xf32>
    %313 = arith.addf %308, %312 : vector<1x16x16xf32>
    %c46 = arith.constant 46 : index
    %314 = memref.load %arg2[%c46] : memref<99xf32, #tpu.memory_space<smem>>
    %315 = vector.extract_strided_slice %283 {offsets = [0, 6, 0], sizes = [1, 16, 16], strides = [1, 1, 1]} : vector<1x22x16xf32> to vector<1x16x16xf32>
    %316 = vector.broadcast %314 : f32 to vector<1x16x16xf32>
    %317 = arith.mulf %315, %316 : vector<1x16x16xf32>
    %318 = arith.addf %313, %317 : vector<1x16x16xf32>
    %c0_120 = arith.constant 0 : index
    %c0_121 = arith.constant 0 : index
    %c5_122 = arith.constant 5 : index
    %319 = vector.load %arg4[%c0_120, %c0_121, %c5_122] : memref<1x22x22xf32, #tpu.memory_space<vmem>>, vector<1x22x16xf32>
    %c5_123 = arith.constant 5 : index
    %320 = memref.load %arg2[%c5_123] : memref<99xf32, #tpu.memory_space<smem>>
    %321 = vector.extract_strided_slice %319 {offsets = [0, 0, 0], sizes = [1, 16, 16], strides = [1, 1, 1]} : vector<1x22x16xf32> to vector<1x16x16xf32>
    %322 = vector.broadcast %320 : f32 to vector<1x16x16xf32>
    %323 = arith.mulf %321, %322 : vector<1x16x16xf32>
    %324 = arith.addf %318, %323 : vector<1x16x16xf32>
    %c12_124 = arith.constant 12 : index
    %325 = memref.load %arg2[%c12_124] : memref<99xf32, #tpu.memory_space<smem>>
    %326 = vector.extract_strided_slice %319 {offsets = [0, 1, 0], sizes = [1, 16, 16], strides = [1, 1, 1]} : vector<1x22x16xf32> to vector<1x16x16xf32>
    %327 = vector.broadcast %325 : f32 to vector<1x16x16xf32>
    %328 = arith.mulf %326, %327 : vector<1x16x16xf32>
    %329 = arith.addf %324, %328 : vector<1x16x16xf32>
    %c19 = arith.constant 19 : index
    %330 = memref.load %arg2[%c19] : memref<99xf32, #tpu.memory_space<smem>>
    %331 = vector.extract_strided_slice %319 {offsets = [0, 2, 0], sizes = [1, 16, 16], strides = [1, 1, 1]} : vector<1x22x16xf32> to vector<1x16x16xf32>
    %332 = vector.broadcast %330 : f32 to vector<1x16x16xf32>
    %333 = arith.mulf %331, %332 : vector<1x16x16xf32>
    %334 = arith.addf %329, %333 : vector<1x16x16xf32>
    %c26 = arith.constant 26 : index
    %335 = memref.load %arg2[%c26] : memref<99xf32, #tpu.memory_space<smem>>
    %336 = vector.extract_strided_slice %319 {offsets = [0, 3, 0], sizes = [1, 16, 16], strides = [1, 1, 1]} : vector<1x22x16xf32> to vector<1x16x16xf32>
    %337 = vector.broadcast %335 : f32 to vector<1x16x16xf32>
    %338 = arith.mulf %336, %337 : vector<1x16x16xf32>
    %339 = arith.addf %334, %338 : vector<1x16x16xf32>
    %c33 = arith.constant 33 : index
    %340 = memref.load %arg2[%c33] : memref<99xf32, #tpu.memory_space<smem>>
    %341 = vector.extract_strided_slice %319 {offsets = [0, 4, 0], sizes = [1, 16, 16], strides = [1, 1, 1]} : vector<1x22x16xf32> to vector<1x16x16xf32>
    %342 = vector.broadcast %340 : f32 to vector<1x16x16xf32>
    %343 = arith.mulf %341, %342 : vector<1x16x16xf32>
    %344 = arith.addf %339, %343 : vector<1x16x16xf32>
    %c40 = arith.constant 40 : index
    %345 = memref.load %arg2[%c40] : memref<99xf32, #tpu.memory_space<smem>>
    %346 = vector.extract_strided_slice %319 {offsets = [0, 5, 0], sizes = [1, 16, 16], strides = [1, 1, 1]} : vector<1x22x16xf32> to vector<1x16x16xf32>
    %347 = vector.broadcast %345 : f32 to vector<1x16x16xf32>
    %348 = arith.mulf %346, %347 : vector<1x16x16xf32>
    %349 = arith.addf %344, %348 : vector<1x16x16xf32>
    %c47 = arith.constant 47 : index
    %350 = memref.load %arg2[%c47] : memref<99xf32, #tpu.memory_space<smem>>
    %351 = vector.extract_strided_slice %319 {offsets = [0, 6, 0], sizes = [1, 16, 16], strides = [1, 1, 1]} : vector<1x22x16xf32> to vector<1x16x16xf32>
    %352 = vector.broadcast %350 : f32 to vector<1x16x16xf32>
    %353 = arith.mulf %351, %352 : vector<1x16x16xf32>
    %354 = arith.addf %349, %353 : vector<1x16x16xf32>
    %c0_125 = arith.constant 0 : index
    %c0_126 = arith.constant 0 : index
    %c6_127 = arith.constant 6 : index
    %355 = vector.load %arg4[%c0_125, %c0_126, %c6_127] : memref<1x22x22xf32, #tpu.memory_space<vmem>>, vector<1x22x16xf32>
    %c6_128 = arith.constant 6 : index
    %356 = memref.load %arg2[%c6_128] : memref<99xf32, #tpu.memory_space<smem>>
    %357 = vector.extract_strided_slice %355 {offsets = [0, 0, 0], sizes = [1, 16, 16], strides = [1, 1, 1]} : vector<1x22x16xf32> to vector<1x16x16xf32>
    %358 = vector.broadcast %356 : f32 to vector<1x16x16xf32>
    %359 = arith.mulf %357, %358 : vector<1x16x16xf32>
    %360 = arith.addf %354, %359 : vector<1x16x16xf32>
    %c13_129 = arith.constant 13 : index
    %361 = memref.load %arg2[%c13_129] : memref<99xf32, #tpu.memory_space<smem>>
    %362 = vector.extract_strided_slice %355 {offsets = [0, 1, 0], sizes = [1, 16, 16], strides = [1, 1, 1]} : vector<1x22x16xf32> to vector<1x16x16xf32>
    %363 = vector.broadcast %361 : f32 to vector<1x16x16xf32>
    %364 = arith.mulf %362, %363 : vector<1x16x16xf32>
    %365 = arith.addf %360, %364 : vector<1x16x16xf32>
    %c20 = arith.constant 20 : index
    %366 = memref.load %arg2[%c20] : memref<99xf32, #tpu.memory_space<smem>>
    %367 = vector.extract_strided_slice %355 {offsets = [0, 2, 0], sizes = [1, 16, 16], strides = [1, 1, 1]} : vector<1x22x16xf32> to vector<1x16x16xf32>
    %368 = vector.broadcast %366 : f32 to vector<1x16x16xf32>
    %369 = arith.mulf %367, %368 : vector<1x16x16xf32>
    %370 = arith.addf %365, %369 : vector<1x16x16xf32>
    %c27 = arith.constant 27 : index
    %371 = memref.load %arg2[%c27] : memref<99xf32, #tpu.memory_space<smem>>
    %372 = vector.extract_strided_slice %355 {offsets = [0, 3, 0], sizes = [1, 16, 16], strides = [1, 1, 1]} : vector<1x22x16xf32> to vector<1x16x16xf32>
    %373 = vector.broadcast %371 : f32 to vector<1x16x16xf32>
    %374 = arith.mulf %372, %373 : vector<1x16x16xf32>
    %375 = arith.addf %370, %374 : vector<1x16x16xf32>
    %c34 = arith.constant 34 : index
    %376 = memref.load %arg2[%c34] : memref<99xf32, #tpu.memory_space<smem>>
    %377 = vector.extract_strided_slice %355 {offsets = [0, 4, 0], sizes = [1, 16, 16], strides = [1, 1, 1]} : vector<1x22x16xf32> to vector<1x16x16xf32>
    %378 = vector.broadcast %376 : f32 to vector<1x16x16xf32>
    %379 = arith.mulf %377, %378 : vector<1x16x16xf32>
    %380 = arith.addf %375, %379 : vector<1x16x16xf32>
    %c41 = arith.constant 41 : index
    %381 = memref.load %arg2[%c41] : memref<99xf32, #tpu.memory_space<smem>>
    %382 = vector.extract_strided_slice %355 {offsets = [0, 5, 0], sizes = [1, 16, 16], strides = [1, 1, 1]} : vector<1x22x16xf32> to vector<1x16x16xf32>
    %383 = vector.broadcast %381 : f32 to vector<1x16x16xf32>
    %384 = arith.mulf %382, %383 : vector<1x16x16xf32>
    %385 = arith.addf %380, %384 : vector<1x16x16xf32>
    %c48 = arith.constant 48 : index
    %386 = memref.load %arg2[%c48] : memref<99xf32, #tpu.memory_space<smem>>
    %387 = vector.extract_strided_slice %355 {offsets = [0, 6, 0], sizes = [1, 16, 16], strides = [1, 1, 1]} : vector<1x22x16xf32> to vector<1x16x16xf32>
    %388 = vector.broadcast %386 : f32 to vector<1x16x16xf32>
    %389 = arith.mulf %387, %388 : vector<1x16x16xf32>
    %390 = arith.addf %385, %389 : vector<1x16x16xf32>
    %c0_130 = arith.constant 0 : index
    %c0_131 = arith.constant 0 : index
    %c0_132 = arith.constant 0 : index
    %391 = vector.load %arg5[%c0_130, %c0_131, %c0_132] : memref<1x22x22xf32, #tpu.memory_space<vmem>>, vector<1x22x16xf32>
    %c49 = arith.constant 49 : index
    %392 = memref.load %arg2[%c49] : memref<99xf32, #tpu.memory_space<smem>>
    %393 = vector.extract_strided_slice %391 {offsets = [0, 0, 0], sizes = [1, 16, 16], strides = [1, 1, 1]} : vector<1x22x16xf32> to vector<1x16x16xf32>
    %394 = vector.broadcast %392 : f32 to vector<1x16x16xf32>
    %395 = arith.mulf %393, %394 : vector<1x16x16xf32>
    %396 = arith.addf %390, %395 : vector<1x16x16xf32>
    %c56 = arith.constant 56 : index
    %397 = memref.load %arg2[%c56] : memref<99xf32, #tpu.memory_space<smem>>
    %398 = vector.extract_strided_slice %391 {offsets = [0, 1, 0], sizes = [1, 16, 16], strides = [1, 1, 1]} : vector<1x22x16xf32> to vector<1x16x16xf32>
    %399 = vector.broadcast %397 : f32 to vector<1x16x16xf32>
    %400 = arith.mulf %398, %399 : vector<1x16x16xf32>
    %401 = arith.addf %396, %400 : vector<1x16x16xf32>
    %c63 = arith.constant 63 : index
    %402 = memref.load %arg2[%c63] : memref<99xf32, #tpu.memory_space<smem>>
    %403 = vector.extract_strided_slice %391 {offsets = [0, 2, 0], sizes = [1, 16, 16], strides = [1, 1, 1]} : vector<1x22x16xf32> to vector<1x16x16xf32>
    %404 = vector.broadcast %402 : f32 to vector<1x16x16xf32>
    %405 = arith.mulf %403, %404 : vector<1x16x16xf32>
    %406 = arith.addf %401, %405 : vector<1x16x16xf32>
    %c70 = arith.constant 70 : index
    %407 = memref.load %arg2[%c70] : memref<99xf32, #tpu.memory_space<smem>>
    %408 = vector.extract_strided_slice %391 {offsets = [0, 3, 0], sizes = [1, 16, 16], strides = [1, 1, 1]} : vector<1x22x16xf32> to vector<1x16x16xf32>
    %409 = vector.broadcast %407 : f32 to vector<1x16x16xf32>
    %410 = arith.mulf %408, %409 : vector<1x16x16xf32>
    %411 = arith.addf %406, %410 : vector<1x16x16xf32>
    %c77 = arith.constant 77 : index
    %412 = memref.load %arg2[%c77] : memref<99xf32, #tpu.memory_space<smem>>
    %413 = vector.extract_strided_slice %391 {offsets = [0, 4, 0], sizes = [1, 16, 16], strides = [1, 1, 1]} : vector<1x22x16xf32> to vector<1x16x16xf32>
    %414 = vector.broadcast %412 : f32 to vector<1x16x16xf32>
    %415 = arith.mulf %413, %414 : vector<1x16x16xf32>
    %416 = arith.addf %411, %415 : vector<1x16x16xf32>
    %c84 = arith.constant 84 : index
    %417 = memref.load %arg2[%c84] : memref<99xf32, #tpu.memory_space<smem>>
    %418 = vector.extract_strided_slice %391 {offsets = [0, 5, 0], sizes = [1, 16, 16], strides = [1, 1, 1]} : vector<1x22x16xf32> to vector<1x16x16xf32>
    %419 = vector.broadcast %417 : f32 to vector<1x16x16xf32>
    %420 = arith.mulf %418, %419 : vector<1x16x16xf32>
    %421 = arith.addf %416, %420 : vector<1x16x16xf32>
    %c91 = arith.constant 91 : index
    %422 = memref.load %arg2[%c91] : memref<99xf32, #tpu.memory_space<smem>>
    %423 = vector.extract_strided_slice %391 {offsets = [0, 6, 0], sizes = [1, 16, 16], strides = [1, 1, 1]} : vector<1x22x16xf32> to vector<1x16x16xf32>
    %424 = vector.broadcast %422 : f32 to vector<1x16x16xf32>
    %425 = arith.mulf %423, %424 : vector<1x16x16xf32>
    %426 = arith.addf %421, %425 : vector<1x16x16xf32>
    %c0_133 = arith.constant 0 : index
    %c0_134 = arith.constant 0 : index
    %c1_135 = arith.constant 1 : index
    %427 = vector.load %arg5[%c0_133, %c0_134, %c1_135] : memref<1x22x22xf32, #tpu.memory_space<vmem>>, vector<1x22x16xf32>
    %c50 = arith.constant 50 : index
    %428 = memref.load %arg2[%c50] : memref<99xf32, #tpu.memory_space<smem>>
    %429 = vector.extract_strided_slice %427 {offsets = [0, 0, 0], sizes = [1, 16, 16], strides = [1, 1, 1]} : vector<1x22x16xf32> to vector<1x16x16xf32>
    %430 = vector.broadcast %428 : f32 to vector<1x16x16xf32>
    %431 = arith.mulf %429, %430 : vector<1x16x16xf32>
    %432 = arith.addf %426, %431 : vector<1x16x16xf32>
    %c57 = arith.constant 57 : index
    %433 = memref.load %arg2[%c57] : memref<99xf32, #tpu.memory_space<smem>>
    %434 = vector.extract_strided_slice %427 {offsets = [0, 1, 0], sizes = [1, 16, 16], strides = [1, 1, 1]} : vector<1x22x16xf32> to vector<1x16x16xf32>
    %435 = vector.broadcast %433 : f32 to vector<1x16x16xf32>
    %436 = arith.mulf %434, %435 : vector<1x16x16xf32>
    %437 = arith.addf %432, %436 : vector<1x16x16xf32>
    %c64 = arith.constant 64 : index
    %438 = memref.load %arg2[%c64] : memref<99xf32, #tpu.memory_space<smem>>
    %439 = vector.extract_strided_slice %427 {offsets = [0, 2, 0], sizes = [1, 16, 16], strides = [1, 1, 1]} : vector<1x22x16xf32> to vector<1x16x16xf32>
    %440 = vector.broadcast %438 : f32 to vector<1x16x16xf32>
    %441 = arith.mulf %439, %440 : vector<1x16x16xf32>
    %442 = arith.addf %437, %441 : vector<1x16x16xf32>
    %c71 = arith.constant 71 : index
    %443 = memref.load %arg2[%c71] : memref<99xf32, #tpu.memory_space<smem>>
    %444 = vector.extract_strided_slice %427 {offsets = [0, 3, 0], sizes = [1, 16, 16], strides = [1, 1, 1]} : vector<1x22x16xf32> to vector<1x16x16xf32>
    %445 = vector.broadcast %443 : f32 to vector<1x16x16xf32>
    %446 = arith.mulf %444, %445 : vector<1x16x16xf32>
    %447 = arith.addf %442, %446 : vector<1x16x16xf32>
    %c78 = arith.constant 78 : index
    %448 = memref.load %arg2[%c78] : memref<99xf32, #tpu.memory_space<smem>>
    %449 = vector.extract_strided_slice %427 {offsets = [0, 4, 0], sizes = [1, 16, 16], strides = [1, 1, 1]} : vector<1x22x16xf32> to vector<1x16x16xf32>
    %450 = vector.broadcast %448 : f32 to vector<1x16x16xf32>
    %451 = arith.mulf %449, %450 : vector<1x16x16xf32>
    %452 = arith.addf %447, %451 : vector<1x16x16xf32>
    %c85 = arith.constant 85 : index
    %453 = memref.load %arg2[%c85] : memref<99xf32, #tpu.memory_space<smem>>
    %454 = vector.extract_strided_slice %427 {offsets = [0, 5, 0], sizes = [1, 16, 16], strides = [1, 1, 1]} : vector<1x22x16xf32> to vector<1x16x16xf32>
    %455 = vector.broadcast %453 : f32 to vector<1x16x16xf32>
    %456 = arith.mulf %454, %455 : vector<1x16x16xf32>
    %457 = arith.addf %452, %456 : vector<1x16x16xf32>
    %c92 = arith.constant 92 : index
    %458 = memref.load %arg2[%c92] : memref<99xf32, #tpu.memory_space<smem>>
    %459 = vector.extract_strided_slice %427 {offsets = [0, 6, 0], sizes = [1, 16, 16], strides = [1, 1, 1]} : vector<1x22x16xf32> to vector<1x16x16xf32>
    %460 = vector.broadcast %458 : f32 to vector<1x16x16xf32>
    %461 = arith.mulf %459, %460 : vector<1x16x16xf32>
    %462 = arith.addf %457, %461 : vector<1x16x16xf32>
    %c0_136 = arith.constant 0 : index
    %c0_137 = arith.constant 0 : index
    %c2_138 = arith.constant 2 : index
    %463 = vector.load %arg5[%c0_136, %c0_137, %c2_138] : memref<1x22x22xf32, #tpu.memory_space<vmem>>, vector<1x22x16xf32>
    %c51 = arith.constant 51 : index
    %464 = memref.load %arg2[%c51] : memref<99xf32, #tpu.memory_space<smem>>
    %465 = vector.extract_strided_slice %463 {offsets = [0, 0, 0], sizes = [1, 16, 16], strides = [1, 1, 1]} : vector<1x22x16xf32> to vector<1x16x16xf32>
    %466 = vector.broadcast %464 : f32 to vector<1x16x16xf32>
    %467 = arith.mulf %465, %466 : vector<1x16x16xf32>
    %468 = arith.addf %462, %467 : vector<1x16x16xf32>
    %c58 = arith.constant 58 : index
    %469 = memref.load %arg2[%c58] : memref<99xf32, #tpu.memory_space<smem>>
    %470 = vector.extract_strided_slice %463 {offsets = [0, 1, 0], sizes = [1, 16, 16], strides = [1, 1, 1]} : vector<1x22x16xf32> to vector<1x16x16xf32>
    %471 = vector.broadcast %469 : f32 to vector<1x16x16xf32>
    %472 = arith.mulf %470, %471 : vector<1x16x16xf32>
    %473 = arith.addf %468, %472 : vector<1x16x16xf32>
    %c65 = arith.constant 65 : index
    %474 = memref.load %arg2[%c65] : memref<99xf32, #tpu.memory_space<smem>>
    %475 = vector.extract_strided_slice %463 {offsets = [0, 2, 0], sizes = [1, 16, 16], strides = [1, 1, 1]} : vector<1x22x16xf32> to vector<1x16x16xf32>
    %476 = vector.broadcast %474 : f32 to vector<1x16x16xf32>
    %477 = arith.mulf %475, %476 : vector<1x16x16xf32>
    %478 = arith.addf %473, %477 : vector<1x16x16xf32>
    %c72 = arith.constant 72 : index
    %479 = memref.load %arg2[%c72] : memref<99xf32, #tpu.memory_space<smem>>
    %480 = vector.extract_strided_slice %463 {offsets = [0, 3, 0], sizes = [1, 16, 16], strides = [1, 1, 1]} : vector<1x22x16xf32> to vector<1x16x16xf32>
    %481 = vector.broadcast %479 : f32 to vector<1x16x16xf32>
    %482 = arith.mulf %480, %481 : vector<1x16x16xf32>
    %483 = arith.addf %478, %482 : vector<1x16x16xf32>
    %c79 = arith.constant 79 : index
    %484 = memref.load %arg2[%c79] : memref<99xf32, #tpu.memory_space<smem>>
    %485 = vector.extract_strided_slice %463 {offsets = [0, 4, 0], sizes = [1, 16, 16], strides = [1, 1, 1]} : vector<1x22x16xf32> to vector<1x16x16xf32>
    %486 = vector.broadcast %484 : f32 to vector<1x16x16xf32>
    %487 = arith.mulf %485, %486 : vector<1x16x16xf32>
    %488 = arith.addf %483, %487 : vector<1x16x16xf32>
    %c86 = arith.constant 86 : index
    %489 = memref.load %arg2[%c86] : memref<99xf32, #tpu.memory_space<smem>>
    %490 = vector.extract_strided_slice %463 {offsets = [0, 5, 0], sizes = [1, 16, 16], strides = [1, 1, 1]} : vector<1x22x16xf32> to vector<1x16x16xf32>
    %491 = vector.broadcast %489 : f32 to vector<1x16x16xf32>
    %492 = arith.mulf %490, %491 : vector<1x16x16xf32>
    %493 = arith.addf %488, %492 : vector<1x16x16xf32>
    %c93 = arith.constant 93 : index
    %494 = memref.load %arg2[%c93] : memref<99xf32, #tpu.memory_space<smem>>
    %495 = vector.extract_strided_slice %463 {offsets = [0, 6, 0], sizes = [1, 16, 16], strides = [1, 1, 1]} : vector<1x22x16xf32> to vector<1x16x16xf32>
    %496 = vector.broadcast %494 : f32 to vector<1x16x16xf32>
    %497 = arith.mulf %495, %496 : vector<1x16x16xf32>
    %498 = arith.addf %493, %497 : vector<1x16x16xf32>
    %c0_139 = arith.constant 0 : index
    %c0_140 = arith.constant 0 : index
    %c3_141 = arith.constant 3 : index
    %499 = vector.load %arg5[%c0_139, %c0_140, %c3_141] : memref<1x22x22xf32, #tpu.memory_space<vmem>>, vector<1x22x16xf32>
    %c52 = arith.constant 52 : index
    %500 = memref.load %arg2[%c52] : memref<99xf32, #tpu.memory_space<smem>>
    %501 = vector.extract_strided_slice %499 {offsets = [0, 0, 0], sizes = [1, 16, 16], strides = [1, 1, 1]} : vector<1x22x16xf32> to vector<1x16x16xf32>
    %502 = vector.broadcast %500 : f32 to vector<1x16x16xf32>
    %503 = arith.mulf %501, %502 : vector<1x16x16xf32>
    %504 = arith.addf %498, %503 : vector<1x16x16xf32>
    %c59 = arith.constant 59 : index
    %505 = memref.load %arg2[%c59] : memref<99xf32, #tpu.memory_space<smem>>
    %506 = vector.extract_strided_slice %499 {offsets = [0, 1, 0], sizes = [1, 16, 16], strides = [1, 1, 1]} : vector<1x22x16xf32> to vector<1x16x16xf32>
    %507 = vector.broadcast %505 : f32 to vector<1x16x16xf32>
    %508 = arith.mulf %506, %507 : vector<1x16x16xf32>
    %509 = arith.addf %504, %508 : vector<1x16x16xf32>
    %c66 = arith.constant 66 : index
    %510 = memref.load %arg2[%c66] : memref<99xf32, #tpu.memory_space<smem>>
    %511 = vector.extract_strided_slice %499 {offsets = [0, 2, 0], sizes = [1, 16, 16], strides = [1, 1, 1]} : vector<1x22x16xf32> to vector<1x16x16xf32>
    %512 = vector.broadcast %510 : f32 to vector<1x16x16xf32>
    %513 = arith.mulf %511, %512 : vector<1x16x16xf32>
    %514 = arith.addf %509, %513 : vector<1x16x16xf32>
    %c73 = arith.constant 73 : index
    %515 = memref.load %arg2[%c73] : memref<99xf32, #tpu.memory_space<smem>>
    %516 = vector.extract_strided_slice %499 {offsets = [0, 3, 0], sizes = [1, 16, 16], strides = [1, 1, 1]} : vector<1x22x16xf32> to vector<1x16x16xf32>
    %517 = vector.broadcast %515 : f32 to vector<1x16x16xf32>
    %518 = arith.mulf %516, %517 : vector<1x16x16xf32>
    %519 = arith.addf %514, %518 : vector<1x16x16xf32>
    %c80 = arith.constant 80 : index
    %520 = memref.load %arg2[%c80] : memref<99xf32, #tpu.memory_space<smem>>
    %521 = vector.extract_strided_slice %499 {offsets = [0, 4, 0], sizes = [1, 16, 16], strides = [1, 1, 1]} : vector<1x22x16xf32> to vector<1x16x16xf32>
    %522 = vector.broadcast %520 : f32 to vector<1x16x16xf32>
    %523 = arith.mulf %521, %522 : vector<1x16x16xf32>
    %524 = arith.addf %519, %523 : vector<1x16x16xf32>
    %c87 = arith.constant 87 : index
    %525 = memref.load %arg2[%c87] : memref<99xf32, #tpu.memory_space<smem>>
    %526 = vector.extract_strided_slice %499 {offsets = [0, 5, 0], sizes = [1, 16, 16], strides = [1, 1, 1]} : vector<1x22x16xf32> to vector<1x16x16xf32>
    %527 = vector.broadcast %525 : f32 to vector<1x16x16xf32>
    %528 = arith.mulf %526, %527 : vector<1x16x16xf32>
    %529 = arith.addf %524, %528 : vector<1x16x16xf32>
    %c94 = arith.constant 94 : index
    %530 = memref.load %arg2[%c94] : memref<99xf32, #tpu.memory_space<smem>>
    %531 = vector.extract_strided_slice %499 {offsets = [0, 6, 0], sizes = [1, 16, 16], strides = [1, 1, 1]} : vector<1x22x16xf32> to vector<1x16x16xf32>
    %532 = vector.broadcast %530 : f32 to vector<1x16x16xf32>
    %533 = arith.mulf %531, %532 : vector<1x16x16xf32>
    %534 = arith.addf %529, %533 : vector<1x16x16xf32>
    %c0_142 = arith.constant 0 : index
    %c0_143 = arith.constant 0 : index
    %c4_144 = arith.constant 4 : index
    %535 = vector.load %arg5[%c0_142, %c0_143, %c4_144] : memref<1x22x22xf32, #tpu.memory_space<vmem>>, vector<1x22x16xf32>
    %c53 = arith.constant 53 : index
    %536 = memref.load %arg2[%c53] : memref<99xf32, #tpu.memory_space<smem>>
    %537 = vector.extract_strided_slice %535 {offsets = [0, 0, 0], sizes = [1, 16, 16], strides = [1, 1, 1]} : vector<1x22x16xf32> to vector<1x16x16xf32>
    %538 = vector.broadcast %536 : f32 to vector<1x16x16xf32>
    %539 = arith.mulf %537, %538 : vector<1x16x16xf32>
    %540 = arith.addf %534, %539 : vector<1x16x16xf32>
    %c60 = arith.constant 60 : index
    %541 = memref.load %arg2[%c60] : memref<99xf32, #tpu.memory_space<smem>>
    %542 = vector.extract_strided_slice %535 {offsets = [0, 1, 0], sizes = [1, 16, 16], strides = [1, 1, 1]} : vector<1x22x16xf32> to vector<1x16x16xf32>
    %543 = vector.broadcast %541 : f32 to vector<1x16x16xf32>
    %544 = arith.mulf %542, %543 : vector<1x16x16xf32>
    %545 = arith.addf %540, %544 : vector<1x16x16xf32>
    %c67 = arith.constant 67 : index
    %546 = memref.load %arg2[%c67] : memref<99xf32, #tpu.memory_space<smem>>
    %547 = vector.extract_strided_slice %535 {offsets = [0, 2, 0], sizes = [1, 16, 16], strides = [1, 1, 1]} : vector<1x22x16xf32> to vector<1x16x16xf32>
    %548 = vector.broadcast %546 : f32 to vector<1x16x16xf32>
    %549 = arith.mulf %547, %548 : vector<1x16x16xf32>
    %550 = arith.addf %545, %549 : vector<1x16x16xf32>
    %c74 = arith.constant 74 : index
    %551 = memref.load %arg2[%c74] : memref<99xf32, #tpu.memory_space<smem>>
    %552 = vector.extract_strided_slice %535 {offsets = [0, 3, 0], sizes = [1, 16, 16], strides = [1, 1, 1]} : vector<1x22x16xf32> to vector<1x16x16xf32>
    %553 = vector.broadcast %551 : f32 to vector<1x16x16xf32>
    %554 = arith.mulf %552, %553 : vector<1x16x16xf32>
    %555 = arith.addf %550, %554 : vector<1x16x16xf32>
    %c81 = arith.constant 81 : index
    %556 = memref.load %arg2[%c81] : memref<99xf32, #tpu.memory_space<smem>>
    %557 = vector.extract_strided_slice %535 {offsets = [0, 4, 0], sizes = [1, 16, 16], strides = [1, 1, 1]} : vector<1x22x16xf32> to vector<1x16x16xf32>
    %558 = vector.broadcast %556 : f32 to vector<1x16x16xf32>
    %559 = arith.mulf %557, %558 : vector<1x16x16xf32>
    %560 = arith.addf %555, %559 : vector<1x16x16xf32>
    %c88 = arith.constant 88 : index
    %561 = memref.load %arg2[%c88] : memref<99xf32, #tpu.memory_space<smem>>
    %562 = vector.extract_strided_slice %535 {offsets = [0, 5, 0], sizes = [1, 16, 16], strides = [1, 1, 1]} : vector<1x22x16xf32> to vector<1x16x16xf32>
    %563 = vector.broadcast %561 : f32 to vector<1x16x16xf32>
    %564 = arith.mulf %562, %563 : vector<1x16x16xf32>
    %565 = arith.addf %560, %564 : vector<1x16x16xf32>
    %c95 = arith.constant 95 : index
    %566 = memref.load %arg2[%c95] : memref<99xf32, #tpu.memory_space<smem>>
    %567 = vector.extract_strided_slice %535 {offsets = [0, 6, 0], sizes = [1, 16, 16], strides = [1, 1, 1]} : vector<1x22x16xf32> to vector<1x16x16xf32>
    %568 = vector.broadcast %566 : f32 to vector<1x16x16xf32>
    %569 = arith.mulf %567, %568 : vector<1x16x16xf32>
    %570 = arith.addf %565, %569 : vector<1x16x16xf32>
    %c0_145 = arith.constant 0 : index
    %c0_146 = arith.constant 0 : index
    %c5_147 = arith.constant 5 : index
    %571 = vector.load %arg5[%c0_145, %c0_146, %c5_147] : memref<1x22x22xf32, #tpu.memory_space<vmem>>, vector<1x22x16xf32>
    %c54 = arith.constant 54 : index
    %572 = memref.load %arg2[%c54] : memref<99xf32, #tpu.memory_space<smem>>
    %573 = vector.extract_strided_slice %571 {offsets = [0, 0, 0], sizes = [1, 16, 16], strides = [1, 1, 1]} : vector<1x22x16xf32> to vector<1x16x16xf32>
    %574 = vector.broadcast %572 : f32 to vector<1x16x16xf32>
    %575 = arith.mulf %573, %574 : vector<1x16x16xf32>
    %576 = arith.addf %570, %575 : vector<1x16x16xf32>
    %c61 = arith.constant 61 : index
    %577 = memref.load %arg2[%c61] : memref<99xf32, #tpu.memory_space<smem>>
    %578 = vector.extract_strided_slice %571 {offsets = [0, 1, 0], sizes = [1, 16, 16], strides = [1, 1, 1]} : vector<1x22x16xf32> to vector<1x16x16xf32>
    %579 = vector.broadcast %577 : f32 to vector<1x16x16xf32>
    %580 = arith.mulf %578, %579 : vector<1x16x16xf32>
    %581 = arith.addf %576, %580 : vector<1x16x16xf32>
    %c68 = arith.constant 68 : index
    %582 = memref.load %arg2[%c68] : memref<99xf32, #tpu.memory_space<smem>>
    %583 = vector.extract_strided_slice %571 {offsets = [0, 2, 0], sizes = [1, 16, 16], strides = [1, 1, 1]} : vector<1x22x16xf32> to vector<1x16x16xf32>
    %584 = vector.broadcast %582 : f32 to vector<1x16x16xf32>
    %585 = arith.mulf %583, %584 : vector<1x16x16xf32>
    %586 = arith.addf %581, %585 : vector<1x16x16xf32>
    %c75 = arith.constant 75 : index
    %587 = memref.load %arg2[%c75] : memref<99xf32, #tpu.memory_space<smem>>
    %588 = vector.extract_strided_slice %571 {offsets = [0, 3, 0], sizes = [1, 16, 16], strides = [1, 1, 1]} : vector<1x22x16xf32> to vector<1x16x16xf32>
    %589 = vector.broadcast %587 : f32 to vector<1x16x16xf32>
    %590 = arith.mulf %588, %589 : vector<1x16x16xf32>
    %591 = arith.addf %586, %590 : vector<1x16x16xf32>
    %c82 = arith.constant 82 : index
    %592 = memref.load %arg2[%c82] : memref<99xf32, #tpu.memory_space<smem>>
    %593 = vector.extract_strided_slice %571 {offsets = [0, 4, 0], sizes = [1, 16, 16], strides = [1, 1, 1]} : vector<1x22x16xf32> to vector<1x16x16xf32>
    %594 = vector.broadcast %592 : f32 to vector<1x16x16xf32>
    %595 = arith.mulf %593, %594 : vector<1x16x16xf32>
    %596 = arith.addf %591, %595 : vector<1x16x16xf32>
    %c89 = arith.constant 89 : index
    %597 = memref.load %arg2[%c89] : memref<99xf32, #tpu.memory_space<smem>>
    %598 = vector.extract_strided_slice %571 {offsets = [0, 5, 0], sizes = [1, 16, 16], strides = [1, 1, 1]} : vector<1x22x16xf32> to vector<1x16x16xf32>
    %599 = vector.broadcast %597 : f32 to vector<1x16x16xf32>
    %600 = arith.mulf %598, %599 : vector<1x16x16xf32>
    %601 = arith.addf %596, %600 : vector<1x16x16xf32>
    %c96 = arith.constant 96 : index
    %602 = memref.load %arg2[%c96] : memref<99xf32, #tpu.memory_space<smem>>
    %603 = vector.extract_strided_slice %571 {offsets = [0, 6, 0], sizes = [1, 16, 16], strides = [1, 1, 1]} : vector<1x22x16xf32> to vector<1x16x16xf32>
    %604 = vector.broadcast %602 : f32 to vector<1x16x16xf32>
    %605 = arith.mulf %603, %604 : vector<1x16x16xf32>
    %606 = arith.addf %601, %605 : vector<1x16x16xf32>
    %c0_148 = arith.constant 0 : index
    %c0_149 = arith.constant 0 : index
    %c6_150 = arith.constant 6 : index
    %607 = vector.load %arg5[%c0_148, %c0_149, %c6_150] : memref<1x22x22xf32, #tpu.memory_space<vmem>>, vector<1x22x16xf32>
    %c55 = arith.constant 55 : index
    %608 = memref.load %arg2[%c55] : memref<99xf32, #tpu.memory_space<smem>>
    %609 = vector.extract_strided_slice %607 {offsets = [0, 0, 0], sizes = [1, 16, 16], strides = [1, 1, 1]} : vector<1x22x16xf32> to vector<1x16x16xf32>
    %610 = vector.broadcast %608 : f32 to vector<1x16x16xf32>
    %611 = arith.mulf %609, %610 : vector<1x16x16xf32>
    %612 = arith.addf %606, %611 : vector<1x16x16xf32>
    %c62 = arith.constant 62 : index
    %613 = memref.load %arg2[%c62] : memref<99xf32, #tpu.memory_space<smem>>
    %614 = vector.extract_strided_slice %607 {offsets = [0, 1, 0], sizes = [1, 16, 16], strides = [1, 1, 1]} : vector<1x22x16xf32> to vector<1x16x16xf32>
    %615 = vector.broadcast %613 : f32 to vector<1x16x16xf32>
    %616 = arith.mulf %614, %615 : vector<1x16x16xf32>
    %617 = arith.addf %612, %616 : vector<1x16x16xf32>
    %c69 = arith.constant 69 : index
    %618 = memref.load %arg2[%c69] : memref<99xf32, #tpu.memory_space<smem>>
    %619 = vector.extract_strided_slice %607 {offsets = [0, 2, 0], sizes = [1, 16, 16], strides = [1, 1, 1]} : vector<1x22x16xf32> to vector<1x16x16xf32>
    %620 = vector.broadcast %618 : f32 to vector<1x16x16xf32>
    %621 = arith.mulf %619, %620 : vector<1x16x16xf32>
    %622 = arith.addf %617, %621 : vector<1x16x16xf32>
    %c76 = arith.constant 76 : index
    %623 = memref.load %arg2[%c76] : memref<99xf32, #tpu.memory_space<smem>>
    %624 = vector.extract_strided_slice %607 {offsets = [0, 3, 0], sizes = [1, 16, 16], strides = [1, 1, 1]} : vector<1x22x16xf32> to vector<1x16x16xf32>
    %625 = vector.broadcast %623 : f32 to vector<1x16x16xf32>
    %626 = arith.mulf %624, %625 : vector<1x16x16xf32>
    %627 = arith.addf %622, %626 : vector<1x16x16xf32>
    %c83 = arith.constant 83 : index
    %628 = memref.load %arg2[%c83] : memref<99xf32, #tpu.memory_space<smem>>
    %629 = vector.extract_strided_slice %607 {offsets = [0, 4, 0], sizes = [1, 16, 16], strides = [1, 1, 1]} : vector<1x22x16xf32> to vector<1x16x16xf32>
    %630 = vector.broadcast %628 : f32 to vector<1x16x16xf32>
    %631 = arith.mulf %629, %630 : vector<1x16x16xf32>
    %632 = arith.addf %627, %631 : vector<1x16x16xf32>
    %c90 = arith.constant 90 : index
    %633 = memref.load %arg2[%c90] : memref<99xf32, #tpu.memory_space<smem>>
    %634 = vector.extract_strided_slice %607 {offsets = [0, 5, 0], sizes = [1, 16, 16], strides = [1, 1, 1]} : vector<1x22x16xf32> to vector<1x16x16xf32>
    %635 = vector.broadcast %633 : f32 to vector<1x16x16xf32>
    %636 = arith.mulf %634, %635 : vector<1x16x16xf32>
    %637 = arith.addf %632, %636 : vector<1x16x16xf32>
    %c97 = arith.constant 97 : index
    %638 = memref.load %arg2[%c97] : memref<99xf32, #tpu.memory_space<smem>>
    %639 = vector.extract_strided_slice %607 {offsets = [0, 6, 0], sizes = [1, 16, 16], strides = [1, 1, 1]} : vector<1x22x16xf32> to vector<1x16x16xf32>
    %640 = vector.broadcast %638 : f32 to vector<1x16x16xf32>
    %641 = arith.mulf %639, %640 : vector<1x16x16xf32>
    %642 = arith.addf %637, %641 : vector<1x16x16xf32>
    %643 = arith.negf %642 : vector<1x16x16xf32>
    %644 = math.exp %643 : vector<1x16x16xf32>
    %cst_151 = arith.constant 1.000000e+00 : f32
    %645 = vector.broadcast %cst_151 : f32 to vector<1x16x16xf32>
    %646 = arith.addf %645, %644 : vector<1x16x16xf32>
    %647 = arith.divf %645, %646 : vector<1x16x16xf32>
    %648 = vector.extract_strided_slice %647 {offsets = [0, 0, 0], sizes = [1, 1, 16], strides = [1, 1, 1]} : vector<1x16x16xf32> to vector<1x1x16xf32>
    %649 = vector.shape_cast %648 : vector<1x1x16xf32> to vector<1x16xf32>
    %c0_152 = arith.constant 0 : index
    %c0_153 = arith.constant 0 : index
    %c0_154 = arith.constant 0 : index
    %650 = vector.load %arg6[%c0_152, %c0_153, %c0_154] : memref<1x1x256xf32, #tpu.memory_space<vmem>>, vector<1x1x16xf32>
    %651 = vector.shape_cast %650 : vector<1x1x16xf32> to vector<1x16xf32>
    %652 = vector.shape_cast %649 : vector<1x16xf32> to vector<1x1x16xf32>
    tpu.vector_store %arg6[%c0_152, %c0_153, %c0_154], %652 {strides = array<i32>} : memref<1x1x256xf32, #tpu.memory_space<vmem>>, vector<1x1x16xf32>,
    %653 = vector.extract_strided_slice %647 {offsets = [0, 1, 0], sizes = [1, 1, 16], strides = [1, 1, 1]} : vector<1x16x16xf32> to vector<1x1x16xf32>
    %654 = vector.shape_cast %653 : vector<1x1x16xf32> to vector<1x16xf32>
    %c0_155 = arith.constant 0 : index
    %c0_156 = arith.constant 0 : index
    %c16_157 = arith.constant 16 : index
    %655 = vector.load %arg6[%c0_155, %c0_156, %c16_157] : memref<1x1x256xf32, #tpu.memory_space<vmem>>, vector<1x1x16xf32>
    %656 = vector.shape_cast %655 : vector<1x1x16xf32> to vector<1x16xf32>
    %657 = vector.shape_cast %654 : vector<1x16xf32> to vector<1x1x16xf32>
    tpu.vector_store %arg6[%c0_155, %c0_156, %c16_157], %657 {strides = array<i32>} : memref<1x1x256xf32, #tpu.memory_space<vmem>>, vector<1x1x16xf32>,
    %658 = vector.extract_strided_slice %647 {offsets = [0, 2, 0], sizes = [1, 1, 16], strides = [1, 1, 1]} : vector<1x16x16xf32> to vector<1x1x16xf32>
    %659 = vector.shape_cast %658 : vector<1x1x16xf32> to vector<1x16xf32>
    %c0_158 = arith.constant 0 : index
    %c0_159 = arith.constant 0 : index
    %c32_160 = arith.constant 32 : index
    %660 = vector.load %arg6[%c0_158, %c0_159, %c32_160] : memref<1x1x256xf32, #tpu.memory_space<vmem>>, vector<1x1x16xf32>
    %661 = vector.shape_cast %660 : vector<1x1x16xf32> to vector<1x16xf32>
    %662 = vector.shape_cast %659 : vector<1x16xf32> to vector<1x1x16xf32>
    tpu.vector_store %arg6[%c0_158, %c0_159, %c32_160], %662 {strides = array<i32>} : memref<1x1x256xf32, #tpu.memory_space<vmem>>, vector<1x1x16xf32>,
    %663 = vector.extract_strided_slice %647 {offsets = [0, 3, 0], sizes = [1, 1, 16], strides = [1, 1, 1]} : vector<1x16x16xf32> to vector<1x1x16xf32>
    %664 = vector.shape_cast %663 : vector<1x1x16xf32> to vector<1x16xf32>
    %c0_161 = arith.constant 0 : index
    %c0_162 = arith.constant 0 : index
    %c48_163 = arith.constant 48 : index
    %665 = vector.load %arg6[%c0_161, %c0_162, %c48_163] : memref<1x1x256xf32, #tpu.memory_space<vmem>>, vector<1x1x16xf32>
    %666 = vector.shape_cast %665 : vector<1x1x16xf32> to vector<1x16xf32>
    %667 = vector.shape_cast %664 : vector<1x16xf32> to vector<1x1x16xf32>
    tpu.vector_store %arg6[%c0_161, %c0_162, %c48_163], %667 {strides = array<i32>} : memref<1x1x256xf32, #tpu.memory_space<vmem>>, vector<1x1x16xf32>,
    %668 = vector.extract_strided_slice %647 {offsets = [0, 4, 0], sizes = [1, 1, 16], strides = [1, 1, 1]} : vector<1x16x16xf32> to vector<1x1x16xf32>
    %669 = vector.shape_cast %668 : vector<1x1x16xf32> to vector<1x16xf32>
    %c0_164 = arith.constant 0 : index
    %c0_165 = arith.constant 0 : index
    %c64_166 = arith.constant 64 : index
    %670 = vector.load %arg6[%c0_164, %c0_165, %c64_166] : memref<1x1x256xf32, #tpu.memory_space<vmem>>, vector<1x1x16xf32>
    %671 = vector.shape_cast %670 : vector<1x1x16xf32> to vector<1x16xf32>
    %672 = vector.shape_cast %669 : vector<1x16xf32> to vector<1x1x16xf32>
    tpu.vector_store %arg6[%c0_164, %c0_165, %c64_166], %672 {strides = array<i32>} : memref<1x1x256xf32, #tpu.memory_space<vmem>>, vector<1x1x16xf32>,
    %673 = vector.extract_strided_slice %647 {offsets = [0, 5, 0], sizes = [1, 1, 16], strides = [1, 1, 1]} : vector<1x16x16xf32> to vector<1x1x16xf32>
    %674 = vector.shape_cast %673 : vector<1x1x16xf32> to vector<1x16xf32>
    %c0_167 = arith.constant 0 : index
    %c0_168 = arith.constant 0 : index
    %c80_169 = arith.constant 80 : index
    %675 = vector.load %arg6[%c0_167, %c0_168, %c80_169] : memref<1x1x256xf32, #tpu.memory_space<vmem>>, vector<1x1x16xf32>
    %676 = vector.shape_cast %675 : vector<1x1x16xf32> to vector<1x16xf32>
    %677 = vector.shape_cast %674 : vector<1x16xf32> to vector<1x1x16xf32>
    tpu.vector_store %arg6[%c0_167, %c0_168, %c80_169], %677 {strides = array<i32>} : memref<1x1x256xf32, #tpu.memory_space<vmem>>, vector<1x1x16xf32>,
    %678 = vector.extract_strided_slice %647 {offsets = [0, 6, 0], sizes = [1, 1, 16], strides = [1, 1, 1]} : vector<1x16x16xf32> to vector<1x1x16xf32>
    %679 = vector.shape_cast %678 : vector<1x1x16xf32> to vector<1x16xf32>
    %c0_170 = arith.constant 0 : index
    %c0_171 = arith.constant 0 : index
    %c96_172 = arith.constant 96 : index
    %680 = vector.load %arg6[%c0_170, %c0_171, %c96_172] : memref<1x1x256xf32, #tpu.memory_space<vmem>>, vector<1x1x16xf32>
    %681 = vector.shape_cast %680 : vector<1x1x16xf32> to vector<1x16xf32>
    %682 = vector.shape_cast %679 : vector<1x16xf32> to vector<1x1x16xf32>
    tpu.vector_store %arg6[%c0_170, %c0_171, %c96_172], %682 {strides = array<i32>} : memref<1x1x256xf32, #tpu.memory_space<vmem>>, vector<1x1x16xf32>,
    %683 = vector.extract_strided_slice %647 {offsets = [0, 7, 0], sizes = [1, 1, 16], strides = [1, 1, 1]} : vector<1x16x16xf32> to vector<1x1x16xf32>
    %684 = vector.shape_cast %683 : vector<1x1x16xf32> to vector<1x16xf32>
    %c0_173 = arith.constant 0 : index
    %c0_174 = arith.constant 0 : index
    %c112 = arith.constant 112 : index
    %685 = vector.load %arg6[%c0_173, %c0_174, %c112] : memref<1x1x256xf32, #tpu.memory_space<vmem>>, vector<1x1x16xf32>
    %686 = vector.shape_cast %685 : vector<1x1x16xf32> to vector<1x16xf32>
    %687 = vector.shape_cast %684 : vector<1x16xf32> to vector<1x1x16xf32>
    tpu.vector_store %arg6[%c0_173, %c0_174, %c112], %687 {strides = array<i32>} : memref<1x1x256xf32, #tpu.memory_space<vmem>>, vector<1x1x16xf32>,
    %688 = vector.extract_strided_slice %647 {offsets = [0, 8, 0], sizes = [1, 1, 16], strides = [1, 1, 1]} : vector<1x16x16xf32> to vector<1x1x16xf32>
    %689 = vector.shape_cast %688 : vector<1x1x16xf32> to vector<1x16xf32>
    %c0_175 = arith.constant 0 : index
    %c0_176 = arith.constant 0 : index
    %c128 = arith.constant 128 : index
    %690 = vector.load %arg6[%c0_175, %c0_176, %c128] : memref<1x1x256xf32, #tpu.memory_space<vmem>>, vector<1x1x16xf32>
    %691 = vector.shape_cast %690 : vector<1x1x16xf32> to vector<1x16xf32>
    %692 = vector.shape_cast %689 : vector<1x16xf32> to vector<1x1x16xf32>
    tpu.vector_store %arg6[%c0_175, %c0_176, %c128], %692 {strides = array<i32>} : memref<1x1x256xf32, #tpu.memory_space<vmem>>, vector<1x1x16xf32>,
    %693 = vector.extract_strided_slice %647 {offsets = [0, 9, 0], sizes = [1, 1, 16], strides = [1, 1, 1]} : vector<1x16x16xf32> to vector<1x1x16xf32>
    %694 = vector.shape_cast %693 : vector<1x1x16xf32> to vector<1x16xf32>
    %c0_177 = arith.constant 0 : index
    %c0_178 = arith.constant 0 : index
    %c144 = arith.constant 144 : index
    %695 = vector.load %arg6[%c0_177, %c0_178, %c144] : memref<1x1x256xf32, #tpu.memory_space<vmem>>, vector<1x1x16xf32>
    %696 = vector.shape_cast %695 : vector<1x1x16xf32> to vector<1x16xf32>
    %697 = vector.shape_cast %694 : vector<1x16xf32> to vector<1x1x16xf32>
    tpu.vector_store %arg6[%c0_177, %c0_178, %c144], %697 {strides = array<i32>} : memref<1x1x256xf32, #tpu.memory_space<vmem>>, vector<1x1x16xf32>,
    %698 = vector.extract_strided_slice %647 {offsets = [0, 10, 0], sizes = [1, 1, 16], strides = [1, 1, 1]} : vector<1x16x16xf32> to vector<1x1x16xf32>
    %699 = vector.shape_cast %698 : vector<1x1x16xf32> to vector<1x16xf32>
    %c0_179 = arith.constant 0 : index
    %c0_180 = arith.constant 0 : index
    %c160 = arith.constant 160 : index
    %700 = vector.load %arg6[%c0_179, %c0_180, %c160] : memref<1x1x256xf32, #tpu.memory_space<vmem>>, vector<1x1x16xf32>
    %701 = vector.shape_cast %700 : vector<1x1x16xf32> to vector<1x16xf32>
    %702 = vector.shape_cast %699 : vector<1x16xf32> to vector<1x1x16xf32>
    tpu.vector_store %arg6[%c0_179, %c0_180, %c160], %702 {strides = array<i32>} : memref<1x1x256xf32, #tpu.memory_space<vmem>>, vector<1x1x16xf32>,
    %703 = vector.extract_strided_slice %647 {offsets = [0, 11, 0], sizes = [1, 1, 16], strides = [1, 1, 1]} : vector<1x16x16xf32> to vector<1x1x16xf32>
    %704 = vector.shape_cast %703 : vector<1x1x16xf32> to vector<1x16xf32>
    %c0_181 = arith.constant 0 : index
    %c0_182 = arith.constant 0 : index
    %c176 = arith.constant 176 : index
    %705 = vector.load %arg6[%c0_181, %c0_182, %c176] : memref<1x1x256xf32, #tpu.memory_space<vmem>>, vector<1x1x16xf32>
    %706 = vector.shape_cast %705 : vector<1x1x16xf32> to vector<1x16xf32>
    %707 = vector.shape_cast %704 : vector<1x16xf32> to vector<1x1x16xf32>
    tpu.vector_store %arg6[%c0_181, %c0_182, %c176], %707 {strides = array<i32>} : memref<1x1x256xf32, #tpu.memory_space<vmem>>, vector<1x1x16xf32>,
    %708 = vector.extract_strided_slice %647 {offsets = [0, 12, 0], sizes = [1, 1, 16], strides = [1, 1, 1]} : vector<1x16x16xf32> to vector<1x1x16xf32>
    %709 = vector.shape_cast %708 : vector<1x1x16xf32> to vector<1x16xf32>
    %c0_183 = arith.constant 0 : index
    %c0_184 = arith.constant 0 : index
    %c192 = arith.constant 192 : index
    %710 = vector.load %arg6[%c0_183, %c0_184, %c192] : memref<1x1x256xf32, #tpu.memory_space<vmem>>, vector<1x1x16xf32>
    %711 = vector.shape_cast %710 : vector<1x1x16xf32> to vector<1x16xf32>
    %712 = vector.shape_cast %709 : vector<1x16xf32> to vector<1x1x16xf32>
    tpu.vector_store %arg6[%c0_183, %c0_184, %c192], %712 {strides = array<i32>} : memref<1x1x256xf32, #tpu.memory_space<vmem>>, vector<1x1x16xf32>,
    %713 = vector.extract_strided_slice %647 {offsets = [0, 13, 0], sizes = [1, 1, 16], strides = [1, 1, 1]} : vector<1x16x16xf32> to vector<1x1x16xf32>
    %714 = vector.shape_cast %713 : vector<1x1x16xf32> to vector<1x16xf32>
    %c0_185 = arith.constant 0 : index
    %c0_186 = arith.constant 0 : index
    %c208 = arith.constant 208 : index
    %715 = vector.load %arg6[%c0_185, %c0_186, %c208] : memref<1x1x256xf32, #tpu.memory_space<vmem>>, vector<1x1x16xf32>
    %716 = vector.shape_cast %715 : vector<1x1x16xf32> to vector<1x16xf32>
    %717 = vector.shape_cast %714 : vector<1x16xf32> to vector<1x1x16xf32>
    tpu.vector_store %arg6[%c0_185, %c0_186, %c208], %717 {strides = array<i32>} : memref<1x1x256xf32, #tpu.memory_space<vmem>>, vector<1x1x16xf32>,
    %718 = vector.extract_strided_slice %647 {offsets = [0, 14, 0], sizes = [1, 1, 16], strides = [1, 1, 1]} : vector<1x16x16xf32> to vector<1x1x16xf32>
    %719 = vector.shape_cast %718 : vector<1x1x16xf32> to vector<1x16xf32>
    %c0_187 = arith.constant 0 : index
    %c0_188 = arith.constant 0 : index
    %c224 = arith.constant 224 : index
    %720 = vector.load %arg6[%c0_187, %c0_188, %c224] : memref<1x1x256xf32, #tpu.memory_space<vmem>>, vector<1x1x16xf32>
    %721 = vector.shape_cast %720 : vector<1x1x16xf32> to vector<1x16xf32>
    %722 = vector.shape_cast %719 : vector<1x16xf32> to vector<1x1x16xf32>
    tpu.vector_store %arg6[%c0_187, %c0_188, %c224], %722 {strides = array<i32>} : memref<1x1x256xf32, #tpu.memory_space<vmem>>, vector<1x1x16xf32>,
    %723 = vector.extract_strided_slice %647 {offsets = [0, 15, 0], sizes = [1, 1, 16], strides = [1, 1, 1]} : vector<1x16x16xf32> to vector<1x1x16xf32>
    %724 = vector.shape_cast %723 : vector<1x1x16xf32> to vector<1x16xf32>
    %c0_189 = arith.constant 0 : index
    %c0_190 = arith.constant 0 : index
    %c240 = arith.constant 240 : index
    %725 = vector.load %arg6[%c0_189, %c0_190, %c240] : memref<1x1x256xf32, #tpu.memory_space<vmem>>, vector<1x1x16xf32>
    %726 = vector.shape_cast %725 : vector<1x1x16xf32> to vector<1x16xf32>
    %727 = vector.shape_cast %724 : vector<1x16xf32> to vector<1x1x16xf32>
    tpu.vector_store %arg6[%c0_189, %c0_190, %c240], %727 {strides = array<i32>} : memref<1x1x256xf32, #tpu.memory_space<vmem>>, vector<1x1x16xf32>,
    %c0_191 = arith.constant 0 : index
    %c0_192 = arith.constant 0 : index
    %c0_193 = arith.constant 0 : index
    %728 = vector.load %arg6[%c0_191, %c0_192, %c0_193] : memref<1x1x256xf32, #tpu.memory_space<vmem>>, vector<1x1x256xf32>
    %c0_194 = arith.constant 0 : index
    %c0_195 = arith.constant 0 : index
    %c0_196 = arith.constant 0 : index
    %729 = vector.load %arg1[%c0_194, %c0_195, %c0_196] : memref<1x4x256xf32, #tpu.memory_space<vmem>>, vector<1x4x256xf32>
    %730 = vector.broadcast %728 : vector<1x1x256xf32> to vector<1x4x256xf32>
    %731 = arith.mulf %729, %730 : vector<1x4x256xf32>
    %c0_197 = arith.constant 0 : index
    %c0_198 = arith.constant 0 : index
    %c0_199 = arith.constant 0 : index
    %732 = vector.load %arg3[%c0_197, %c0_198, %c0_199] : memref<1x4x256xf32, #tpu.memory_space<vmem>>, vector<1x4x256xf32>
    tpu.vector_store %arg3[%c0_197, %c0_198, %c0_199], %731 {strides = array<i32>} : memref<1x4x256xf32, #tpu.memory_space<vmem>>, vector<1x4x256xf32>,
    return
  }
  func.func @transform_0(%arg0: i32) -> (i32, i32, i32) {
    %c0_i32 = arith.constant 0 : i32
    %c0_i32_0 = arith.constant 0 : i32
    %c0_i32_1 = arith.constant 0 : i32
    return %arg0, %c0_i32, %c0_i32_0 : i32, i32, i32
  }
  func.func @transform_1(%arg0: i32) -> i32 {
    %c0_i32 = arith.constant 0 : i32
    %c0_i32_0 = arith.constant 0 : i32
    return %c0_i32 : i32
  }
  func.func @transform_2(%arg0: i32) -> (i32, i32, i32) {
    %c0_i32 = arith.constant 0 : i32
    %c0_i32_0 = arith.constant 0 : i32
    %c0_i32_1 = arith.constant 0 : i32
    return %arg0, %c0_i32, %c0_i32_0 : i32, i32, i32
  }
}

</mosaic_0001>

<bundles_post_ra>
// kernel: tpu_custom_call.1
= control target key start
LH: loop header
LB: loop body
LE: loop exit
PB: predicated region body
PF: predicated region fallthrough
CT: control target
= control target key end

     0   :  { %7 = vsyncpa [#allocation6], 0  ;;  %s4825_s0 = inlined_call_operand.hbm [shape: f32[2,4,256], index: 0, kind: input, shape index: {}]   ;;  %s4826_s1 = inlined_call_operand.vmem [shape: f32[99], index: 1, kind: input, shape index: {}]   ;;  %s4827_s2 = inlined_call_operand.hbm [shape: f32[2,4,256], index: 2, kind: output, shape index: {}]  }
   0x1   :  { %9 = vsyncpa [#allocation6 + $0x1], 0 }
   0x2   :  { %10 = vsyncpa [#allocation8], 0 }
   0x3   :  { %11 = vsyncpa [#allocation7], 0 }
   0x4   :  { %13 = vsyncpa [#allocation7 + $0x1], 0  ;;  %s2933_s9 = smov 0   ;;  %s2935_s10 = smov 0  }
   0x5   :  { %s2937_s11 = smov 0   ;;  %s2939_s12 = smov 0  }
   0x6 LB: > { %s2954_s13 = sadd.s32 4294967295, %s2890_s12   ;;  %s2566_s14 = sadd.s32 4294967294, %s2890_s12   ;;  %s2890_s12 = sphi %s2939_s12, %s4920_s12   ;;  %s2886_s11 = sphi %s2937_s11, %s4919_s11   ;;  %s2882_s10 = sphi %s2935_s10, %s4918_s10   ;;  %s2878_s9 = sphi %s2933_s9, %s4917_s9  }
   0x7   : > { %p39_p0 = scmp.ne.s32.totalorder %s2882_s10, %s2878_s9  ;;  %p4828_p1 = scmp.eq.s32.totalorder %s2954_s13, 0 }
   0x8   : > { %p90_p3 = scmp.eq.s32.totalorder %s2566_s14, 1  ;;  %p2567_p5 = scmp.ge.s32.totalorder %s2890_s12, 1 }
   0x9   : > { %p2963_p4 = por %p4828_p1, %p39_p0  ;;  %p97_p7 = scmp.lt.s32.totalorder %s2890_s12, 3 }
   0xa   : > { %p2968_p6 = por %p90_p3, %p39_p0  ;;  %s110_s19 = sshll.u32 %s4826_s1, 4  ;;  %s111_s19 = int_to_ptr.vmem [resolvable:$true] %s110_s19 }
   0xb   : > { %s4839_s15 = scalar_select %p2963_p4, 1, 0 }
   0xc   : > { %s4840_s16 = scalar_select %p2968_p6, 1, 0 }
   0xd   : > { %p2976_p8 = pnand %p2567_p5, %p97_p7  ;;  %s2984_s21 = sadd.s32 1, %s2890_s12  }
   0xe   : > { %s23_s23 = ssub.s32 %s2890_s12, %s2984_s21  ;;  %s26_s25 = sadd.s32 1, %s2886_s11 }
   0xf   : > { %s4841_s20 = scalar_select %p2976_p8, 1, 0 }
  0x10   : > { %p2692_p10 = pneg %p2976_p8  ;;  %p2994_p12 = scmp.eq.s32.totalorder %s23_s23, 0 }
  0x11   : > { %p33_p13 = scmp.ne.s32.totalorder %s2886_s11, %s2882_s10  ;;  %s2779_s26 = scalar_lea.vmem %s111_s19, 16 }
  0x12   : > { %p2988_p11 = pnand %p2692_p10, %p4828_p1  ;;  %p2780_p0 = scmp.ne.s32.totalorder %s111_s19, %s2779_s26 }
  0x13   : > { %p2787_p9 = scmp.lt.s32.totalorder %s111_s19, %s111_s19  ;;  %p2788_p2 = scmp.lt.s32.totalorder %s2779_s26, %s2779_s26 }
  0x14   : > { %p2781_p3 = pneg %p2988_p11 }
  0x15   : > { %p2789_p10 = por %p2788_p2, %p2787_p9 }
  0x16   : > { %p2782_p5 = pnand %p2781_p3, %p2780_p0 }
  0x18   : > { %p2783_p7 = pneg %p2782_p5 }
  0x1a   : > { %p2790_p1 = pnand %p2789_p10, %p2783_p7 }
  0x1c   : > { %2793 = shalt.err (!%p2790_p1)
}
  0x1d   : > { %s2892_s27 = smov [#allocation9]   ;;  %p34_p2 = scmp.eq.s32.totalorder %s2890_s12, 0 }
  0x1e   : > { %2695 = dma.vmem_to_smem (!%p2988_p11), %s111_s19, 16, %s2892_s27, [#allocation8]  }
  0x1f   : > { %s3008_s28 = scalar_select %p2994_p12, %s2886_s11, %s26_s25  }
  0x20   : > { %p4844_p1 = scmp.eq.s32.totalorder %s2954_s13, 1  ;;  %p2705_p0 = scmp.lt.s32.totalorder %s2890_s12, 2 }
  0x21   : > { %s121_s30 = sand.u32 1, %s2886_s11   ;;  %p35_p3 = por %p34_p2, %p33_p13 }
  0x22   : > { %p3016_p9 = por %p4844_p1, %p33_p13  ;;  %s2570_s3 = sshll.u32 %s121_s30, 3 }
  0x23   : > { %s2682_s4 = sshll.u32 %s2890_s12, 7  ;;  %s125_s8 = scalar_lea.vmem [#allocation5], %s2570_s3 }
  0x24   : > { %s4845_s29 = scalar_select %p3016_p9, 1, 0 }
  0x25   : > { %s3029_s7 = scalar_lea.hbm %s4825_s0, %s2682_s4  ;;  %s133_s14 = sshll.u32 %s125_s8, 4  ;;  %s134_s14 = int_to_ptr.vmem [resolvable:$true] %s133_s14 }
  0x26   : > { %p3031_p11 = pnand %p2705_p0, %p35_p3  ;;  %s122_s18 = scalar_lea.sflag [#allocation6], %s121_s30 }
  0x27   : > { %s2794_s19 = scalar_lea.hbm %s3029_s7, 128  ;;  %s2799_s24 = scalar_lea.hbm %s4825_s0, 256 }
  0x28   : > { %p2795_p12 = scmp.ne.s32.totalorder %s3029_s7, %s2794_s19  ;;  %p2796_p13 = pneg %p3031_p11 }
  0x29   : > { %p2800_p10 = scmp.lt.s32.totalorder %s3029_s7, %s4825_s0  ;;  %p2801_p2 = scmp.lt.s32.totalorder %s2799_s24, %s2794_s19 }
  0x2a   : > { %p2797_p5 = pnand %p2796_p13, %p2795_p12 }
  0x2b   : > { %p2802_p1 = por %p2801_p2, %p2800_p10 }
  0x2c   : > { %p2798_p7 = pneg %p2797_p5 }
  0x2e   : > { %p2803_p0 = pnand %p2802_p1, %p2798_p7 }
  0x30   : > { %2806 = shalt.err (!%p2803_p0)
}
  0x31   : > { %s2807_s27 = scalar_lea.vmem %s134_s14, 128  ;;  %s2893_s30 = smov [#allocation5]  }
  0x32   : > { %p2808_p3 = scmp.ne.s32.totalorder %s134_s14, %s2807_s27  ;;  %s2812_s3 = sshll.u32 %s2893_s30, 4  ;;  %s2813_s3 = int_to_ptr.vmem [resolvable:$false] %s2812_s3 }
  0x33   : > { %s2814_s4 = scalar_lea.vmem %s2813_s3, 256  ;;  %p2815_p12 = scmp.lt.s32.totalorder %s134_s14, %s2813_s3 }
  0x34   : > { %p2810_p6 = pnand %p2808_p3, %p2796_p13  ;;  %p2816_p5 = scmp.lt.s32.totalorder %s2814_s4, %s2807_s27 }
  0x36   : > { %p2811_p9 = pneg %p2810_p6  ;;  %p2817_p4 = por %p2816_p5, %p2815_p12 }
  0x38   : > { %p2818_p8 = pnand %p2817_p4, %p2811_p9 }
  0x3a   : > { %2821 = shalt.err (!%p2818_p8)
}
  0x3b   : > { %2699 = dma.hbm_to_vmem [thread:$0]  (!%p3031_p11), %s3029_s7, 128, %s134_s14, %s122_s18  }
  0x3c   : > { %p4847_p7 = scmp.ne.s32.totalorder %s4841_s20, 0 }
  0x3e   : > { %142 = sbr.rel (%p4847_p7) target bundleno = 895 (0x37f), region = 28 }
  0x43   : > { %s3052_s5 = sand.u32 1, %s2882_s10   ;;  %p4848_p4 = scmp.ne.s32.totalorder %s4839_s15, 0 }
  0x44   : > { %s4832_s6 = sshll.u32 %s3052_s5, 3  ;;  %s145_s8 = scalar_lea.sflag [#allocation6], %s3052_s5 }
  0x45   : > { %s3058_s19 = scalar_lea.vmem [#allocation5], %s4832_s6 }
  0x46   : > { %2865 = dma.done.wait (%p4848_p4), %s145_s8, 128  }
  0x47   : > { %2867 = vsyncadd (%p4848_p4), %s145_s8, 4294967168  ;;  %p4849_p6 = scmp.eq.s32.totalorder %s2954_s13, 0 }
  0x49   : > { %2869 = dma.done.wait (%p4849_p6), [#allocation8], 16   ;;  %p4850_p8 = pmov %p4849_p6 }
  0x4b   : > { %2871 = vsyncadd (%p4850_p8), [#allocation8], 4294967280 }
  0x4c   : > { %157 = sfence }
  0x4d   : > { %v174_v0 = vld [vmem:[%s3058_s19] sm:$0xff]  ;;  %vm178_vm0 = vcmask 1043456   ;;  %vm209_vm1 = vcmask 179200   ;;  %v2894_v3 = vmov 0.0   ;;  %s2895_s15 = smov 99   ;;  %s2896_s20 = smov 3  }
  0x4e   : > { %v179_v1 = vsel %vm178_vm0, %v174_v0, 0.0  ;;  %v176_v2 = vcombine.high %v174_v0, %v174_v0  ;;  %210 = vst.msk [vmem:[#allocation2] sm:$0xff] %vm209_vm1, %v2894_v3  ;;  %211 = vst.msk [vmem:[#allocation2 + $0x8] sm:$0xff] %vm209_vm1, %v2894_v3  ;;  %s2897_s7 = smov 83   ;;  %s2898_s14 = smov 115   ;;  %v195_v17 = vsel %vm178_vm0, %v174_v0, -inf }
  0x4f   : > { %214 = vst.msk [vmem:[#allocation3] sm:$0xff] %vm209_vm1, %v2894_v3  ;;  %215 = vst.msk [vmem:[#allocation3 + $0x8] sm:$0xff] %vm209_vm1, %v2894_v3  ;;  %v180_v4 = vrot.slane %v179_v1, 4  ;;  %s2899_s17 = smov 51   ;;  %s2900_s18 = smov 67   ;;  %v196_v19 = vrot.slane %v195_v17, 4 }
  0x50   : > { %v186_v5 = vsel %vm178_vm0, %v176_v2, 0.0  ;;  %vm212_vm2 = vcmask 177152   ;;  %s2901_s22 = smov 19   ;;  %s2902_s23 = smov 35   ;;  %v202_v24 = vsel %vm178_vm0, %v176_v2, -inf  ;;  %vm221_vm3 = vcmask 147480  }
  0x51   : > { %v181_v6 = vadd.f32 %v180_v4, %v179_v1  ;;  %v187_v7 = vrot.slane %v186_v5, 4  ;;  %213 = vst.msk [vmem:[#allocation2 + $0x10] sm:$0x3f] %vm212_vm2, %v2894_v3  ;;  %216 = vst.msk [vmem:[#allocation3 + $0x10] sm:$0x3f] %vm212_vm2, %v2894_v3  ;;  %v197_v21 = vmax.f32 %v195_v17, %v196_v19  ;;  %v203_v26 = vrot.slane %v202_v24, 4 }
  0x52   : > { %s3109_s24 = sld [smem:[#allocation9 + $0x1]]  ;;  %s2903_s27 = smov 127   ;;  %vm369_vm4 = vcmask 1046528   ;;  %vm387_vm5 = vcmask 1045504   ;;  %vm405_vm6 = vcmask 1044480   ;;  %vm440_vm7 = vcmask 1042432  }
  0x53   : > { %v182_v8 = vrot.slane %v181_v6, 2  ;;  %v188_v10 = vadd.f32 %v187_v7, %v186_v5  ;;  %v198_v22 = vrot.slane %v197_v21, 2  ;;  %v204_v28 = vmax.f32 %v202_v24, %v203_v26  ;;  %s3113_s25 = sld [smem:[#allocation9 + $0x2]]  ;;  %s2904_s3 = smov 126  }
  0x54   : > { %s3118_s26 = sld [smem:[#allocation9 + $0x3]]  ;;  %s2905_s8 = smov 125   ;;  %vm458_vm8 = vcmask 1041408  }
  0x55   : > { %v183_v9 = vadd.f32 %v182_v8, %v181_v6  ;;  %v189_v13 = vrot.slane %v188_v10, 2  ;;  %v199_v23 = vmax.f32 %v197_v21, %v198_v22  ;;  %v205_v29 = vrot.slane %v204_v28, 2  ;;  %s2585_s30 = sld [smem:[#allocation9 + $0x8]]  ;;  %p4914_p11 = scmp.ne.s32.totalorder %s4845_s29, 0 }
  0x56   : > { %s2586_s4 = sld [smem:[#allocation9 + $0xf]] }
  0x57   : > { %v184_v11 = vrot.slane %v183_v9, 1  ;;  %v190_v15 = vadd.f32 %v189_v13, %v188_v10  ;;  %v200_v25 = vrot.slane %v199_v23, 1  ;;  %v206_v30 = vmax.f32 %v204_v28, %v205_v29  ;;  %s3521_s6 = sld [smem:[#allocation9 + $0x39]] }
  0x58   : > { %v469_v41 = vstv %s3109_s24  ;;  %s2596_s24 = sld [smem:[#allocation9 + $0x25]] }
  0x59   : > { %v185_v12 = vadd.f32 %v184_v11, %v183_v9  ;;  %v191_v16 = vrot.slane %v190_v15, 1  ;;  %v201_v27 = vmax.f32 %v199_v23, %v200_v25  ;;  %v207_v31 = vrot.slane %v206_v30, 1 }
  0x5a   : > { %v609_v46 = vstv %s3113_s25  ;;  %v749_v50 = vstv %s3118_s26  ;;  %s2597_s25 = sld [smem:[#allocation9 + $0x2c]] }
  0x5b   : > { %v193_v14 = vmul.f32 0.25, %v185_v12  ;;  %v192_v18 = vadd.f32 %v191_v16, %v190_v15  ;;  %v208_v32 = vmax.f32 %v206_v30, %v207_v31  ;;  %v483_v56 = vstv %s2585_s30  ;;  %s2599_s26 = sld [smem:[#allocation9 + $0xa]] }
  0x5c   : > { %v504_v59 = vstv %s2586_s4  ;;  %s2600_s30 = sld [smem:[#allocation9 + $0x11]] }
  0x5d   : > { %236 = vrot.lane.b32.xlu1 %v193_v14, %s2895_s15  ;;  %218 = vrot.lane.b32.xlu0 %v193_v14, %s2896_s20  ;;  %v194_v20 = vmul.f32 0.25, %v192_v18  ;;  %s2601_s4 = sld [smem:[#allocation9 + $0x18]] }
  0x61   : > { %244 = vrot.lane.b32.xlu1 %v193_v14, %s2897_s7  ;;  %228 = vrot.lane.b32.xlu0 %v193_v14, %s2898_s14 }
  0x65   : > { %260 = vrot.lane.b32.xlu1 %v193_v14, %s2899_s17  ;;  %252 = vrot.lane.b32.xlu0 %v193_v14, %s2900_s18 }
  0x69   : > { %276 = vrot.lane.b32.xlu1 %v193_v14, %s2901_s22  ;;  %268 = vrot.lane.b32.xlu0 %v193_v14, %s2902_s23 }
  0x6d   : > { %294 = vrot.lane.b32.xlu1 %v194_v20, %s2898_s14  ;;  %285 = vrot.lane.b32.xlu0 %v194_v20, %s2896_s20 }
  0x71   : > { %310 = vrot.lane.b32.xlu1 %v194_v20, %s2897_s7  ;;  %302 = vrot.lane.b32.xlu0 %v194_v20, %s2895_s15 }
  0x75   : > { %326 = vrot.lane.b32.xlu1 %v194_v20, %s2899_s17  ;;  %318 = vrot.lane.b32.xlu0 %v194_v20, %s2900_s18 }
  0x79   : > { %342 = vrot.lane.b32.xlu1 %v194_v20, %s2901_s22  ;;  %334 = vrot.lane.b32.xlu0 %v194_v20, %s2902_s23 }
  0x7d   : > { %224 = vrot.lane.b32.xlu0 %v201_v27, %s2896_s20  ;;  %232 = vrot.lane.b32.xlu1 %v201_v27, %s2898_s14 }
  0x81   : > { %240 = vrot.lane.b32.xlu0 %v201_v27, %s2895_s15  ;;  %248 = vrot.lane.b32.xlu1 %v201_v27, %s2897_s7 }
  0x85   : > { %256 = vrot.lane.b32.xlu0 %v201_v27, %s2900_s18  ;;  %264 = vrot.lane.b32.xlu1 %v201_v27, %s2899_s17 }
  0x89   : > { %272 = vrot.lane.b32.xlu0 %v201_v27, %s2902_s23  ;;  %280 = vrot.lane.b32.xlu1 %v201_v27, %s2901_s22 }
  0x8d   : > { %290 = vrot.lane.b32.xlu0 %v208_v32, %s2896_s20  ;;  %298 = vrot.lane.b32.xlu1 %v208_v32, %s2898_s14  ;;  %s2588_s20 = sld [smem:[#allocation9 + $0x1d]] }
  0x8e   : > { %s3166_s14 = sld [smem:[#allocation9 + $0x2b]] }
  0x91   : > { %306 = vrot.lane.b32.xlu0 %v208_v32, %s2895_s15  ;;  %314 = vrot.lane.b32.xlu1 %v208_v32, %s2897_s7  ;;  %s2587_s15 = sld [smem:[#allocation9 + $0x16]] }
  0x92   : > { %s3152_s7 = sld [smem:[#allocation9 + $0x24]] }
  0x93   : > { %v546_v15 = vstv %s2588_s20  ;;  %s2603_s20 = sld [smem:[#allocation9 + $0x26]] }
  0x95   : > { %322 = vrot.lane.b32.xlu0 %v208_v32, %s2900_s18  ;;  %330 = vrot.lane.b32.xlu1 %v208_v32, %s2899_s17  ;;  %s3181_s17 = sld [smem:[#allocation9 + $0x9]] }
  0x96   : > { %s3196_s18 = sld [smem:[#allocation9 + $0x10]] }
  0x97   : > { %v525_v5 = vstv %s2587_s15  ;;  %s2602_s15 = sld [smem:[#allocation9 + $0x1f]] }
  0x98   : > { %v567_v26 = vstv %s3152_s7  ;;  %s2604_s7 = sld [smem:[#allocation9 + $0x2d]] }
  0x99   : > { %346 = vrot.lane.b32.xlu1 %v208_v32, %s2901_s22  ;;  %338 = vrot.lane.b32.xlu0 %v208_v32, %s2902_s23  ;;  %s3211_s22 = sld [smem:[#allocation9 + $0x17]] }
  0x9a   : > { %s3226_s23 = sld [smem:[#allocation9 + $0x1e]] }
  0xcf   : > { %v237_v33 = vpop.permute.xlu1 %236  ;;  %v219_v34 = vpop.permute.xlu0 %218 }
  0xd0   : > { %239 = vst.msk [vmem:[#allocation2 + $0x5] sm:$0x1] %vm221_vm3, %v237_v33  ;;  %222 = vst.msk [vmem:[#allocation2 + $0x3] sm:$0x1] %vm221_vm3, %v219_v34 }
  0xd3   : > { %v245_v35 = vpop.permute.xlu1 %244  ;;  %v229_v36 = vpop.permute.xlu0 %228 }
  0xd4   : > { %247 = vst.msk [vmem:[#allocation2 + $0x6] sm:$0x1] %vm221_vm3, %v245_v35  ;;  %231 = vst.msk [vmem:[#allocation2 + $0x4] sm:$0x1] %vm221_vm3, %v229_v36 }
  0xd7   : > { %v261_v37 = vpop.permute.xlu1 %260  ;;  %v253_v38 = vpop.permute.xlu0 %252 }
  0xd8   : > { %263 = vst.msk [vmem:[#allocation2 + $0x8] sm:$0x1] %vm221_vm3, %v261_v37  ;;  %255 = vst.msk [vmem:[#allocation2 + $0x7] sm:$0x1] %vm221_vm3, %v253_v38  ;;  %v588_v37 = vstv %s3166_s14  ;;  %s2606_s14 = sld [smem:[#allocation9 + $0xb]] }
  0xdb   : > { %v277_v39 = vpop.permute.xlu1 %276  ;;  %v269_v40 = vpop.permute.xlu0 %268 }
  0xdc   : > { %279 = vst.msk [vmem:[#allocation2 + $0xa] sm:$0x1] %vm221_vm3, %v277_v39  ;;  %271 = vst.msk [vmem:[#allocation2 + $0x9] sm:$0x1] %vm221_vm3, %v269_v40 }
  0xdf   : > { %v3120_v42 = vld [vmem:[#allocation2] sm:$0xff]  ;;  %v295_v43 = vpop.permute.xlu1 %294  ;;  %v286_v44 = vpop.permute.xlu0 %285 }
  0xe0   : > { %297 = vst.msk [vmem:[#allocation2 + $0xc] sm:$0x1] %vm221_vm3, %v295_v43  ;;  %288 = vst.msk [vmem:[#allocation2 + $0xb] sm:$0x1] %vm221_vm3, %v286_v44  ;;  %v470_v45 = vmul.f32 %v469_v41, %v3120_v42  ;;  %v610_v49 = vmul.f32 %v609_v46, %v3120_v42  ;;  %v750_v53 = vmul.f32 %v749_v50, %v3120_v42 }
  0xe1   : > { %v484_v57 = vmul.f32 %v483_v56, %v3120_v42  ;;  %v505_v3 = vmul.f32 %v504_v59, %v3120_v42  ;;  %v526_v14 = vmul.f32 %v525_v5, %v3120_v42  ;;  %v547_v25 = vmul.f32 %v546_v15, %v3120_v42 }
  0xe2   : > { %474 = vrot.lane.b32.xlu0 %v470_v45, %s2903_s27  ;;  %v568_v36 = vmul.f32 %v567_v26, %v3120_v42 }
  0xe3   : > { %v311_v47 = vpop.permute.xlu1 %310  ;;  %v303_v48 = vpop.permute.xlu0 %302  ;;  %v490_v1 = vrot.slane %v484_v57, 1  ;;  %v511_v13 = vrot.slane %v505_v3, 2  ;;  %v532_v24 = vrot.slane %v526_v14, 3  ;;  %v553_v35 = vrot.slane %v547_v25, 4 }
  0xe4   : > { %313 = vst.msk [vmem:[#allocation2 + $0xe] sm:$0x1] %vm221_vm3, %v311_v47  ;;  %305 = vst.msk [vmem:[#allocation2 + $0xd] sm:$0x1] %vm221_vm3, %v303_v48  ;;  %v574_v47 = vrot.slane %v568_v36, 5  ;;  %v589_v48 = vmul.f32 %v588_v37, %v3120_v42 }
  0xe6   : > { %614 = vrot.lane.b32.xlu0 %v610_v49, %s2904_s3  ;;  %v623_v49 = vstv %s3181_s17  ;;  %s3307_s17 = sld [smem:[#allocation9 + $0x4]] }
  0xe7   : > { %v327_v51 = vpop.permute.xlu1 %326  ;;  %v319_v52 = vpop.permute.xlu0 %318 }
  0xe8   : > { %329 = vst.msk [vmem:[#allocation2 + $0x10] sm:$0x1] %vm221_vm3, %v327_v51  ;;  %321 = vst.msk [vmem:[#allocation2 + $0xf] sm:$0x1] %vm221_vm3, %v319_v52 }
  0xea   : > { %754 = vrot.lane.b32.xlu0 %v750_v53, %s2905_s8 }
  0xeb   : > { %v343_v54 = vpop.permute.xlu1 %342  ;;  %v335_v55 = vpop.permute.xlu0 %334 }
  0xec   : > { %345 = vst.msk [vmem:[#allocation2 + $0x12] sm:$0x1] %vm221_vm3, %v343_v54  ;;  %337 = vst.msk [vmem:[#allocation2 + $0x11] sm:$0x1] %vm221_vm3, %v335_v55 }
  0xef   : > { %v3139_v58 = vld [vmem:[#allocation2 + $0x8] sm:$0xff]  ;;  %v225_v60 = vpop.permute.xlu0 %224  ;;  %v233_v61 = vpop.permute.xlu1 %232 }
  0xf0   : > { %v471_v62 = vmul.f32 %v469_v41, %v3139_v58  ;;  %v485_v63 = vmul.f32 %v483_v56, %v3139_v58  ;;  %v3144_v0 = vmul.f32 %v504_v59, %v3139_v58  ;;  %227 = vst.msk [vmem:[#allocation3 + $0x3] sm:$0x1] %vm221_vm3, %v225_v60  ;;  %235 = vst.msk [vmem:[#allocation3 + $0x4] sm:$0x1] %vm221_vm3, %v233_v61  ;;  %v644_v61 = vstv %s3196_s18  ;;  %s2607_s18 = sld [smem:[#allocation9 + $0x12]] }
  0xf1   : > { %v611_v9 = vmul.f32 %v609_v46, %v3139_v58  ;;  %v3158_v11 = vmul.f32 %v525_v5, %v3139_v58  ;;  %v751_v19 = vmul.f32 %v749_v50, %v3139_v58  ;;  %v3172_v21 = vmul.f32 %v546_v15, %v3139_v58 }
  0xf2   : > { %476 = vrot.lane.b32.xlu1 %v471_v62, %s2903_s27  ;;  %v491_v2 = vrot.slane %v485_v63, 1  ;;  %v512_v10 = vrot.slane %v3144_v0, 2  ;;  %v3186_v31 = vmul.f32 %v567_v26, %v3139_v58  ;;  %v3201_v43 = vmul.f32 %v588_v37, %v3139_v58 }
  0xf3   : > { %v3150_v4 = vld [vmem:[#allocation2 + $0x10] sm:$0x3f]  ;;  %v241_v6 = vpop.permute.xlu0 %240  ;;  %v249_v7 = vpop.permute.xlu1 %248  ;;  %v533_v20 = vrot.slane %v3158_v11, 3  ;;  %v554_v30 = vrot.slane %v3172_v21, 4  ;;  %v3216_v54 = vmul.f32 %v623_v49, %v3139_v58  ;;  %v624_v60 = vmul.f32 %v623_v49, %v3120_v42 }
  0xf4   : > { %v492_v8 = vsel %vm369_vm4, %v490_v1, %v491_v2  ;;  %243 = vst.msk [vmem:[#allocation3 + $0x5] sm:$0x1] %vm221_vm3, %v241_v6  ;;  %251 = vst.msk [vmem:[#allocation3 + $0x6] sm:$0x1] %vm221_vm3, %v249_v7  ;;  %v486_v12 = vmul.f32 %v483_v56, %v3150_v4  ;;  %v513_v18 = vsel %vm387_vm5, %v511_v13, %v512_v10  ;;  %v575_v41 = vrot.slane %v3186_v31, 5 }
  0xf5   : > { %495 = vrot.lane.b32.xlu0 %v492_v8, %s2903_s27  ;;  %v507_v23 = vmul.f32 %v504_v59, %v3150_v4  ;;  %v534_v29 = vsel %vm405_vm6, %v532_v24, %v533_v20  ;;  %v528_v34 = vmul.f32 %v525_v5, %v3150_v4  ;;  %v555_v40 = vsel %vm178_vm0, %v553_v35, %v554_v30 }
  0xf6   : > { %616 = vrot.lane.b32.xlu1 %v611_v9, %s2904_s3  ;;  %v493_v22 = vrot.slane %v486_v12, 1  ;;  %v549_v46 = vmul.f32 %v546_v15, %v3150_v4  ;;  %v576_v52 = vsel %vm440_vm7, %v574_v47, %v575_v41  ;;  %v596_v53 = vrot.slane %v3201_v43, 6 }
  0xf7   : > { %v257_v16 = vpop.permute.xlu0 %256  ;;  %v265_v17 = vpop.permute.xlu1 %264  ;;  %v514_v33 = vrot.slane %v507_v23, 2  ;;  %v535_v45 = vrot.slane %v528_v34, 3  ;;  %v570_v57 = vmul.f32 %v567_v26, %v3150_v4  ;;  %v595_v59 = vrot.slane %v589_v48, 6 }
  0xf8   : > { %259 = vst.msk [vmem:[#allocation3 + $0x7] sm:$0x1] %vm221_vm3, %v257_v16  ;;  %267 = vst.msk [vmem:[#allocation3 + $0x8] sm:$0x1] %vm221_vm3, %v265_v17  ;;  %v494_v32 = vsel %vm369_vm4, %v491_v2, %v493_v22  ;;  %v556_v56 = vrot.slane %v549_v46, 4  ;;  %v631_v1 = vrot.slane %v3216_v54, 1  ;;  %v646_v2 = vmul.f32 %v644_v61, %v3139_v58 }
  0xf9   : > { %516 = vrot.lane.b32.xlu0 %v513_v18, %s2903_s27  ;;  %v515_v44 = vsel %vm387_vm5, %v512_v10, %v514_v33  ;;  %v536_v55 = vsel %vm405_vm6, %v533_v20, %v535_v45  ;;  %v597_v0 = vsel %vm458_vm8, %v595_v59, %v596_v53  ;;  %v577_v5 = vrot.slane %v570_v57, 5 }
  0xfa   : > { %756 = vrot.lane.b32.xlu1 %v751_v19, %s2905_s8  ;;  %v557_v3 = vsel %vm178_vm0, %v554_v30, %v556_v56  ;;  %v591_v6 = vmul.f32 %v588_v37, %v3150_v4  ;;  %v630_v7 = vrot.slane %v624_v60, 1  ;;  %v645_v8 = vmul.f32 %v644_v61, %v3120_v42 }
  0xfb   : > { %v273_v27 = vpop.permute.xlu0 %272  ;;  %v281_v28 = vpop.permute.xlu1 %280  ;;  %v665_v9 = vstv %s3211_s22  ;;  %v652_v13 = vrot.slane %v646_v2, 2  ;;  %v578_v15 = vsel %vm440_vm7, %v575_v41, %v577_v5  ;;  %v626_v17 = vmul.f32 %v623_v49, %v3150_v4  ;;  %s2608_s22 = sld [smem:[#allocation9 + $0x19]] }
  0xfc   : > { %275 = vst.msk [vmem:[#allocation3 + $0x9] sm:$0x1] %vm221_vm3, %v273_v27  ;;  %283 = vst.msk [vmem:[#allocation3 + $0xa] sm:$0x1] %vm221_vm3, %v281_v28  ;;  %v632_v12 = vsel %vm369_vm4, %v630_v7, %v631_v1  ;;  %v667_v14 = vmul.f32 %v665_v9, %v3139_v58  ;;  %v598_v16 = vrot.slane %v591_v6, 6  ;;  %v651_v18 = vrot.slane %v645_v8, 2 }
  0xfd   : > { %537 = vrot.lane.b32.xlu0 %v534_v29, %s2903_s27  ;;  %v666_v19 = vmul.f32 %v665_v9, %v3120_v42  ;;  %v686_v20 = vstv %s3226_s23  ;;  %v633_v25 = vrot.slane %v626_v17, 1  ;;  %v647_v26 = vmul.f32 %v644_v61, %v3150_v4  ;;  %s2609_s23 = sld [smem:[#allocation9 + $0x20]] }
  0xfe   : > { %497 = vrot.lane.b32.xlu1 %v494_v32, %s2903_s27  ;;  %v653_v21 = vsel %vm387_vm5, %v651_v18, %v652_v13  ;;  %v673_v22 = vrot.slane %v667_v14, 3  ;;  %v688_v23 = vmul.f32 %v686_v20, %v3139_v58  ;;  %v599_v24 = vsel %vm458_vm8, %v596_v53, %v598_v16 }
  0xff   : > { %v291_v38 = vpop.permute.xlu0 %290  ;;  %v299_v39 = vpop.permute.xlu1 %298  ;;  %v672_v27 = vrot.slane %v666_v19, 3  ;;  %v687_v28 = vmul.f32 %v686_v20, %v3120_v42  ;;  %v707_v29 = vstv %s2596_s24  ;;  %v634_v33 = vsel %vm369_vm4, %v631_v1, %v633_v25  ;;  %s2906_s24 = smov 124  }
 0x100   : > { %293 = vst.msk [vmem:[#allocation3 + $0xb] sm:$0x1] %vm221_vm3, %v291_v38  ;;  %301 = vst.msk [vmem:[#allocation3 + $0xc] sm:$0x1] %vm221_vm3, %v299_v39  ;;  %v694_v31 = vrot.slane %v688_v23, 4  ;;  %v709_v32 = vmul.f32 %v707_v29, %v3139_v58  ;;  %v654_v34 = vrot.slane %v647_v26, 2  ;;  %v668_v35 = vmul.f32 %v665_v9, %v3150_v4 }
 0x101   : > { %558 = vrot.lane.b32.xlu0 %v555_v40, %s2903_s27  ;;  %v674_v30 = vsel %vm405_vm6, %v672_v27, %v673_v22  ;;  %v693_v36 = vrot.slane %v687_v28, 4  ;;  %v708_v37 = vmul.f32 %v707_v29, %v3120_v42  ;;  %v728_v38 = vstv %s2597_s25  ;;  %s2610_s25 = sld [smem:[#allocation9 + $0x27]] }
 0x102   : > { %518 = vrot.lane.b32.xlu1 %v515_v44, %s2903_s27  ;;  %v715_v40 = vrot.slane %v709_v32, 5  ;;  %v730_v41 = vmul.f32 %v728_v38, %v3139_v58  ;;  %v655_v43 = vsel %vm387_vm5, %v652_v13, %v654_v34  ;;  %v675_v44 = vrot.slane %v668_v35, 3 }
 0x103   : > { %v307_v50 = vpop.permute.xlu0 %306  ;;  %v315_v51 = vpop.permute.xlu1 %314  ;;  %v695_v39 = vsel %vm178_vm0, %v693_v36, %v694_v31  ;;  %v689_v45 = vmul.f32 %v686_v20, %v3150_v4  ;;  %v714_v46 = vrot.slane %v708_v37, 5  ;;  %v729_v47 = vmul.f32 %v728_v38, %v3120_v42 }
 0x104   : > { %309 = vst.msk [vmem:[#allocation3 + $0xd] sm:$0x1] %vm221_vm3, %v307_v50  ;;  %317 = vst.msk [vmem:[#allocation3 + $0xe] sm:$0x1] %vm221_vm3, %v315_v51  ;;  %v763_v48 = vstv %s2599_s26  ;;  %v736_v50 = vrot.slane %v730_v41, 6  ;;  %v710_v54 = vmul.f32 %v707_v29, %v3150_v4  ;;  %v784_v57 = vstv %s2600_s30  ;;  %s2611_s26 = sld [smem:[#allocation9 + $0x2e]] }
 0x105   : > { %579 = vrot.lane.b32.xlu0 %v576_v52, %s2903_s27  ;;  %v716_v49 = vsel %vm440_vm7, %v714_v46, %v715_v40  ;;  %v765_v51 = vmul.f32 %v763_v48, %v3139_v58  ;;  %v676_v52 = vsel %vm405_vm6, %v673_v22, %v675_v44  ;;  %v696_v53 = vrot.slane %v689_v45, 4  ;;  %s2613_s30 = sld [smem:[#allocation9 + $0xc]] }
 0x106   : > { %539 = vrot.lane.b32.xlu1 %v536_v55, %s2903_s27  ;;  %v735_v55 = vrot.slane %v729_v47, 6  ;;  %v764_v56 = vmul.f32 %v763_v48, %v3120_v42  ;;  %v786_v61 = vmul.f32 %v784_v57, %v3139_v58  ;;  %v785_v2 = vmul.f32 %v784_v57, %v3120_v42 }
 0x107   : > { %v323_v62 = vpop.permute.xlu0 %322  ;;  %v331_v63 = vpop.permute.xlu1 %330  ;;  %v771_v60 = vrot.slane %v765_v51, 1  ;;  %v826_v13 = vstv %s2602_s15  ;;  %v787_v19 = vmul.f32 %v784_v57, %v3150_v4  ;;  %v847_v22 = vstv %s2603_s20  ;;  %s2614_s15 = sld [smem:[#allocation9 + $0x13]] }
 0x108   : > { %325 = vst.msk [vmem:[#allocation3 + $0xf] sm:$0x1] %vm221_vm3, %v323_v62  ;;  %333 = vst.msk [vmem:[#allocation3 + $0x10] sm:$0x1] %vm221_vm3, %v331_v63  ;;  %v737_v59 = vsel %vm458_vm8, %v735_v55, %v736_v50  ;;  %v697_v62 = vsel %vm178_vm0, %v694_v31, %v696_v53  ;;  %v717_v63 = vrot.slane %v710_v54, 5  ;;  %v770_v1 = vrot.slane %v764_v56, 1 }
 0x109   : > { %600 = vrot.lane.b32.xlu0 %v597_v0, %s2903_s27  ;;  %v731_v0 = vmul.f32 %v728_v38, %v3150_v4  ;;  %v792_v6 = vrot.slane %v786_v61, 2  ;;  %v828_v16 = vmul.f32 %v826_v13, %v3139_v58  ;;  %v849_v25 = vmul.f32 %v847_v22, %v3139_v58  ;;  %s2615_s20 = sld [smem:[#allocation9 + $0x1a]] }
 0x10a   : > { %560 = vrot.lane.b32.xlu1 %v557_v3, %s2903_s27  ;;  %v805_v3 = vstv %s2601_s4  ;;  %v772_v5 = vsel %vm369_vm4, %v770_v1, %v771_v60  ;;  %v718_v8 = vsel %vm440_vm7, %v715_v40, %v717_v63  ;;  %v794_v27 = vrot.slane %v787_v19, 2  ;;  %s3356_s4 = sld [smem:[#allocation9 + $0x5]] }
 0x10b   : > { %v347_v10 = vpop.permute.xlu1 %346  ;;  %v339_v11 = vpop.permute.xlu0 %338  ;;  %v807_v7 = vmul.f32 %v805_v3, %v3139_v58  ;;  %v738_v9 = vrot.slane %v731_v0, 6  ;;  %v808_v28 = vmul.f32 %v805_v3, %v3150_v4  ;;  %v868_v31 = vstv %s2604_s7  ;;  %s2616_s7 = sld [smem:[#allocation9 + $0x21]] }
 0x10c   : > { %349 = vst.msk [vmem:[#allocation3 + $0x12] sm:$0x1] %vm221_vm3, %v347_v10  ;;  %341 = vst.msk [vmem:[#allocation3 + $0x11] sm:$0x1] %vm221_vm3, %v339_v11  ;;  %v766_v10 = vmul.f32 %v763_v48, %v3150_v4  ;;  %v791_v11 = vrot.slane %v785_v2, 2  ;;  %v870_v34 = vmul.f32 %v868_v31, %v3139_v58  ;;  %v795_v35 = vsel %vm387_vm5, %v792_v6, %v794_v27 }
 0x10d   : > { %635 = vrot.lane.b32.xlu0 %v632_v12, %s2904_s3  ;;  %v806_v12 = vmul.f32 %v805_v3, %v3120_v42  ;;  %v739_v17 = vsel %vm458_vm8, %v736_v50, %v738_v9  ;;  %v815_v36 = vrot.slane %v808_v28, 3  ;;  %v829_v37 = vmul.f32 %v826_v13, %v3150_v4 }
 0x10e   : > { %581 = vrot.lane.b32.xlu1 %v578_v15, %s2903_s27  ;;  %v793_v14 = vsel %vm387_vm5, %v791_v11, %v792_v6  ;;  %v813_v15 = vrot.slane %v807_v7, 3  ;;  %v773_v18 = vrot.slane %v766_v10, 1  ;;  %v876_v41 = vrot.slane %v870_v34, 6 }
 0x10f   : > { %v812_v20 = vrot.slane %v806_v12, 3  ;;  %v836_v44 = vrot.slane %v829_v37, 4  ;;  %v850_v45 = vmul.f32 %v847_v22, %v3150_v4  ;;  %v903_v47 = vstv %s2606_s14  ;;  %s2907_s14 = smov 123  }
 0x110   : > { %v774_v26 = vsel %vm369_vm4, %v771_v60, %v773_v18  ;;  %v905_v50 = vmul.f32 %v903_v47, %v3139_v58  ;;  %v871_v53 = vmul.f32 %v868_v31, %v3150_v4  ;;  %v904_v54 = vmul.f32 %v903_v47, %v3120_v42 }
 0x111   : > { %656 = vrot.lane.b32.xlu0 %v653_v21, %s2904_s3  ;;  %v827_v21 = vmul.f32 %v826_v13, %v3120_v42  ;;  %v814_v23 = vsel %vm405_vm6, %v812_v20, %v813_v15  ;;  %v924_v56 = vstv %s2607_s18  ;;  %v945_v0 = vstv %s2608_s22  ;;  %s2618_s18 = sld [smem:[#allocation9 + $0x2f]] }
 0x112   : > { %602 = vrot.lane.b32.xlu1 %v599_v24, %s2903_s27  ;;  %v834_v24 = vrot.slane %v828_v16, 4  ;;  %v911_v57 = vrot.slane %v905_v50, 1  ;;  %v878_v61 = vrot.slane %v871_v53, 6  ;;  %v925_v63 = vmul.f32 %v924_v56, %v3120_v42  ;;  %s2620_s22 = sld [smem:[#allocation9 + $0xd]] }
 0x113   : > { %v833_v29 = vrot.slane %v827_v21, 4  ;;  %v947_v3 = vmul.f32 %v945_v0, %v3139_v58  ;;  %v906_v6 = vmul.f32 %v903_v47, %v3150_v4  ;;  %v966_v9 = vstv %s2609_s23  ;;  %s3417_s23 = sld [smem:[#allocation9 + $0x6]] }
 0x114   : > { %v837_v51 = vsel %vm178_vm0, %v834_v24, %v836_v44  ;;  %v931_v7 = vrot.slane %v925_v63, 2  ;;  %v968_v13 = vmul.f32 %v966_v9, %v3139_v58  ;;  %v987_v18 = vstv %s2610_s25  ;;  %s2621_s25 = sld [smem:[#allocation9 + $0x14]] }
 0x115   : > { %677 = vrot.lane.b32.xlu0 %v674_v30, %s2904_s3  ;;  %v848_v30 = vmul.f32 %v847_v22, %v3120_v42  ;;  %v835_v32 = vsel %vm178_vm0, %v833_v29, %v834_v24  ;;  %v953_v12 = vrot.slane %v947_v3, 3  ;;  %v989_v21 = vmul.f32 %v987_v18, %v3139_v58 }
 0x116   : > { %637 = vrot.lane.b32.xlu1 %v634_v33, %s2904_s3  ;;  %v855_v33 = vrot.slane %v849_v25, 5  ;;  %v974_v20 = vrot.slane %v968_v13, 4  ;;  %v948_v24 = vmul.f32 %v945_v0, %v3150_v4  ;;  %v1008_v27 = vstv %s2611_s26  ;;  %s2622_s26 = sld [smem:[#allocation9 + $0x1b]] }
 0x117   : > { %v854_v38 = vrot.slane %v848_v30, 5  ;;  %v995_v29 = vrot.slane %v989_v21, 5  ;;  %v1010_v30 = vmul.f32 %v1008_v27, %v3139_v58  ;;  %v1064_v53 = vstv %s2614_s15  ;;  %s2908_s15 = smov 122  }
 0x118   : > { %v1067_v13 = vmul.f32 %v1064_v53, %v3150_v4 }
 0x119   : > { %698 = vrot.lane.b32.xlu0 %v695_v39, %s2904_s3  ;;  %v869_v39 = vmul.f32 %v868_v31, %v3120_v42  ;;  %v856_v40 = vsel %vm440_vm7, %v854_v38, %v855_v33  ;;  %v1016_v37 = vrot.slane %v1010_v30, 6 }
 0x11a   : > { %658 = vrot.lane.b32.xlu1 %v655_v43, %s2904_s3  ;;  %v816_v43 = vsel %vm405_vm6, %v813_v15, %v815_v36  ;;  %v927_v15 = vmul.f32 %v924_v56, %v3150_v4 }
 0x11b   : > { %v875_v46 = vrot.slane %v869_v39, 6 }
 0x11d   : > { %719 = vrot.lane.b32.xlu0 %v716_v49, %s2904_s3  ;;  %v877_v48 = vsel %vm458_vm8, %v875_v46, %v876_v41  ;;  %v889_v49 = vstv %s3307_s17  ;;  %s2617_s17 = sld [smem:[#allocation9 + $0x28]] }
 0x11e   : > { %679 = vrot.lane.b32.xlu1 %v676_v52, %s2904_s3  ;;  %v857_v52 = vrot.slane %v850_v45, 5  ;;  %v890_v55 = vmul.f32 %v889_v49, %v3120_v42  ;;  %v891_v11 = vmul.f32 %v889_v49, %v3139_v58  ;;  %v1029_v45 = vstv %s3356_s4  ;;  %s3456_s4 = sld [smem:[#allocation9]] }
 0x11f   : > { %v1011_v49 = vmul.f32 %v1008_v27, %v3150_v4 }
 0x120   : > { %v858_v60 = vsel %vm440_vm7, %v855_v33, %v857_v52  ;;  %v969_v33 = vmul.f32 %v966_v9, %v3150_v4  ;;  %v1030_v52 = vmul.f32 %v1029_v45, %v3120_v42 }
 0x121   : > { %740 = vrot.lane.b32.xlu0 %v737_v59, %s2904_s3  ;;  %v926_v59 = vmul.f32 %v924_v56, %v3139_v58 }
 0x122   : > { %700 = vrot.lane.b32.xlu1 %v697_v62, %s2904_s3  ;;  %v910_v62 = vrot.slane %v904_v54, 1  ;;  %v976_v39 = vrot.slane %v969_v33, 4 }
 0x123   : > { %v932_v2 = vrot.slane %v926_v59, 2 }
 0x124   : > { %v912_v1 = vsel %vm369_vm4, %v910_v62, %v911_v57  ;;  %v977_v47 = vsel %vm178_vm0, %v974_v20, %v976_v39 }
 0x125   : > { %775 = vrot.lane.b32.xlu0 %v772_v5, %s2905_s8  ;;  %v879_v5 = vsel %vm458_vm8, %v876_v41, %v878_v61  ;;  %v933_v10 = vsel %vm387_vm5, %v931_v7, %v932_v2  ;;  %v1085_v61 = vstv %s2615_s20  ;;  %v1106_v7 = vstv %s2616_s7  ;;  %s3460_s20 = sld [smem:[#allocation9 + $0x62]] }
 0x126   : > { %721 = vrot.lane.b32.xlu1 %v718_v8, %s2904_s3  ;;  %v946_v8 = vmul.f32 %v945_v0, %v3120_v42  ;;  %v1087_v0 = vmul.f32 %v1085_v61, %v3139_v58  ;;  %s3466_s7 = sld [smem:[#allocation9 + $0x29]] }
 0x128   : > { %v952_v16 = vrot.slane %v946_v8, 3 }
 0x129   : > { %796 = vrot.lane.b32.xlu0 %v793_v14, %s2905_s8  ;;  %v913_v14 = vrot.slane %v906_v6, 1  ;;  %v1086_v6 = vmul.f32 %v1085_v61, %v3120_v42 }
 0x12a   : > { %742 = vrot.lane.b32.xlu1 %v739_v17, %s2904_s3  ;;  %v967_v17 = vmul.f32 %v966_v9, %v3120_v42  ;;  %v954_v19 = vsel %vm405_vm6, %v952_v16, %v953_v12  ;;  %v1031_v9 = vmul.f32 %v1029_v45, %v3139_v58 }
 0x12b   : > { %v914_v22 = vsel %vm369_vm4, %v911_v57, %v913_v14  ;;  %v1018_v57 = vrot.slane %v1011_v49, 6  ;;  %v1092_v14 = vrot.slane %v1086_v6, 3 }
 0x12c   : > { %v973_v25 = vrot.slane %v967_v17, 4  ;;  %v1127_v17 = vstv %s2617_s17  ;;  %s3468_s17 = sld [smem:[#allocation9 + $0x7]] }
 0x12d   : > { %817 = vrot.lane.b32.xlu0 %v814_v23, %s2905_s8  ;;  %v934_v23 = vrot.slane %v927_v15, 2  ;;  %v1107_v15 = vmul.f32 %v1106_v7, %v3120_v42  ;;  %v1129_v21 = vmul.f32 %v1127_v17, %v3139_v58  ;;  %v1130_v45 = vmul.f32 %v1127_v17, %v3150_v4 }
 0x12e   : > { %777 = vrot.lane.b32.xlu1 %v774_v26, %s2905_s8  ;;  %v988_v26 = vmul.f32 %v987_v18, %v3120_v42  ;;  %v975_v28 = vsel %vm178_vm0, %v973_v25, %v974_v20 }
 0x12f   : > { %v935_v31 = vsel %vm387_vm5, %v932_v2, %v934_v23  ;;  %v1019_v2 = vsel %vm458_vm8, %v1016_v37, %v1018_v57  ;;  %v1074_v23 = vrot.slane %v1067_v13, 2  ;;  %v1113_v25 = vrot.slane %v1107_v15, 4 }
 0x130   : > { %v994_v34 = vrot.slane %v988_v26, 5  ;;  %v1128_v26 = vmul.f32 %v1127_v17, %v3120_v42 }
 0x131   : > { %838 = vrot.lane.b32.xlu0 %v835_v32, %s2905_s8  ;;  %v955_v32 = vrot.slane %v948_v24, 3  ;;  %v1088_v24 = vmul.f32 %v1085_v61, %v3150_v4  ;;  %v1204_v61 = vstv %s2621_s25  ;;  %s3490_s25 = sld [smem:[#allocation9 + $0x1c]] }
 0x132   : > { %798 = vrot.lane.b32.xlu1 %v795_v35, %s2905_s8  ;;  %v1009_v35 = vmul.f32 %v1008_v27, %v3120_v42  ;;  %v996_v36 = vsel %vm440_vm7, %v994_v34, %v995_v29  ;;  %v1205_v6 = vmul.f32 %v1204_v61, %v3120_v42 }
 0x133   : > { %v956_v38 = vsel %vm405_vm6, %v953_v12, %v955_v32  ;;  %v1095_v34 = vrot.slane %v1088_v24, 3 }
 0x134   : > { %v1015_v41 = vrot.slane %v1009_v35, 6  ;;  %v1109_v35 = vmul.f32 %v1106_v7, %v3150_v4  ;;  %v1211_v15 = vrot.slane %v1205_v6, 2 }
 0x135   : > { %859 = vrot.lane.b32.xlu0 %v856_v40, %s2905_s8  ;;  %v990_v40 = vmul.f32 %v987_v18, %v3150_v4 }
 0x136   : > { %819 = vrot.lane.b32.xlu1 %v816_v43, %s2905_s8  ;;  %v1043_v43 = vstv %s2613_s30  ;;  %v1017_v44 = vsel %vm458_vm8, %v1015_v41, %v1016_v37  ;;  %s2623_s30 = sld [smem:[#allocation9 + $0x22]] }
 0x137   : > { %v1045_v46 = vmul.f32 %v1043_v43, %v3139_v58  ;;  %v1044_v50 = vmul.f32 %v1043_v43, %v3120_v42  ;;  %v1046_v3 = vmul.f32 %v1043_v43, %v3150_v4 }
 0x139   : > { %880 = vrot.lane.b32.xlu0 %v877_v48, %s2905_s8  ;;  %v997_v48 = vrot.slane %v990_v40, 5  ;;  %v1051_v54 = vrot.slane %v1045_v46, 1  ;;  %v1050_v59 = vrot.slane %v1044_v50, 1  ;;  %v1053_v12 = vrot.slane %v1046_v3, 1 }
 0x13a   : > { %840 = vrot.lane.b32.xlu1 %v837_v51, %s2905_s8 }
 0x13b   : > { %v998_v56 = vsel %vm440_vm7, %v995_v29, %v997_v48  ;;  %v1052_v62 = vsel %vm369_vm4, %v1050_v59, %v1051_v54  ;;  %v1183_v48 = vstv %s2620_s22  ;;  %s3482_s22 = sld [smem:[#allocation9 + $0x15]] }
 0x13c   : > { %v1184_v57 = vmul.f32 %v1183_v48, %v3120_v42 }
 0x13d   : > { %894 = vrot.lane.b32.xlu0 %v890_v55, %s2906_s24  ;;  %v1066_v55 = vmul.f32 %v1064_v53, %v3139_v58 }
 0x13e   : > { %861 = vrot.lane.b32.xlu1 %v858_v60, %s2905_s8  ;;  %v1065_v60 = vmul.f32 %v1064_v53, %v3120_v42  ;;  %v3440_v53 = vmul.f32 %v1183_v48, %v3139_v58 }
 0x13f   : > { %v1072_v63 = vrot.slane %v1066_v55, 2  ;;  %v1137_v55 = vrot.slane %v1130_v45, 5  ;;  %v362_v45 = vstv %s3468_s17  ;;  %s3557_s17 = sld [smem:[#allocation9 + $0x40]] }
 0x141   : > { %915 = vrot.lane.b32.xlu0 %v912_v1, %s2906_s24  ;;  %v1075_v33 = vsel %vm387_vm5, %v1072_v63, %v1074_v23 }
 0x142   : > { %882 = vrot.lane.b32.xlu1 %v879_v5, %s2905_s8  ;;  %v1071_v5 = vrot.slane %v1065_v60, 2 }
 0x144   : > { %v1073_v8 = vsel %vm387_vm5, %v1071_v5, %v1072_v63  ;;  %v1191_v63 = vrot.slane %v3440_v53, 1  ;;  %v1190_v5 = vrot.slane %v1184_v57, 1 }
 0x145   : > { %936 = vrot.lane.b32.xlu0 %v933_v10, %s2906_s24  ;;  %v1093_v10 = vrot.slane %v1087_v0, 3  ;;  %v3454_v0 = vmul.f32 %v1204_v61, %v3139_v58 }
 0x146   : > { %896 = vrot.lane.b32.xlu1 %v891_v11, %s2906_s24  ;;  %v1108_v11 = vmul.f32 %v1106_v7, %v3139_v58 }
 0x147   : > { %v1096_v43 = vsel %vm405_vm6, %v1093_v10, %v1095_v34  ;;  %v4836_v34 = vstv %s3456_s4 }
 0x148   : > { %v1114_v20 = vrot.slane %v1108_v11, 4  ;;  %v1212_v11 = vrot.slane %v3454_v0, 2 }
 0x149   : > { %957 = vrot.lane.b32.xlu0 %v954_v19, %s2906_s24  ;;  %v1094_v19 = vsel %vm405_vm6, %v1092_v14, %v1093_v10  ;;  %v1192_v10 = vsel %vm369_vm4, %v1190_v5, %v1191_v63  ;;  %v1186_v14 = vmul.f32 %v1183_v48, %v3150_v4 }
 0x14a   : > { %917 = vrot.lane.b32.xlu1 %v914_v22, %s2906_s24  ;;  %v1054_v22 = vsel %vm369_vm4, %v1051_v54, %v1053_v12  ;;  %v1115_v30 = vsel %vm178_vm0, %v1113_v25, %v1114_v20 }
 0x14d   : > { %978 = vrot.lane.b32.xlu0 %v975_v28, %s2906_s24  ;;  %v1148_v28 = vstv %s2618_s18  ;;  %s3477_s18 = sld [smem:[#allocation9 + $0xe]] }
 0x14e   : > { %938 = vrot.lane.b32.xlu1 %v935_v31, %s2906_s24  ;;  %v1135_v31 = vrot.slane %v1129_v21, 5  ;;  %v1150_v32 = vmul.f32 %v1148_v28, %v3139_v58  ;;  %v1149_v37 = vmul.f32 %v1148_v28, %v3120_v42 }
 0x150   : > { %v1156_v41 = vrot.slane %v1150_v32, 6  ;;  %v1155_v46 = vrot.slane %v1149_v37, 6 }
 0x151   : > { %999 = vrot.lane.b32.xlu0 %v996_v36, %s2906_s24  ;;  %v1134_v36 = vrot.slane %v1128_v26, 5  ;;  %v1193_v26 = vrot.slane %v1186_v14, 1 }
 0x152   : > { %959 = vrot.lane.b32.xlu1 %v956_v38, %s2906_s24  ;;  %v1157_v50 = vsel %vm458_vm8, %v1155_v46, %v1156_v41 }
 0x153   : > { %v1136_v40 = vsel %vm440_vm7, %v1134_v36, %v1135_v31  ;;  %v3529_v46 = vstv %s3477_s18  ;;  %s3604_s18 = sld [smem:[#allocation9 + $0x47]] }
 0x154   : > { %v3376_v51 = vpop.permute.xlu0 %474 }
 0x155   : > { %1020 = vrot.lane.b32.xlu0 %v1017_v44, %s2906_s24  ;;  %v1116_v44 = vrot.slane %v1109_v35, 4 }
 0x156   : > { %980 = vrot.lane.b32.xlu1 %v977_v47, %s2906_s24 }
 0x157   : > { %v1117_v54 = vsel %vm178_vm0, %v1114_v20, %v1116_v44  ;;  %v1246_v20 = vstv %s2623_s30  ;;  %s3504_s30 = sld [smem:[#allocation9 + $0x2a]] }
 0x158   : > { %v3386_v1 = vpop.permute.xlu0 %614  ;;  %v3498_v25 = vmul.f32 %v1246_v20, %v3139_v58 }
 0x159   : > { %1034 = vrot.lane.b32.xlu0 %v1030_v52, %s2907_s14  ;;  %v1169_v52 = vstv %s3417_s23  ;;  %s3488_s23 = sld [smem:[#allocation9 + $0x30]] }
 0x15a   : > { %1001 = vrot.lane.b32.xlu1 %v998_v56, %s2906_s24  ;;  %v1151_v56 = vmul.f32 %v1148_v28, %v3150_v4  ;;  %v1170_v60 = vmul.f32 %v1169_v52, %v3120_v42  ;;  %v1171_v23 = vmul.f32 %v1169_v52, %v3139_v58  ;;  %v1207_v28 = vmul.f32 %v1204_v61, %v3150_v4 }
 0x15b   : > { %v1254_v37 = vrot.slane %v3498_v25, 4 }
 0x15c   : > { %v3400_v16 = vpop.permute.xlu0 %754  ;;  %v1158_v3 = vrot.slane %v1151_v56, 6 }
 0x15d   : > { %1055 = vrot.lane.b32.xlu0 %v1052_v62, %s2907_s14  ;;  %4851 = vst [vmem:[#allocation14_spill] sm:$0xff] %v3400_v16 }
 0x15e   : > { %1022 = vrot.lane.b32.xlu1 %v1019_v2, %s2906_s24  ;;  %v1138_v2 = vsel %vm440_vm7, %v1135_v31, %v1137_v55  ;;  %v1159_v13 = vsel %vm458_vm8, %v1156_v41, %v1158_v3  ;;  %v1247_v31 = vmul.f32 %v1246_v20, %v3120_v42  ;;  %v1194_v41 = vsel %vm369_vm4, %v1191_v63, %v1193_v26  ;;  %v3582_v26 = vld [vmem:[#allocation2 + $0x8] sm:$0xff] }
 0x15f   : > { %v3538_v55 = vstv %s3482_s22  ;;  %v1288_v57 = vstv %s3488_s23  ;;  %s3683_s22 = sld [smem:[#allocation9 + $0x55]] }
 0x160   : > { %v1253_v48 = vrot.slane %v1247_v31, 4  ;;  %s3805_s23 = sld [smem:[#allocation9 + $0x33]] }
 0x161   : > { %1076 = vrot.lane.b32.xlu0 %v1073_v8, %s2907_s14  ;;  %v1225_v8 = vstv %s2622_s26  ;;  %s3500_s26 = sld [smem:[#allocation9 + $0x23]] }
 0x162   : > { %1036 = vrot.lane.b32.xlu1 %v1031_v9, %s2907_s14  ;;  %v3475_v12 = vmul.f32 %v1225_v8, %v3139_v58  ;;  %v1226_v17 = vmul.f32 %v1225_v8, %v3120_v42  ;;  %v4833_v42 = vstv %s3460_s20  ;;  %v1228_v44 = vmul.f32 %v1225_v8, %v3150_v4 }
 0x163   : > { %v1255_v63 = vsel %vm178_vm0, %v1253_v48, %v1254_v37  ;;  %v1249_v8 = vmul.f32 %v1246_v20, %v3150_v4  ;;  %v3578_v4 = vld [vmem:[#allocation3] sm:$0xff]  ;;  %v3580_v20 = vld [vmem:[#allocation3 + $0x8] sm:$0xff] }
 0x164   : > { %v3402_v18 = vpop.permute.xlu1 %476  ;;  %v1233_v24 = vrot.slane %v3475_v12, 3  ;;  %v1235_v6 = vrot.slane %v1228_v44, 3 }
 0x165   : > { %1097 = vrot.lane.b32.xlu0 %v1094_v19, %s2907_s14  ;;  %v1256_v48 = vrot.slane %v1249_v8, 4 }
 0x166   : > { %1057 = vrot.lane.b32.xlu1 %v1054_v22, %s2907_s14  ;;  %v1213_v22 = vsel %vm387_vm5, %v1211_v15, %v1212_v11  ;;  %v1236_v44 = vsel %vm405_vm6, %v1233_v24, %v1235_v6 }
 0x167   : > { %v3411_v27 = vpop.permute.xlu0 %495 }
 0x168   : > { %v3413_v29 = vpop.permute.xlu1 %616 }
 0x169   : > { %1118 = vrot.lane.b32.xlu0 %v1115_v30, %s2907_s14  ;;  %v1232_v30 = vrot.slane %v1226_v17, 3 }
 0x16a   : > { %1078 = vrot.lane.b32.xlu1 %v1075_v33, %s2907_s14  ;;  %v1267_v33 = vstv %s3466_s7  ;;  %s3543_s7 = sld [smem:[#allocation9 + $0x32]] }
 0x16b   : > { %v3424_v38 = vpop.permute.xlu0 %516  ;;  %v1234_v36 = vsel %vm405_vm6, %v1232_v30, %v1233_v24 }
 0x16c   : > { %v3426_v39 = vpop.permute.xlu1 %756 }
 0x16d   : > { %4852 = vst [vmem:[#allocation15_spill] sm:$0xff] %v3426_v39  ;;  %1139 = vrot.lane.b32.xlu0 %v1136_v40, %s2907_s14  ;;  %v3519_v40 = vmul.f32 %v1267_v33, %v3139_v58 }
 0x16e   : > { %1099 = vrot.lane.b32.xlu1 %v1096_v43, %s2907_s14  ;;  %v1214_v43 = vrot.slane %v1207_v28, 2  ;;  %v3586_v28 = vmul.f32 %v3582_v26, %v3529_v46 }
 0x16f   : > { %v3433_v47 = vpop.permute.xlu0 %537  ;;  %v4835_v0 = vrot.slane %v3519_v40, 5 }
 0x170   : > { %v3435_v49 = vpop.permute.xlu1 %497  ;;  %v1215_v5 = vsel %vm387_vm5, %v1212_v11, %v1214_v43  ;;  %v4855_v25 = vstv %s3543_s7 }
 0x171   : > { %1160 = vrot.lane.b32.xlu0 %v1157_v50, %s2907_s14  ;;  %v2773_v50 = vld [vmem:[#allocation2] sm:$0xff] }
 0x172   : > { %1120 = vrot.lane.b32.xlu1 %v1117_v54, %s2907_s14  ;;  %v1268_v52 = vmul.f32 %v2773_v50, %v1267_v33  ;;  %v357_v53 = vmul.f32 %v2773_v50, %v4836_v34  ;;  %v3535_v54 = vmul.f32 %v362_v45, %v3139_v58  ;;  %v363_v3 = vmul.f32 %v2773_v50, %v362_v45 }
 0x173   : > { %v3447_v59 = vpop.permute.xlu0 %558  ;;  %v3574_v11 = vmul.f32 %v2773_v50, %v3538_v55 }
 0x174   : > { %v3450_v62 = vpop.permute.xlu1 %518  ;;  %v1274_v14 = vrot.slane %v1268_v52, 5  ;;  %v359_v15 = vadd.f32 %v357_v53, %v4833_v42  ;;  %v4834_v17 = vrot.slane %v3535_v54, 1  ;;  %v370_v43 = vrot.slane %v363_v3, 1  ;;  %v3601_v52 = vld [vmem:[#allocation2 + $0x10] sm:$0x3f] }
 0x175   : > { %1174 = vrot.lane.b32.xlu0 %v1170_v60, %s2908_s15  ;;  %v3546_v60 = vstv %s3490_s25  ;;  %v1270_v53 = vmul.f32 %v3601_v52, %v1267_v33  ;;  %v3619_v33 = vmul.f32 %v3582_v26, %v3538_v55  ;;  %v1291_v34 = vmul.f32 %v3601_v52, %v1288_v57  ;;  %s3814_s25 = sld [smem:[#allocation9 + $0x41]] }
 0x176   : > { %1141 = vrot.lane.b32.xlu1 %v1138_v2, %s2907_s14  ;;  %v3555_v2 = vmul.f32 %v1288_v57, %v3139_v58  ;;  %v1289_v58 = vmul.f32 %v2773_v50, %v1288_v57  ;;  %v1276_v31 = vsel %vm440_vm7, %v1274_v14, %v4835_v0  ;;  %v372_v24 = vsel %vm369_vm4, %v370_v43, %v4834_v17 }
 0x177   : > { %v3464_v7 = vpop.permute.xlu0 %579  ;;  %v1257_v17 = vsel %vm178_vm0, %v1254_v37, %v1256_v48  ;;  %v1277_v0 = vrot.slane %v1270_v53, 5  ;;  %v406_v53 = vrot.slane %v3574_v11, 3  ;;  %v4859_v48 = vrot.slane %v3519_v40, 5  ;;  %v3685_v11 = vld [vmem:[#allocation3 + $0x10] sm:$0x3f] }
 0x178   : > { %v3470_v9 = vpop.permute.xlu1 %539  ;;  %v1295_v12 = vrot.slane %v1289_v58, 6 }
 0x179   : > { %1195 = vrot.lane.b32.xlu0 %v1192_v10, %s2908_s15  ;;  %v3563_v10 = vstv %s3500_s26  ;;  %v1278_v39 = vsel %vm440_vm7, %v4859_v48, %v1277_v0  ;;  %v383_v0 = vmul.f32 %v3601_v52, %v3529_v46  ;;  %s3838_s26 = sld [smem:[#allocation9 + $0x48]] }
 0x17a   : > { %1162 = vrot.lane.b32.xlu1 %v1159_v13, %s2907_s14  ;;  %v3566_v13 = vstv %s3504_s30  ;;  %v3610_v3 = vmul.f32 %v2773_v50, %v3563_v10  ;;  %s3862_s30 = sld [smem:[#allocation9 + $0x4f]] }
 0x17b   : > { %v3486_v19 = vpop.permute.xlu0 %600  ;;  %v3642_v42 = vmul.f32 %v2773_v50, %v3566_v13 }
 0x17c   : > { %v3492_v21 = vpop.permute.xlu1 %560 }
 0x17d   : > { %1216 = vrot.lane.b32.xlu0 %v1213_v22, %s2908_s15  ;;  %v381_v22 = vmul.f32 %v2773_v50, %v3529_v46  ;;  %v4864_v46 = vrot.slane %v3619_v33, 3 }
 0x17e   : > { %1176 = vrot.lane.b32.xlu1 %v1171_v23, %s2908_s15 }
 0x17f   : > { %v3508_v32 = vpop.permute.xlu0 %635 }
 0x180   : > { %v3512_v35 = vpop.permute.xlu1 %581 }
 0x181   : > { %1237 = vrot.lane.b32.xlu0 %v1234_v36, %s2908_s15  ;;  %v4837_v36 = vrot.slane %v3555_v2, 6 }
 0x182   : > { %1197 = vrot.lane.b32.xlu1 %v1194_v41, %s2908_s15  ;;  %v3595_v41 = vstv %s3521_s6  ;;  %s3639_s6 = sld [smem:[#allocation9 + $0x4e]] }
 0x183   : > { %v3540_v56 = vpop.permute.xlu0 %656  ;;  %v1435_v8 = vmul.f32 %v3595_v41, %v3578_v4  ;;  %v3627_v14 = vmul.f32 %v3595_v41, %v3580_v20 }
 0x184   : > { %v3548_v61 = vpop.permute.xlu1 %602 }
 0x185   : > { %1258 = vrot.lane.b32.xlu0 %v1255_v63, %s2908_s15  ;;  %v3607_v63 = vmul.f32 %v2773_v50, %v3546_v60  ;;  %v1441_v37 = vrot.slane %v1435_v8, 1  ;;  %v4858_v8 = vstv %s3456_s4  ;;  %s3727_s4 = sld [smem:[#allocation9 + $0x5c]] }
 0x186   : > { %1218 = vrot.lane.b32.xlu1 %v1215_v5, %s2908_s15  ;;  %v365_v5 = vmul.f32 %v3601_v52, %v362_v45  ;;  %v377_v45 = vadd.f32 %v372_v24, %v359_v15  ;;  %v4856_v15 = vrot.slane %v3586_v28, 2 }
 0x187   : > { %v3576_v23 = vpop.permute.xlu0 %677  ;;  %v423_v16 = vrot.slane %v3607_v63, 4 }
 0x188   : > { %v3588_v30 = vpop.permute.xlu1 %637  ;;  %v373_v43 = vrot.slane %v365_v5, 1 }
 0x189   : > { %4853 = vst [vmem:[#allocation16_spill] sm:$0xff] %v3588_v30  ;;  %1279 = vrot.lane.b32.xlu0 %v1276_v31, %s2908_s15  ;;  %v1297_v31 = vsel %vm458_vm8, %v1295_v12, %v4837_v36  ;;  %v388_v12 = vrot.slane %v381_v22, 2  ;;  %v3651_v36 = vmul.f32 %v3582_v26, %v3546_v60  ;;  %v1518_v30 = vstv %s3683_s22  ;;  %s3980_s22 = sld [smem:[#allocation9 + $0x49]] }
 0x18a   : > { %1239 = vrot.lane.b32.xlu1 %v1236_v44, %s2908_s15  ;;  %v3637_v44 = vstv %s3557_s17  ;;  %s3909_s17 = sld [smem:[#allocation9 + $0x5d]] }
 0x18b   : > { %v3621_v6 = vpop.permute.xlu0 %698  ;;  %v1456_v57 = vmul.f32 %v3637_v44, %v3578_v4  ;;  %v390_v22 = vsel %vm387_vm5, %v388_v12, %v4856_v15  ;;  %v3671_v24 = vmul.f32 %v3637_v44, %v3580_v20  ;;  %v1298_v12 = vrot.slane %v1291_v34, 6 }
 0x18c   : > { %v3630_v58 = vpop.permute.xlu1 %658  ;;  %v3681_v15 = vstv %s3604_s18  ;;  %v395_v5 = vadd.f32 %v390_v22, %v377_v45  ;;  %v4860_v34 = vrot.slane %v3535_v54, 1  ;;  %v4862_v45 = vrot.slane %v3627_v14, 1  ;;  %s3951_s18 = sld [smem:[#allocation9 + $0x34]] }
 0x18d   : > { %4854 = vst [vmem:[#allocation17_spill] sm:$0xff] %v3630_v58  ;;  %1300 = vrot.lane.b32.xlu0 %v1297_v31, %s2908_s15  ;;  %v1421_v31 = vmul.f32 %v4855_v25, %v3578_v4  ;;  %v358_v25 = vmul.f32 %v3582_v26, %v4858_v8  ;;  %v1462_v22 = vrot.slane %v1456_v57, 2  ;;  %v3711_v54 = vmul.f32 %v3681_v15, %v3580_v20 }
 0x18e   : > { %1260 = vrot.lane.b32.xlu1 %v1257_v17, %s2908_s15  ;;  %v374_v40 = vsel %vm369_vm4, %v4860_v34, %v373_v43  ;;  %v1443_v63 = vsel %vm369_vm4, %v1441_v37, %v4862_v45  ;;  %v3714_v43 = vstv %s3639_s6  ;;  %v408_v34 = vsel %vm405_vm6, %v406_v53, %v4864_v46  ;;  %s3957_s6 = sld [smem:[#allocation9 + $0x42]] }
 0x18f   : > { %v3654_v50 = vpop.permute.xlu0 %719  ;;  %v4865_v58 = vstv %s3460_s20  ;;  %v4866_v57 = vrot.slane %v3555_v2, 6  ;;  %v391_v53 = vrot.slane %v383_v0, 2  ;;  %v4838_v0 = vrot.slane %v3711_v54, 3  ;;  %s3774_s20 = sld [smem:[#allocation9 + $0x3a]] }
 0x190   : > { %v3667_v17 = vpop.permute.xlu1 %679  ;;  %v360_v37 = vadd.f32 %v358_v25, %v4865_v58  ;;  %v401_v58 = vmul.f32 %v3601_v52, %v3538_v55 }
 0x191   : > { %4857 = vst [vmem:[#allocation18_spill] sm:$0xff] %v3667_v17  ;;  %1425 = vrot.lane.b32.xlu0 %v1421_v31, %s2903_s27  ;;  %v3691_v31 = vmul.f32 %v3582_v26, %v3563_v10  ;;  %v1299_v45 = vsel %vm458_vm8, %v4866_v57, %v1298_v12  ;;  %v1437_v17 = vmul.f32 %v3595_v41, %v3685_v11  ;;  %v4868_v12 = vrot.slane %v3671_v24, 2 }
 0x192   : > { %1281 = vrot.lane.b32.xlu1 %v1278_v39, %s2908_s15  ;;  %v1477_v39 = vmul.f32 %v3681_v15, %v3578_v4  ;;  %v378_v2 = vadd.f32 %v374_v40, %v360_v37  ;;  %v1498_v41 = vmul.f32 %v3714_v43, %v3578_v4 }
 0x193   : > { %v3699_v48 = vpop.permute.xlu0 %740  ;;  %v1464_v55 = vsel %vm387_vm5, %v1462_v22, %v4868_v12  ;;  %v1444_v57 = vrot.slane %v1437_v17, 1  ;;  %v4871_v22 = vrot.slane %v3691_v31, 5  ;;  %v409_v17 = vrot.slane %v401_v58, 3 }
 0x194   : > { %4861 = vst [vmem:[#allocation19_spill] sm:$0xff] %v3699_v48  ;;  %v3704_v8 = vpop.permute.xlu1 %700  ;;  %v441_v48 = vrot.slane %v3610_v3, 5  ;;  %v1483_v40 = vrot.slane %v1477_v39, 3  ;;  %v3763_v39 = vmul.f32 %v3582_v26, %v3566_v13  ;;  %v4873_v58 = vrot.slane %v3627_v14, 1 }
 0x195   : > { %4863 = vst [vmem:[#allocation20_spill] sm:$0xff] %v3704_v8  ;;  %1446 = vrot.lane.b32.xlu0 %v1443_v63, %s2903_s27  ;;  %v413_v8 = vadd.f32 %v408_v34, %v395_v5  ;;  %v3740_v5 = vmul.f32 %v3714_v43, %v3580_v20  ;;  %v4869_v63 = vstv %s3543_s7  ;;  %v4870_v34 = vrot.slane %v3651_v36, 4  ;;  %s3886_s7 = sld [smem:[#allocation9 + $0x56]] }
 0x196   : > { %1302 = vrot.lane.b32.xlu1 %v1299_v45, %s2908_s15  ;;  %v1422_v46 = vmul.f32 %v4869_v63, %v3580_v20  ;;  %v1458_v45 = vmul.f32 %v3637_v44, %v3685_v11  ;;  %v443_v12 = vsel %vm440_vm7, %v441_v48, %v4871_v22  ;;  %v419_v63 = vmul.f32 %v3601_v52, %v3546_v60 }
 0x197   : > { %v3734_v25 = vpop.permute.xlu0 %775  ;;  %v425_v37 = vsel %vm178_vm0, %v423_v16, %v4870_v34  ;;  %v4872_v16 = vrot.slane %v3586_v28, 2  ;;  %v1505_v48 = vrot.slane %v3740_v5, 4  ;;  %v1485_v60 = vsel %vm405_vm6, %v1483_v40, %v4838_v0 }
 0x198   : > { %4867 = vst [vmem:[#allocation21_spill] sm:$0xff] %v3734_v25  ;;  %v3742_v3 = vpop.permute.xlu1 %721  ;;  %v430_v25 = vadd.f32 %v425_v37, %v413_v8  ;;  %v1519_v28 = vmul.f32 %v1518_v30, %v3578_v4  ;;  %v1539_v37 = vstv %s3727_s4  ;;  %v460_v40 = vrot.slane %v3763_v39, 6  ;;  %s4001_s4 = sld [smem:[#allocation9 + $0x50]] }
 0x199   : > { %1467 = vrot.lane.b32.xlu0 %v1464_v55, %s2903_s27  ;;  %v392_v44 = vsel %vm387_vm5, %v4872_v16, %v391_v53  ;;  %v1504_v55 = vrot.slane %v1498_v41, 4  ;;  %v1445_v53 = vsel %vm369_vm4, %v4873_v58, %v1444_v57  ;;  %v1465_v41 = vrot.slane %v1458_v45, 2 }
 0x19a   : > { %1427 = vrot.lane.b32.xlu1 %v1422_v46, %s2903_s27  ;;  %v396_v26 = vadd.f32 %v392_v44, %v378_v2  ;;  %v3783_v46 = vmul.f32 %v1518_v30, %v3580_v20  ;;  %v1479_v2 = vmul.f32 %v3681_v15, %v3685_v11  ;;  %v448_v22 = vadd.f32 %v443_v12, %v430_v25 }
 0x19b   : > { %v3771_v8 = vpop.permute.xlu0 %796  ;;  %v459_v16 = vrot.slane %v3642_v42, 6  ;;  %v4874_v44 = vrot.slane %v3619_v33, 3  ;;  %v426_v0 = vrot.slane %v419_v63, 4  ;;  %v436_v14 = vmul.f32 %v3601_v52, %v3563_v10 }
 0x19c   : > { %v3776_v34 = vpop.permute.xlu1 %742  ;;  %v1506_v15 = vsel %vm178_vm0, %v1504_v55, %v1505_v48  ;;  %v1525_v25 = vrot.slane %v1519_v28, 5  ;;  %v1526_v33 = vrot.slane %v3783_v46, 5  ;;  %v1540_v45 = vmul.f32 %v1539_v37, %v3578_v4 }
 0x19d   : > { %1488 = vrot.lane.b32.xlu0 %v1485_v60, %s2903_s27  ;;  %v410_v60 = vsel %vm405_vm6, %v4874_v44, %v409_v17  ;;  %v3812_v12 = vmul.f32 %v1539_v37, %v3580_v20  ;;  %v4875_v63 = vrot.slane %v3671_v24, 2  ;;  %v1486_v55 = vrot.slane %v1479_v2, 3 }
 0x19e   : > { %1448 = vrot.lane.b32.xlu1 %v1445_v53, %s2903_s27  ;;  %v414_v10 = vadd.f32 %v410_v60, %v396_v26  ;;  %v1500_v28 = vmul.f32 %v3714_v43, %v3685_v11  ;;  %v461_v46 = vsel %vm458_vm8, %v459_v16, %v460_v40  ;;  %v444_v53 = vrot.slane %v436_v14, 5 }
 0x19f   : > { %v3800_v57 = vpop.permute.xlu0 %817  ;;  %v1466_v17 = vsel %vm387_vm5, %v4875_v63, %v1465_v41  ;;  %v466_v58 = vadd.f32 %v461_v46, %v448_v22  ;;  %v454_v26 = vmul.f32 %v3601_v52, %v3566_v13  ;;  %v1574_v24 = vstv %s3774_s20  ;;  %s4024_s20 = sld [smem:[#allocation9 + $0x57]] }
 0x1a0   : > { %v3807_v42 = vpop.permute.xlu1 %777  ;;  %v4876_v41 = vrot.slane %v3651_v36, 4  ;;  %v1527_v43 = vsel %vm440_vm7, %v1525_v25, %v1526_v33  ;;  %v1547_v16 = vrot.slane %v3812_v12, 6  ;;  %v4877_v13 = vrot.slane %v3711_v54, 3 }
 0x1a1   : > { %1509 = vrot.lane.b32.xlu0 %v1506_v15, %s2903_s27  ;;  %v1546_v15 = vrot.slane %v1540_v45, 6  ;;  %v1507_v52 = vrot.slane %v1500_v28, 4  ;;  %v480_v14 = vadd.f32 %v3376_v51, %v466_v58  ;;  %v1575_v25 = vmul.f32 %v1574_v24, %v3578_v4 }
 0x1a2   : > { %1469 = vrot.lane.b32.xlu1 %v1466_v17, %s2903_s27  ;;  %v427_v2 = vsel %vm178_vm0, %v4876_v41, %v426_v0  ;;  %v1487_v36 = vsel %vm405_vm6, %v4877_v13, %v1486_v55  ;;  %v1521_v0 = vmul.f32 %v1518_v30, %v3685_v11  ;;  %v3849_v45 = vmul.f32 %v1574_v24, %v3580_v20 }
 0x1a3   : > { %v3828_v44 = vpop.permute.xlu0 %838  ;;  %v431_v22 = vadd.f32 %v427_v2, %v414_v10  ;;  %v4878_v12 = vrot.slane %v3691_v31, 5  ;;  %v462_v63 = vrot.slane %v454_v26, 6  ;;  %v501_v17 = vadd.f32 %v3411_v27, %v480_v14 }
 0x1a4   : > { %v3834_v60 = vpop.permute.xlu1 %798  ;;  %v1548_v51 = vsel %vm458_vm8, %v1546_v15, %v1547_v16  ;;  %v1560_v30 = vstv %s3805_s23  ;;  %v1595_v28 = vstv %s3814_s25  ;;  %v1508_v31 = vsel %vm178_vm0, %v1505_v48, %v1507_v52  ;;  %s4034_s23 = sld [smem:[#allocation9 + $0x5e]] }
 0x1a5   : > { %1530 = vrot.lane.b32.xlu0 %v1527_v43, %s2903_s27  ;;  %v445_v10 = vsel %vm440_vm7, %v4878_v12, %v444_v53  ;;  %v1528_v58 = vrot.slane %v1521_v0, 5  ;;  %v1542_v53 = vmul.f32 %v1539_v37, %v3685_v11  ;;  %v522_v27 = vadd.f32 %v3424_v38, %v501_v17  ;;  %s4068_s25 = sld [smem:[#allocation9 + $0x35]] }
 0x1a6   : > { %1490 = vrot.lane.b32.xlu1 %v1487_v36, %s2903_s27  ;;  %v449_v46 = vadd.f32 %v445_v10, %v431_v22  ;;  %v1581_v26 = vrot.slane %v1575_v25, 1  ;;  %v1582_v41 = vrot.slane %v3849_v45, 1  ;;  %v1561_v43 = vmul.f32 %v1560_v30, %v3578_v4 }
 0x1a7   : > { %v3854_v54 = vpop.permute.xlu0 %859  ;;  %v1596_v15 = vmul.f32 %v1595_v28, %v3578_v4  ;;  %v463_v5 = vsel %vm458_vm8, %v460_v40, %v462_v63  ;;  %v543_v48 = vadd.f32 %v3433_v47, %v522_v27  ;;  %v3883_v38 = vmul.f32 %v1595_v28, %v3580_v20 }
 0x1a8   : > { %v3857_v55 = vpop.permute.xlu1 %819  ;;  %v1616_v22 = vstv %s3838_s26  ;;  %v467_v13 = vadd.f32 %v463_v5, %v449_v46  ;;  %v1529_v36 = vsel %vm440_vm7, %v1526_v33, %v1528_v58  ;;  %v1549_v52 = vrot.slane %v1542_v53, 6  ;;  %s4077_s26 = sld [smem:[#allocation9 + $0x43]] }
 0x1a9   : > { %1551 = vrot.lane.b32.xlu0 %v1548_v51, %s2903_s27  ;;  %v564_v39 = vadd.f32 %v3447_v59, %v543_v48  ;;  %v1583_v47 = vsel %vm369_vm4, %v1581_v26, %v1582_v41  ;;  %v1602_v14 = vrot.slane %v1596_v15, 2  ;;  %v1617_v25 = vmul.f32 %v1616_v22, %v3578_v4 }
 0x1aa   : > { %1511 = vrot.lane.b32.xlu1 %v1508_v31, %s2903_s27  ;;  %v481_v40 = vadd.f32 %v3402_v18, %v467_v13  ;;  %v3898_v45 = vmul.f32 %v1616_v22, %v3580_v20  ;;  %v1603_v59 = vrot.slane %v3883_v38, 2  ;;  %v1577_v10 = vmul.f32 %v1574_v24, %v3685_v11 }
 0x1ab   : > { %v3872_v2 = vpop.permute.xlu0 %880  ;;  %v585_v12 = vadd.f32 %v3464_v7, %v564_v39  ;;  %v1637_v63 = vstv %s3862_s30  ;;  %v1550_v18 = vsel %vm458_vm8, %v1547_v16, %v1549_v52  ;;  %v1562_v7 = vmul.f32 %v1560_v30, %v3580_v20  ;;  %s4106_s30 = sld [smem:[#allocation9 + $0x4a]] }
 0x1ac   : > { %v3880_v37 = vpop.permute.xlu1 %840  ;;  %v502_v17 = vadd.f32 %v3435_v49, %v481_v40  ;;  %v1623_v24 = vrot.slane %v1617_v25, 3  ;;  %v1638_v49 = vmul.f32 %v1637_v63, %v3578_v4  ;;  %v3919_v58 = vmul.f32 %v1637_v63, %v3580_v20 }
 0x1ad   : > { %1565 = vrot.lane.b32.xlu0 %v1561_v43, %s2904_s3  ;;  %v606_v51 = vadd.f32 %v3486_v19, %v585_v12  ;;  %v1604_v16 = vsel %vm387_vm5, %v1602_v14, %v1603_v59  ;;  %v1624_v19 = vrot.slane %v3898_v45, 3  ;;  %v1584_v27 = vrot.slane %v1577_v10, 1 }
 0x1ae   : > { %1532 = vrot.lane.b32.xlu1 %v1529_v36, %s2903_s27  ;;  %v523_v46 = vadd.f32 %v3450_v62, %v502_v17  ;;  %v1658_v26 = vstv %s3886_s7  ;;  %v1598_v62 = vmul.f32 %v1595_v28, %v3685_v11  ;;  %v1644_v48 = vrot.slane %v1638_v49, 4  ;;  %s4116_s7 = sld [smem:[#allocation9 + $0x51]] }
 0x1af   : > { %v3894_v0 = vpop.permute.xlu0 %894  ;;  %v620_v43 = vadd.f32 %v3386_v1, %v606_v51  ;;  %v1645_v38 = vrot.slane %v3919_v58, 4  ;;  %v1659_v13 = vmul.f32 %v1658_v26, %v3578_v4  ;;  %v1585_v28 = vsel %vm369_vm4, %v1582_v41, %v1584_v27  ;;  %v4879_v27 = vld [vmem:[#allocation16_spill] sm:$0xff] }
 0x1b0   : > { %v3901_v33 = vpop.permute.xlu1 %861  ;;  %v544_v30 = vadd.f32 %v3470_v9, %v523_v46  ;;  %v1625_v9 = vsel %vm405_vm6, %v1623_v24, %v1624_v19  ;;  %v3941_v52 = vmul.f32 %v1658_v26, %v3580_v20  ;;  %v1619_v39 = vmul.f32 %v1616_v22, %v3685_v11 }
 0x1b1   : > { %1586 = vrot.lane.b32.xlu0 %v1583_v47, %s2904_s3  ;;  %v1679_v47 = vstv %s3909_s17  ;;  %v641_v40 = vadd.f32 %v3508_v32, %v620_v43  ;;  %v1665_v25 = vrot.slane %v1659_v13, 5  ;;  %v1700_v43 = vstv %s3951_s18  ;;  %s4138_s17 = sld [smem:[#allocation9 + $0x58]] }
 0x1b2   : > { %1553 = vrot.lane.b32.xlu1 %v1550_v18, %s2903_s27  ;;  %v565_v15 = vadd.f32 %v3492_v21, %v544_v30  ;;  %v1605_v21 = vrot.slane %v1598_v62, 2  ;;  %s3947_s27 = sld [smem:[#allocation9 + $0x3b]]  ;;  %v1666_v12 = vrot.slane %v3941_v52, 5  ;;  %v1680_v32 = vmul.f32 %v1679_v47, %v3578_v4 }
 0x1b3   : > { %v3915_v31 = vpop.permute.xlu0 %915  ;;  %v662_v22 = vadd.f32 %v3540_v56, %v641_v40  ;;  %v3965_v10 = vmul.f32 %v1679_v47, %v3580_v20  ;;  %v1626_v17 = vrot.slane %v1619_v39, 3  ;;  %v1640_v18 = vmul.f32 %v1637_v63, %v3685_v11  ;;  %v4882_v40 = vld [vmem:[#allocation18_spill] sm:$0xff]  ;;  %s4170_s18 = sld [smem:[#allocation9 + $0x38]] }
 0x1b4   : > { %v3921_v53 = vpop.permute.xlu1 %882  ;;  %v586_v1 = vadd.f32 %v3512_v35, %v565_v15  ;;  %v1646_v35 = vsel %vm178_vm0, %v1644_v48, %v1645_v38  ;;  %v1686_v49 = vrot.slane %v1680_v32, 6  ;;  %v1661_v63 = vmul.f32 %v1658_v26, %v3685_v11  ;;  %v4880_v48 = vld [vmem:[#allocation19_spill] sm:$0xff] }
 0x1b5   : > { %1607 = vrot.lane.b32.xlu0 %v1604_v16, %s2904_s3  ;;  %v683_v51 = vadd.f32 %v3576_v23, %v662_v22  ;;  %v1687_v58 = vrot.slane %v3965_v10, 6  ;;  %v1627_v23 = vsel %vm405_vm6, %v1624_v19, %v1626_v17  ;;  %v1735_v15 = vstv %s3957_s6  ;;  %v4883_v10 = vld [vmem:[#allocation14_spill] sm:$0xff]  ;;  %s4192_s6 = sld [smem:[#allocation9 + $0x3f]] }
 0x1b6   : > { %1567 = vrot.lane.b32.xlu1 %v1562_v7, %s2904_s3  ;;  %v607_v41 = vadd.f32 %v3548_v61, %v586_v1  ;;  %v1606_v61 = vsel %vm387_vm5, %v1603_v59, %v1605_v21  ;;  %v1667_v59 = vsel %vm440_vm7, %v1665_v25, %v1666_v12  ;;  %v1668_v21 = vrot.slane %v1661_v63, 5 }
 0x1b7   : > { %v3932_v5 = vpop.permute.xlu0 %936  ;;  %v704_v46 = vadd.f32 %v3621_v6, %v683_v51  ;;  %v1688_v19 = vsel %vm458_vm8, %v1686_v49, %v1687_v58  ;;  %v1682_v39 = vmul.f32 %v1679_v47, %v3685_v11  ;;  %v1701_v25 = vmul.f32 %v1700_v43, %v3578_v4  ;;  %v4884_v51 = vld [vmem:[#allocation20_spill] sm:$0xff] }
 0x1b8   : > { %v3936_v36 = vpop.permute.xlu1 %896  ;;  %v621_v56 = vadd.f32 %v3413_v29, %v607_v41  ;;  %v1647_v29 = vrot.slane %v1640_v18, 4  ;;  %v1714_v16 = vstv %s3947_s27  ;;  %v1736_v22 = vmul.f32 %v1735_v15, %v3578_v4  ;;  %s4153_s27 = sld [smem:[#allocation9 + $0x5f]] }
 0x1b9   : > { %1628 = vrot.lane.b32.xlu0 %v1625_v9, %s2904_s3  ;;  %v725_v6 = vadd.f32 %v3654_v50, %v704_v46  ;;  %v3999_v26 = vmul.f32 %v1714_v16, %v3580_v20  ;;  %v4881_v50 = vld [vmem:[#allocation17_spill] sm:$0xff]  ;;  %v4014_v32 = vmul.f32 %v1735_v15, %v3580_v20  ;;  %v1756_v18 = vstv %s3980_s22  ;;  %s4210_s22 = sld [smem:[#allocation9 + $0x46]] }
 0x1ba   : > { %1588 = vrot.lane.b32.xlu1 %v1585_v28, %s2904_s3  ;;  %v642_v30 = vadd.f32 %v4879_v27, %v621_v56  ;;  %v1715_v28 = vmul.f32 %v1714_v16, %v3578_v4  ;;  %v1648_v1 = vsel %vm178_vm0, %v1645_v38, %v1647_v29  ;;  %v1669_v46 = vsel %vm440_vm7, %v1666_v12, %v1668_v21  ;;  %v4885_v27 = vld [vmem:[#allocation21_spill] sm:$0xff] }
 0x1bb   : > { %v3954_v14 = vpop.permute.xlu0 %957  ;;  %v746_v13 = vadd.f32 %v4880_v48, %v725_v6  ;;  %v1722_v47 = vrot.slane %v3999_v26, 1  ;;  %v1742_v29 = vrot.slane %v1736_v22, 2  ;;  %v1757_v63 = vmul.f32 %v1756_v18, %v3578_v4 }
 0x1bc   : > { %v3960_v45 = vpop.permute.xlu1 %917  ;;  %v663_v52 = vadd.f32 %v4881_v50, %v642_v30  ;;  %v1721_v38 = vrot.slane %v1715_v28, 1  ;;  %v4032_v6 = vmul.f32 %v1756_v18, %v3580_v20  ;;  %v1717_v26 = vmul.f32 %v1714_v16, %v3685_v11 }
 0x1bd   : > { %1649 = vrot.lane.b32.xlu0 %v1646_v35, %s2904_s3  ;;  %v1702_v16 = vmul.f32 %v1700_v43, %v3580_v20 }
 0x1be   : > { %1609 = vrot.lane.b32.xlu1 %v1606_v61, %s2904_s3  ;;  %v684_v41 = vadd.f32 %v4882_v40, %v663_v52  ;;  %v760_v61 = vadd.f32 %v4883_v10, %v746_v13  ;;  %v1723_v48 = vsel %vm369_vm4, %v1721_v38, %v1722_v47  ;;  %v1743_v13 = vrot.slane %v4014_v32, 2 }
 0x1bf   : > { %v3973_v7 = vpop.permute.xlu0 %978  ;;  %v1764_v21 = vrot.slane %v4032_v6, 3  ;;  %v1724_v22 = vrot.slane %v1717_v26, 1  ;;  %v1738_v32 = vmul.f32 %v1735_v15, %v3685_v11  ;;  %v1798_v10 = vstv %s4024_s20  ;;  %s4235_s20 = sld [smem:[#allocation9 + $0x4d]] }
 0x1c0   : > { %v3976_v24 = vpop.permute.xlu1 %938  ;;  %v705_v56 = vadd.f32 %v4884_v51, %v684_v41  ;;  %v781_v30 = vadd.f32 %v4885_v27, %v760_v61  ;;  %v4886_v41 = vld [vmem:[#allocation15_spill] sm:$0xff]  ;;  %v1759_v51 = vmul.f32 %v1756_v18, %v3685_v11 }
 0x1c1   : > { %1670 = vrot.lane.b32.xlu0 %v1667_v59, %s2904_s3  ;;  %v1689_v59 = vrot.slane %v1682_v39, 6  ;;  %v1725_v18 = vsel %vm369_vm4, %v1722_v47, %v1724_v22  ;;  %v1801_v22 = vmul.f32 %v1798_v10, %v3685_v11 }
 0x1c2   : > { %1630 = vrot.lane.b32.xlu1 %v1627_v23, %s2904_s3  ;;  %v726_v49 = vadd.f32 %v3742_v3, %v705_v56  ;;  %v802_v50 = vadd.f32 %v3771_v8, %v781_v30  ;;  %v1819_v56 = vstv %s4034_s23  ;;  %s4258_s23 = sld [smem:[#allocation9 + $0x5b]] }
 0x1c3   : > { %v3989_v62 = vpop.permute.xlu0 %999  ;;  %v1690_v28 = vsel %vm458_vm8, %v1687_v58, %v1689_v59  ;;  %v1744_v58 = vsel %vm387_vm5, %v1742_v29, %v1743_v13  ;;  %v1799_v59 = vmul.f32 %v1798_v10, %v3578_v4  ;;  %v4094_v30 = vmul.f32 %v1819_v56, %v3580_v20 }
 0x1c4   : > { %v3994_v9 = vpop.permute.xlu1 %959  ;;  %v747_v3 = vadd.f32 %v3776_v34, %v726_v49  ;;  %v823_v34 = vadd.f32 %v3800_v57, %v802_v50  ;;  %v4085_v49 = vmul.f32 %v1798_v10, %v3580_v20 }
 0x1c5   : > { %1691 = vrot.lane.b32.xlu0 %v1688_v19, %s2904_s3  ;;  %v1777_v19 = vstv %s4001_s4  ;;  %v1805_v47 = vrot.slane %v1799_v59, 5  ;;  %s4221_s4 = sld [smem:[#allocation9 + $0x31]] }
 0x1c6   : > { %1651 = vrot.lane.b32.xlu1 %v1648_v1, %s2904_s3  ;;  %v1763_v1 = vrot.slane %v1757_v63, 3  ;;  %v1778_v39 = vmul.f32 %v1777_v19, %v3578_v4  ;;  %v4058_v8 = vmul.f32 %v1777_v19, %v3580_v20  ;;  %v844_v57 = vadd.f32 %v3828_v44, %v823_v34 }
 0x1c7   : > { %v4009_v35 = vpop.permute.xlu0 %1020  ;;  %v1745_v63 = vrot.slane %v1738_v32, 2  ;;  %v1806_v50 = vrot.slane %v4085_v49, 5  ;;  %v1808_v49 = vrot.slane %v1801_v22, 5  ;;  %v4190_v22 = vstv %s4138_s17  ;;  %s4419_s17 = sld [smem:[#allocation9 + $0x59]] }
 0x1c8   : > { %v4017_v17 = vpop.permute.xlu1 %980  ;;  %v1765_v61 = vsel %vm405_vm6, %v1763_v1, %v1764_v21  ;;  %v1784_v38 = vrot.slane %v1778_v39, 4  ;;  %v865_v15 = vadd.f32 %v3854_v54, %v844_v57  ;;  %v1785_v44 = vrot.slane %v4058_v8, 4 }
 0x1c9   : > { %1705 = vrot.lane.b32.xlu0 %v1701_v25, %s2905_s8  ;;  %v761_v25 = vadd.f32 %v4886_v41, %v747_v3  ;;  %v1820_v54 = vmul.f32 %v1819_v56, %v3578_v4  ;;  %v1746_v1 = vsel %vm387_vm5, %v1743_v13, %v1745_v63  ;;  %v1875_v13 = vstv %s4077_s26  ;;  %s4322_s26 = sld [smem:[#allocation9 + $0x44]] }
 0x1ca   : > { %1672 = vrot.lane.b32.xlu1 %v1669_v46, %s2904_s3  ;;  %v886_v27 = vadd.f32 %v3872_v2, %v865_v15  ;;  %v1786_v2 = vsel %vm178_vm0, %v1784_v38, %v1785_v44  ;;  %v1876_v15 = vmul.f32 %v1875_v13, %v3578_v4  ;;  %v1809_v8 = vsel %vm440_vm7, %v1806_v50, %v1808_v49 }
 0x1cb   : > { %v4028_v23 = vpop.permute.xlu0 %1034  ;;  %v782_v29 = vadd.f32 %v3807_v42, %v761_v25  ;;  %v1766_v42 = vrot.slane %v1759_v51, 3 }
 0x1cc   : > { %v4037_v12 = vpop.permute.xlu1 %1001 }
 0x1cd   : > { %1726 = vrot.lane.b32.xlu0 %v1723_v48, %s2905_s8  ;;  %v803_v48 = vadd.f32 %v3834_v60, %v782_v29 }
 0x1ce   : > { %1693 = vrot.lane.b32.xlu1 %v1690_v28, %s2904_s3  ;;  %s4064_s3 = sld [smem:[#allocation9 + $0x3c]]  ;;  %v900_v28 = vadd.f32 %v3894_v0, %v886_v27  ;;  %v1780_v0 = vmul.f32 %v1777_v19, %v3685_v11 }
 0x1cf   : > { %v4048_v52 = vpop.permute.xlu0 %1055  ;;  %v824_v60 = vadd.f32 %v3857_v55, %v803_v48  ;;  %v1840_v55 = vstv %s4068_s25  ;;  %s4310_s25 = sld [smem:[#allocation9 + $0x36]] }
 0x1d0   : > { %v4053_v40 = vpop.permute.xlu1 %1022  ;;  %v921_v34 = vadd.f32 %v3915_v31, %v900_v28  ;;  %v1807_v31 = vsel %vm440_vm7, %v1805_v47, %v1806_v50  ;;  %v1787_v10 = vrot.slane %v1780_v0, 4  ;;  %v1917_v47 = vstv %s4116_s7  ;;  %s4385_s7 = sld [smem:[#allocation9 + $0x52]] }
 0x1d1   : > { %1747 = vrot.lane.b32.xlu0 %v1744_v58, %s2905_s8  ;;  %v1826_v58 = vrot.slane %v1820_v54, 6  ;;  %v845_v41 = vadd.f32 %v3880_v37, %v824_v60  ;;  %v1767_v37 = vsel %vm405_vm6, %v1764_v21, %v1766_v42 }
 0x1d2   : > { %1707 = vrot.lane.b32.xlu1 %v1702_v16, %s2905_s8  ;;  %v1827_v16 = vrot.slane %v4094_v30, 6  ;;  %v942_v19 = vadd.f32 %v3932_v5, %v921_v34  ;;  %v1822_v5 = vmul.f32 %v1819_v56, %v3685_v11  ;;  %v1841_v56 = vmul.f32 %v1840_v55, %v3578_v4 }
 0x1d3   : > { %v4070_v43 = vpop.permute.xlu0 %1076  ;;  %v866_v38 = vadd.f32 %v3901_v33, %v845_v41  ;;  %v4144_v33 = vmul.f32 %v1875_v13, %v3580_v20  ;;  %v1788_v54 = vsel %vm178_vm0, %v1785_v44, %v1787_v10  ;;  %v1842_v34 = vmul.f32 %v1840_v55, %v3580_v20 }
 0x1d4   : > { %v4080_v46 = vpop.permute.xlu1 %1036  ;;  %v1854_v39 = vstv %s4064_s3  ;;  %v963_v51 = vadd.f32 %v3954_v14, %v942_v19  ;;  %v1828_v21 = vsel %vm458_vm8, %v1826_v58, %v1827_v16  ;;  %v1829_v48 = vrot.slane %v1822_v5, 6  ;;  %s4272_s3 = sld [smem:[#allocation9 + $0x3d]] }
 0x1d5   : > { %1768 = vrot.lane.b32.xlu0 %v1765_v61, %s2905_s8  ;;  %v1855_v57 = vmul.f32 %v1854_v39, %v3578_v4  ;;  %v4130_v61 = vmul.f32 %v1854_v39, %v3580_v20  ;;  %v887_v59 = vadd.f32 %v3921_v53, %v866_v38  ;;  %v1896_v53 = vstv %s4106_s30  ;;  %s4352_s30 = sld [smem:[#allocation9 + $0x4b]] }
 0x1d6   : > { %1728 = vrot.lane.b32.xlu1 %v1725_v18, %s2905_s8  ;;  %v984_v14 = vadd.f32 %v3973_v7, %v963_v51  ;;  %v1857_v42 = vmul.f32 %v1854_v39, %v3685_v11  ;;  %v1882_v7 = vrot.slane %v1876_v15, 2  ;;  %v1897_v44 = vmul.f32 %v1896_v53, %v3578_v4 }
 0x1d7   : > { %v4097_v3 = vpop.permute.xlu0 %1097  ;;  %v1861_v18 = vrot.slane %v1855_v57, 1  ;;  %v1862_v63 = vrot.slane %v4130_v61, 1  ;;  %v901_v27 = vadd.f32 %v3936_v36, %v887_v59  ;;  %v1878_v58 = vmul.f32 %v1875_v13, %v3685_v11 }
 0x1d8   : > { %v4100_v26 = vpop.permute.xlu1 %1057  ;;  %v1005_v28 = vadd.f32 %v3989_v62, %v984_v14  ;;  %v1864_v50 = vrot.slane %v1857_v42, 1  ;;  %v1918_v41 = vmul.f32 %v1917_v47, %v3578_v4  ;;  %v1830_v55 = vsel %vm458_vm8, %v1827_v16, %v1829_v48 }
 0x1d9   : > { %1789 = vrot.lane.b32.xlu0 %v1786_v2, %s2905_s8  ;;  %v1883_v2 = vrot.slane %v4144_v33, 2  ;;  %v922_v36 = vadd.f32 %v3960_v45, %v901_v27  ;;  %v1863_v39 = vsel %vm369_vm4, %v1861_v18, %v1862_v63  ;;  %v1903_v57 = vrot.slane %v1897_v44, 3 }
 0x1da   : > { %1749 = vrot.lane.b32.xlu1 %v1746_v1, %s2905_s8  ;;  %v4178_v1 = vmul.f32 %v1896_v53, %v3580_v20  ;;  %v1026_v62 = vadd.f32 %v4009_v35, %v1005_v28  ;;  %v4208_v38 = vstv %s4153_s27  ;;  %v1885_v16 = vrot.slane %v1878_v58, 2  ;;  %s4462_s27 = sld [smem:[#allocation9 + $0x60]] }
 0x1db   : > { %v4119_v25 = vpop.permute.xlu0 %1118  ;;  %v943_v45 = vadd.f32 %v3976_v24, %v922_v36  ;;  %v1884_v13 = vsel %vm387_vm5, %v1882_v7, %v1883_v2  ;;  %v4201_v24 = vmul.f32 %v1917_v47, %v3580_v20  ;;  %v1865_v5 = vsel %vm369_vm4, %v1862_v63, %v1864_v50 }
 0x1dc   : > { %v4125_v32 = vpop.permute.xlu1 %1078  ;;  %v1040_v35 = vadd.f32 %v4028_v23, %v1026_v62  ;;  %v1904_v61 = vrot.slane %v4178_v1, 3  ;;  %v1924_v51 = vrot.slane %v1918_v41, 4  ;;  %v1960_v59 = vmul.f32 %v4208_v38, %v3578_v4 }
 0x1dd   : > { %1810 = vrot.lane.b32.xlu0 %v1807_v31, %s2905_s8  ;;  %v964_v19 = vadd.f32 %v3994_v9, %v943_v45  ;;  %v4219_v9 = vmul.f32 %v4190_v22, %v3580_v20  ;;  %v1925_v33 = vrot.slane %v4201_v24, 4  ;;  %v1920_v14 = vmul.f32 %v1917_v47, %v3685_v11 }
 0x1de   : > { %1770 = vrot.lane.b32.xlu1 %v1767_v37, %s2905_s8  ;;  %v1061_v23 = vadd.f32 %v4048_v52, %v1040_v35  ;;  %v1939_v37 = vmul.f32 %v4190_v22, %v3578_v4  ;;  %v1899_v52 = vmul.f32 %v1896_v53, %v3685_v11  ;;  %v1905_v49 = vsel %vm405_vm6, %v1903_v57, %v1904_v61 }
 0x1df   : > { %v4147_v6 = vpop.permute.xlu0 %1139  ;;  %v985_v10 = vadd.f32 %v4017_v17, %v964_v19  ;;  %v1886_v53 = vsel %vm387_vm5, %v1883_v2, %v1885_v16  ;;  %v4256_v28 = vstv %s4192_s6  ;;  %v1926_v7 = vsel %vm178_vm0, %v1924_v51, %v1925_v33  ;;  %v4303_v19 = vld [vmem:[#allocation3] sm:$0xff]  ;;  %s4532_s6 = sld [smem:[#allocation9 + $0x45]] }
 0x1e0   : > { %v4156_v29 = vpop.permute.xlu1 %1099  ;;  %v1082_v15 = vadd.f32 %v4070_v43, %v1061_v23  ;;  %v4241_v43 = vmul.f32 %v4208_v38, %v3580_v20  ;;  %v1945_v27 = vrot.slane %v1939_v37, 5  ;;  %v1906_v48 = vrot.slane %v1899_v52, 3  ;;  %v4313_v23 = vld [vmem:[#allocation3 + $0x8] sm:$0xff] }
 0x1e1   : > { %1831 = vrot.lane.b32.xlu0 %v1828_v21, %s2905_s8  ;;  %v4233_v21 = vstv %s4170_s18  ;;  %v1006_v17 = vadd.f32 %v4037_v12, %v985_v10  ;;  %v1966_v2 = vrot.slane %v1960_v59, 6  ;;  %v1927_v44 = vrot.slane %v1920_v14, 4  ;;  %s4522_s18 = sld [smem:[#allocation9 + $0x37]] }
 0x1e2   : > { %1791 = vrot.lane.b32.xlu1 %v1788_v54, %s2905_s8  ;;  %v1103_v18 = vadd.f32 %v4097_v3, %v1082_v15  ;;  %v1946_v54 = vrot.slane %v4219_v9, 5  ;;  %v1319_v42 = vmul.f32 %v4233_v21, %v3578_v4  ;;  %v4270_v1 = vstv %s4210_s22  ;;  %s4552_s22 = sld [smem:[#allocation9 + $0x4c]] }
 0x1e3   : > { %v4173_v60 = vpop.permute.xlu0 %1160  ;;  %v1027_v12 = vadd.f32 %v4053_v40, %v1006_v17  ;;  %v4265_v40 = vmul.f32 %v4233_v21, %v3580_v20  ;;  %v1907_v45 = vsel %vm405_vm6, %v1904_v61, %v1906_v48  ;;  %v4317_v16 = vmul.f32 %v4313_v23, %v4270_v1 }
 0x1e4   : > { %v4181_v0 = vpop.permute.xlu1 %1120  ;;  %v1124_v3 = vadd.f32 %v4119_v25, %v1103_v18  ;;  %v1325_v50 = vrot.slane %v1319_v42, 1  ;;  %v4330_v51 = vstv %s4258_s23  ;;  %v4350_v14 = vstv %s4272_s3  ;;  %s2912_s23 = smov 64   ;;  %s2913_s3 = smov 48  }
 0x1e5   : > { %1845 = vrot.lane.b32.xlu0 %v1841_v56, %s2906_s24  ;;  %v1041_v47 = vadd.f32 %v4080_v46, %v1027_v12  ;;  %v1336_v46 = vmul.f32 %v4256_v28, %v3578_v4  ;;  %v1326_v35 = vrot.slane %v4265_v40, 1  ;;  %v1404_v12 = vmul.f32 %v4303_v19, %v4330_v51 }
 0x1e6   : > { %1812 = vrot.lane.b32.xlu1 %v1809_v8, %s2905_s8  ;;  %v1967_v8 = vrot.slane %v4241_v43, 6  ;;  %v1145_v25 = vadd.f32 %v4147_v6, %v1124_v3  ;;  %v4288_v6 = vmul.f32 %v4256_v28, %v3580_v20 }
 0x1e7   : > { %v4204_v31 = vpop.permute.xlu0 %1174  ;;  %v1062_v58 = vadd.f32 %v4100_v26, %v1041_v47  ;;  %v4296_v26 = vstv %s4235_s20  ;;  %v4336_v15 = vsel %vm369_vm4, %v1325_v50, %v1326_v35  ;;  %v1410_v50 = vrot.slane %v1404_v12, 6  ;;  %s4591_s20 = sld [smem:[#allocation9 + $0x5a]] }
 0x1e8   : > { %v4213_v30 = vpop.permute.xlu1 %1141  ;;  %v1166_v41 = vadd.f32 %v4173_v60, %v1145_v25  ;;  %v1968_v20 = vsel %vm458_vm8, %v1966_v2, %v1967_v8  ;;  %v1928_v60 = vsel %vm178_vm0, %v1925_v33, %v1927_v44 }
 0x1e9   : > { %1866 = vrot.lane.b32.xlu0 %v1863_v39, %s2906_s24  ;;  %v1947_v39 = vsel %vm440_vm7, %v1945_v27, %v1946_v54  ;;  %v1360_v27 = vrot.slane %v4317_v16, 3 }
 0x1ea   : > { %1833 = vrot.lane.b32.xlu1 %v1830_v55, %s2905_s8  ;;  %s4249_s8 = sld [smem:[#allocation9 + $0x54]]  ;;  %v1353_v55 = vmul.f32 %v4270_v1, %v3578_v4  ;;  %v1180_v4 = vadd.f32 %v4204_v31, %v1166_v41  ;;  %v1370_v31 = vmul.f32 %v4303_v19, %v4296_v26  ;;  %v4383_v41 = vstv %s4322_s26  ;;  %s2915_s26 = smov 96  }
 0x1eb   : > { %v1196_v56 = vpop.permute.xlu0 %1195 }
 0x1ec   : > { %v4245_v63 = vpop.permute.xlu1 %1162  ;;  %v1201_v52 = vadd.f32 %v1196_v56, %v1180_v4  ;;  %v1359_v33 = vrot.slane %v1353_v55, 3  ;;  %v1376_v3 = vrot.slane %v1370_v31, 4 }
 0x1ed   : > { %1887 = vrot.lane.b32.xlu0 %v1884_v13, %s2906_s24  ;;  %v1083_v13 = vadd.f32 %v4125_v32, %v1062_v58  ;;  %v1342_v32 = vrot.slane %v1336_v46, 2  ;;  %v1980_v58 = vstv %s4310_s25  ;;  %s2914_s25 = smov 80  }
 0x1ee   : > { %1847 = vrot.lane.b32.xlu1 %v1842_v34, %s2906_s24  ;;  %v1312_v34 = vstv %s4221_s4  ;;  %s4571_s4 = sld [smem:[#allocation9 + $0x53]] }
 0x1ef   : > { %v1217_v36 = vpop.permute.xlu0 %1216  ;;  %v4308_v57 = vmul.f32 %v4303_v19, %v1312_v34  ;;  %v1104_v10 = vadd.f32 %v4156_v29, %v1083_v13  ;;  %v4340_v29 = vmul.f32 %v4313_v23, %v4296_v26 }
 0x1f0   : > { %v4275_v62 = vpop.permute.xlu1 %1176  ;;  %v4320_v37 = vstv %s4249_s8  ;;  %v1222_v18 = vadd.f32 %v1217_v36, %v1201_v52  ;;  %v4376_v36 = vmul.f32 %v4313_v23, %v4350_v14  ;;  %s4602_s8 = sld [smem:[#allocation9 + $0x61]] }
 0x1f1   : > { %1908 = vrot.lane.b32.xlu0 %v1905_v49, %s2906_s24  ;;  %v1125_v59 = vadd.f32 %v4181_v0, %v1104_v10  ;;  %v1387_v49 = vmul.f32 %v4303_v19, %v4320_v37  ;;  %v4347_v56 = vmul.f32 %v4313_v23, %v4320_v37  ;;  %v4359_v0 = vmul.f32 %v4313_v23, %v4330_v51 }
 0x1f2   : > { %1868 = vrot.lane.b32.xlu1 %v1865_v5, %s2906_s24  ;;  %v1343_v5 = vrot.slane %v4288_v6, 2  ;;  %v1377_v47 = vrot.slane %v4340_v29, 4  ;;  %v1981_v10 = vmul.f32 %v4303_v19, %v1980_v58 }
 0x1f3   : > { %v1238_v24 = vpop.permute.xlu0 %1237  ;;  %v1146_v48 = vadd.f32 %v4213_v30, %v1125_v59  ;;  %v1995_v30 = vmul.f32 %v4303_v19, %v4350_v14  ;;  %v1394_v46 = vrot.slane %v4347_v56, 5  ;;  %v4403_v59 = vmul.f32 %v4313_v23, %v4383_v41 }
 0x1f4   : > { %v1198_v61 = vpop.permute.xlu1 %1197  ;;  %v4366_v42 = vsel %vm387_vm5, %v1342_v32, %v1343_v5  ;;  %v1243_v2 = vadd.f32 %v1238_v24, %v1222_v18  ;;  %v4392_v24 = vld [vmem:[#allocation3 + $0x10] sm:$0x3f] }
 0x1f5   : > { %1929 = vrot.lane.b32.xlu0 %v1926_v7, %s2906_s24  ;;  %v1941_v7 = vmul.f32 %v4190_v22, %v3685_v11  ;;  %v1167_v44 = vadd.f32 %v4245_v63, %v1146_v48  ;;  %v1361_v63 = vsel %vm405_vm6, %v1359_v33, %v1360_v27  ;;  %v1962_v4 = vmul.f32 %v4392_v24, %v4208_v38 }
 0x1f6   : > { %1889 = vrot.lane.b32.xlu1 %v1886_v53, %s2906_s24  ;;  %v2001_v31 = vrot.slane %v1995_v30, 1  ;;  %v2016_v33 = vmul.f32 %v4303_v19, %v4383_v41  ;;  %v1378_v38 = vsel %vm178_vm0, %v1376_v3, %v1377_v47  ;;  %v1321_v30 = vmul.f32 %v4392_v24, %v4233_v21 }
 0x1f7   : > { %v1259_v17 = vpop.permute.xlu0 %1258  ;;  %v1181_v55 = vadd.f32 %v4275_v62, %v1167_v44  ;;  %v1948_v13 = vrot.slane %v1941_v7, 5  ;;  %v2002_v62 = vrot.slane %v4376_v36, 1  ;;  %v1969_v3 = vrot.slane %v1962_v4, 6 }
 0x1f8   : > { %v1219_v53 = vpop.permute.xlu1 %1218  ;;  %v1264_v11 = vadd.f32 %v1259_v17, %v1243_v2  ;;  %v4406_v17 = vstv %s4352_s30  ;;  %v1314_v7 = vmul.f32 %v4313_v23, %v1312_v34  ;;  %v1328_v4 = vrot.slane %v1321_v30, 1  ;;  %s2916_s30 = smov 112  }
 0x1f9   : > { %1950 = vrot.lane.b32.xlu0 %v1947_v39, %s2906_s24  ;;  %v1393_v39 = vrot.slane %v1387_v49, 5  ;;  %v1949_v48 = vsel %vm440_vm7, %v1946_v54, %v1948_v13  ;;  %v2037_v9 = vmul.f32 %v4303_v19, %v4406_v17  ;;  %v2003_v34 = vsel %vm369_vm4, %v2001_v31, %v2002_v62 }
 0x1fa   : > { %1910 = vrot.lane.b32.xlu1 %v1907_v45, %s2906_s24  ;;  %v1411_v45 = vrot.slane %v4359_v0, 6  ;;  %v4445_v21 = vmul.f32 %v4313_v23, %v4406_v17  ;;  %v4460_v13 = vmul.f32 %v4392_v24, %v4296_v26  ;;  %v1389_v30 = vmul.f32 %v4392_v24, %v4320_v37 }
 0x1fb   : > { %v1280_v25 = vpop.permute.xlu0 %1279  ;;  %v2043_v43 = vrot.slane %v2037_v9, 3 }
 0x1fc   : > { %v1240_v22 = vpop.permute.xlu1 %1239  ;;  %v1285_v32 = vadd.f32 %v1280_v25, %v1264_v11  ;;  %v2022_v25 = vrot.slane %v2016_v33, 2 }
 0x1fd   : > { %1971 = vrot.lane.b32.xlu0 %v1968_v20, %s2906_s24  ;;  %v1202_v20 = vadd.f32 %v1198_v61, %v1181_v55  ;;  %v4417_v61 = vsel %vm458_vm8, %v1410_v50, %v1411_v45  ;;  %v1970_v55 = vsel %vm458_vm8, %v1967_v8, %v1969_v3 }
 0x1fe   : > { %1931 = vrot.lane.b32.xlu1 %v1928_v60, %s2906_s24  ;;  %v1395_v60 = vsel %vm440_vm7, %v1393_v39, %v1394_v46 }
 0x1ff   : > { %v1301_v52 = vpop.permute.xlu0 %1300  ;;  %v1223_v12 = vadd.f32 %v1219_v53, %v1202_v20  ;;  %v1338_v53 = vmul.f32 %v4392_v24, %v4256_v28  ;;  %v1997_v28 = vmul.f32 %v4392_v24, %v4350_v14 }
 0x200   : > { %v1306_v49 = vadd.f32 %v1301_v52, %v1285_v32  ;;  %v1261_v18 = vpop.permute.xlu1 %1260  ;;  %v1982_v32 = vmul.f32 %v4313_v23, %v1980_v58  ;;  %v2044_v52 = vrot.slane %v4445_v21, 3  ;;  %v4478_v58 = vstv %s4419_s17  ;;  %s4913_s17 = sshll.u32 %s3052_s5, 3 }
 0x201   : > { %1985 = vrot.lane.b32.xlu0 %v1981_v10, %s2907_s14  ;;  %v1244_v44 = vadd.f32 %v1240_v22, %v1223_v12  ;;  %v4450_v22 = vstv %s4385_s7  ;;  %v2004_v33 = vrot.slane %v1997_v28, 1  ;;  %s2683_s7 = sshll.u32 %s2954_s13, 7 }
 0x202   : > { %v1315_v2 = vadd.f32 %v4308_v57, %v1306_v49  ;;  %1952 = vrot.lane.b32.xlu1 %v1949_v48, %s2906_s24  ;;  %v2023_v57 = vrot.slane %v4403_v59, 2  ;;  %v2058_v26 = vmul.f32 %v4303_v19, %v4450_v22  ;;  %v4474_v31 = vmul.f32 %v4313_v23, %v4450_v22 }
 0x203   : > { %v4436_v54 = vpop.permute.xlu0 %1425  ;;  %v1265_v50 = vadd.f32 %v1261_v18, %v1244_v44  ;;  %v1345_v18 = vrot.slane %v1338_v53, 2  ;;  %v2018_v48 = vmul.f32 %v4392_v24, %v4383_v41  ;;  %v4494_v41 = vmul.f32 %v4313_v23, %v4478_v58 }
 0x204   : > { %v1332_v39 = vadd.f32 %v4336_v15, %v1315_v2  ;;  %v1282_v11 = vpop.permute.xlu1 %1281  ;;  %v1355_v15 = vmul.f32 %v4392_v24, %v4270_v1  ;;  %v2024_v1 = vsel %vm387_vm5, %v2022_v25, %v2023_v57  ;;  %v1329_v2 = vsel %vm369_vm4, %v1326_v35, %v1328_v4 }
 0x205   : > { %2006 = vrot.lane.b32.xlu0 %v2003_v34, %s2907_s14  ;;  %v1286_v10 = vadd.f32 %v1282_v11, %v1265_v50  ;;  %v2064_v44 = vrot.slane %v2058_v26, 4  ;;  %v2079_v34 = vmul.f32 %v4303_v19, %v4478_v58  ;;  %v2045_v37 = vsel %vm405_vm6, %v2043_v43, %v2044_v52 }
 0x206   : > { %v1349_v14 = vadd.f32 %v4366_v42, %v1332_v39  ;;  %1973 = vrot.lane.b32.xlu1 %v1970_v55, %s2906_s24  ;;  %v1362_v12 = vrot.slane %v1355_v15, 3  ;;  %s4505_s24 = sld [smem:[#allocation9 + $0x3e]]  ;;  %v2025_v39 = vrot.slane %v2018_v48, 2  ;;  %v2099_v11 = vstv %s4462_s27  ;;  %s173_s27 = scalar_lea.vmem [#allocation10], %s4913_s17 }
 0x207   : > { %v1447_v8 = vpop.permute.xlu0 %1446  ;;  %v1346_v36 = vsel %vm387_vm5, %v1343_v5, %v1345_v18  ;;  %v1406_v50 = vmul.f32 %v4392_v24, %v4330_v51  ;;  %v1396_v15 = vrot.slane %v1389_v30, 5  ;;  %v4530_v51 = vmul.f32 %v4313_v23, %v2099_v11 }
 0x208   : > { %v1366_v42 = vadd.f32 %v1361_v63, %v1349_v14  ;;  %v1303_v20 = vpop.permute.xlu1 %1302  ;;  %v1379_v63 = vrot.slane %v4460_v13, 4  ;;  %v2086_v14 = vrot.slane %v4494_v41, 5 }
 0x209   : > { %v1307_v49 = vadd.f32 %v1303_v20, %v1286_v10  ;;  %2027 = vrot.lane.b32.xlu0 %v2024_v1, %s2907_s14  ;;  %v1413_v1 = vrot.slane %v1406_v50, 6  ;;  %v1397_v59 = vsel %vm440_vm7, %v1394_v46, %v1396_v15  ;;  %v2107_v29 = vrot.slane %v4530_v51, 6 }
 0x20a   : > { %v1383_v3 = vadd.f32 %v1378_v38, %v1366_v42  ;;  %1987 = vrot.lane.b32.xlu1 %v1982_v32, %s2907_s14  ;;  %v2005_v38 = vsel %vm369_vm4, %v2002_v62, %v2004_v33  ;;  %v1363_v62 = vsel %vm405_vm6, %v1360_v27, %v1362_v12  ;;  %v2100_v27 = vmul.f32 %v4303_v19, %v2099_v11 }
 0x20b   : > { %v1316_v53 = vadd.f32 %v1314_v7, %v1307_v49  ;;  %v1468_v9 = vpop.permute.xlu0 %1467  ;;  %v2065_v7 = vrot.slane %v4474_v31, 4  ;;  %v2060_v32 = vmul.f32 %v4392_v24, %v4450_v22  ;;  %v1380_v10 = vsel %vm178_vm0, %v1377_v47, %v1379_v63 }
 0x20c   : > { %v1400_v40 = vadd.f32 %v1395_v60, %v1383_v3  ;;  %v4496_v35 = vpop.permute.xlu1 %1427  ;;  %v2039_v60 = vmul.f32 %v4392_v24, %v4406_v17  ;;  %v2085_v17 = vrot.slane %v2079_v34, 5  ;;  %v2134_v47 = vstv %s4505_s24  ;;  %s2484_s24 = sshll.u32 %s173_s27, 4  ;;  %s2485_s24 = int_to_ptr.vmem [resolvable:$true] %s2484_s24 }
 0x20d   : > { %v1333_v25 = vadd.f32 %v1329_v2, %v1316_v53  ;;  %2048 = vrot.lane.b32.xlu0 %v2045_v37, %s2907_s14  ;;  %v2066_v16 = vsel %vm178_vm0, %v2064_v44, %v2065_v7  ;;  %v2067_v46 = vrot.slane %v2060_v32, 4  ;;  %v2081_v49 = vmul.f32 %v4392_v24, %v4478_v58 }
 0x20e   : > { %v1417_v28 = vadd.f32 %v4417_v61, %v1400_v40  ;;  %2008 = vrot.lane.b32.xlu1 %v2005_v38, %s2907_s14  ;;  %v2046_v4 = vrot.slane %v2039_v60, 3  ;;  %v1414_v18 = vsel %vm458_vm8, %v1411_v45, %v1413_v1  ;;  %v2120_v2 = vstv %s4522_s18 }
 0x20f   : > { %v1350_v55 = vadd.f32 %v1346_v36, %v1333_v25  ;;  %v1489_v13 = vpop.permute.xlu0 %1488  ;;  %v2135_v63 = vmul.f32 %v4303_v19, %v2134_v47  ;;  %v4567_v21 = vmul.f32 %v4313_v23, %v2134_v47  ;;  %v2155_v58 = vstv %s4532_s6 }
 0x210   : > { %v1431_v6 = vadd.f32 %v4436_v54, %v1417_v28  ;;  %v1449_v5 = vpop.permute.xlu1 %1448  ;;  %v2026_v54 = vsel %vm387_vm5, %v2023_v57, %v2025_v39  ;;  %v2087_v57 = vsel %vm440_vm7, %v2085_v17, %v2086_v14  ;;  %v2047_v56 = vsel %vm405_vm6, %v2044_v52, %v2046_v4 }
 0x211   : > { %v1367_v61 = vadd.f32 %v1363_v62, %v1350_v55  ;;  %2069 = vrot.lane.b32.xlu0 %v2066_v16, %s2907_s14  ;;  %v2068_v45 = vsel %vm178_vm0, %v2065_v7, %v2067_v46  ;;  %v2102_v44 = vmul.f32 %v4392_v24, %v2099_v11  ;;  %v2121_v40 = vmul.f32 %v4303_v19, %v2120_v2 }
 0x212   : > { %v1452_v43 = vadd.f32 %v1447_v8, %v1431_v6  ;;  %2029 = vrot.lane.b32.xlu1 %v2026_v54, %s2907_s14  ;;  %v2106_v8 = vrot.slane %v2100_v27, 6  ;;  %v2141_v25 = vrot.slane %v2135_v63, 1  ;;  %v2156_v39 = vmul.f32 %v4303_v19, %v2155_v58 }
 0x213   : > { %v1384_v26 = vadd.f32 %v1380_v10, %v1367_v61  ;;  %v1510_v42 = vpop.permute.xlu0 %1509  ;;  %v4584_v31 = vmul.f32 %v4313_v23, %v2155_v58  ;;  %v2176_v7 = vstv %s4552_s22  ;;  %v2109_v62 = vrot.slane %v2102_v44, 6  ;;  %s2482_s22 = scalar_lea.hbm %s4827_s2, %s2683_s7 }
 0x214   : > { %v1473_v20 = vadd.f32 %v1468_v9, %v1452_v43  ;;  %v1470_v22 = vpop.permute.xlu1 %1469  ;;  %v2108_v53 = vsel %vm458_vm8, %v2106_v8, %v2107_v29  ;;  %v2088_v9 = vrot.slane %v2081_v49, 5  ;;  %v2137_v50 = vmul.f32 %v4392_v24, %v2134_v47 }
 0x215   : > { %v1401_v33 = vadd.f32 %v1397_v59, %v1384_v26  ;;  %2090 = vrot.lane.b32.xlu0 %v2087_v57, %s2907_s14  ;;  %v2162_v17 = vrot.slane %v2156_v39, 2  ;;  %v2177_v6 = vmul.f32 %v4303_v19, %v2176_v7  ;;  %v2163_v41 = vrot.slane %v4584_v31, 2 }
 0x216   : > { %v1494_v12 = vadd.f32 %v1489_v13, %v1473_v20  ;;  %2050 = vrot.lane.b32.xlu1 %v2047_v56, %s2907_s14  ;;  %v2089_v11 = vsel %vm440_vm7, %v2086_v14, %v2088_v9  ;;  %v2178_v14 = vmul.f32 %v4313_v23, %v2176_v7  ;;  %v2197_v27 = vstv %s4571_s4  ;;  %s2470_s4 = scalar_lea.sflag [#allocation7], %s3052_s5 }
 0x217   : > { %v1418_v48 = vadd.f32 %v1414_v18, %v1401_v33  ;;  %v1531_v3 = vpop.permute.xlu0 %1530  ;;  %v2110_v61 = vsel %vm458_vm8, %v2107_v29, %v2109_v62  ;;  %v2122_v54 = vmul.f32 %v4313_v23, %v2120_v2  ;;  %v2144_v43 = vrot.slane %v2137_v50, 1 }
 0x218   : > { %v1515_v52 = vadd.f32 %v1510_v42, %v1494_v12  ;;  %v1491_v30 = vpop.permute.xlu1 %1490  ;;  %v2198_v10 = vmul.f32 %v4303_v19, %v2197_v27  ;;  %v2199_v1 = vmul.f32 %v4313_v23, %v2197_v27  ;;  %v2164_v42 = vsel %vm387_vm5, %v2162_v17, %v2163_v41 }
 0x219   : > { %v1432_v0 = vadd.f32 %v4496_v35, %v1418_v48  ;;  %2111 = vrot.lane.b32.xlu0 %v2108_v53, %s2907_s14  ;;  %v2142_v35 = vrot.slane %v4567_v21, 1  ;;  %v2183_v57 = vrot.slane %v2177_v6, 3  ;;  %v2184_v20 = vrot.slane %v2178_v14, 3 }
 0x21a   : > { %v1536_v34 = vadd.f32 %v1531_v3, %v1515_v52  ;;  %2071 = vrot.lane.b32.xlu1 %v2068_v45, %s2907_s14  ;;  %v2158_v8 = vmul.f32 %v4392_v24, %v2155_v58  ;;  %v2218_v29 = vstv %s4591_s20  ;;  %v2204_v56 = vrot.slane %v2198_v10, 4  ;;  %s2822_s20 = scalar_lea.vmem %s2485_s24, 128 }
 0x21b   : > { %v1453_v37 = vadd.f32 %v1449_v5, %v1432_v0  ;;  %v1552_v38 = vpop.permute.xlu0 %1551  ;;  %v2143_v13 = vsel %vm369_vm4, %v2141_v25, %v2142_v35  ;;  %v2145_v33 = vsel %vm369_vm4, %v2142_v35, %v2144_v43  ;;  %v2205_v46 = vrot.slane %v2199_v1, 4  ;;  %p2823_p9 = scmp.ne.s32.totalorder %s2485_s24, %s2822_s20 }
 0x21c   : > { %v1557_v60 = vadd.f32 %v1552_v38, %v1536_v34  ;;  %v1512_v28 = vpop.permute.xlu1 %1511  ;;  %v2185_v12 = vsel %vm405_vm6, %v2183_v57, %v2184_v20  ;;  %v2219_v48 = vmul.f32 %v4303_v19, %v2218_v29  ;;  %v2220_v3 = vmul.f32 %v4313_v23, %v2218_v29 }
 0x21d   : > { %v1474_v36 = vadd.f32 %v1470_v22, %v1453_v37  ;;  %2125 = vrot.lane.b32.xlu0 %v2121_v40, %s2908_s15  ;;  %v2165_v63 = vrot.slane %v2158_v8, 2  ;;  %v2179_v21 = vmul.f32 %v4392_v24, %v2176_v7  ;;  %v2239_v52 = vstv %s4602_s8  ;;  %p2824_p13 = pnand %p2823_p9, %p4914_p11  ;;  %s2917_s8 = smov [#allocation10]  }
 0x21e   : > { %2092 = vrot.lane.b32.xlu1 %v2089_v11, %s2907_s14  ;;  %v2206_v53 = vsel %vm178_vm0, %v2204_v56, %v2205_v46  ;;  %v2225_v0 = vrot.slane %v2219_v48, 5  ;;  %v2226_v45 = vrot.slane %v2220_v3, 5  ;;  %v2240_v9 = vmul.f32 %v4303_v19, %v2239_v52 }
 0x21f   : > { %v1495_v55 = vadd.f32 %v1491_v30, %v1474_v36  ;;  %v1566_v15 = vpop.permute.xlu0 %1565  ;;  %v2241_v44 = vmul.f32 %v4313_v23, %v2239_v52  ;;  %v2166_v40 = vsel %vm387_vm5, %v2163_v41, %v2165_v63  ;;  %v2186_v37 = vrot.slane %v2179_v21, 3  ;;  %p2825_p10 = pneg %p2824_p13 }
 0x220   : > { %v1571_v5 = vadd.f32 %v1566_v15, %v1557_v60  ;;  %v1533_v16 = vpop.permute.xlu1 %1532  ;;  %v2200_v38 = vmul.f32 %v4392_v24, %v2197_v27  ;;  %v2227_v39 = vsel %vm440_vm7, %v2225_v0, %v2226_v45  ;;  %v2246_v60 = vrot.slane %v2240_v9, 6 }
 0x221   : > { %v1516_v51 = vadd.f32 %v1512_v28, %v1495_v55  ;;  %2146 = vrot.lane.b32.xlu0 %v2143_v13, %s2908_s15  ;;  %v2247_v28 = vrot.slane %v2241_v44, 6  ;;  %v2187_v19 = vsel %vm405_vm6, %v2184_v20, %v2186_v37  ;;  %v2221_v7 = vmul.f32 %v4392_v24, %v2218_v29 }
 0x222   : > { %2113 = vrot.lane.b32.xlu1 %v2110_v61, %s2907_s14  ;;  %v2207_v23 = vrot.slane %v2200_v38, 4  ;;  %v2242_v15 = vmul.f32 %v4392_v24, %v2239_v52  ;;  %s2910_s14 = smov 16  }
 0x223   : > { %v1537_v4 = vadd.f32 %v1533_v16, %v1516_v51  ;;  %v1587_v32 = vpop.permute.xlu0 %1586  ;;  %v2248_v62 = vsel %vm458_vm8, %v2246_v60, %v2247_v28  ;;  %v2228_v55 = vrot.slane %v2221_v7, 5 }
 0x224   : > { %v1592_v26 = vadd.f32 %v1587_v32, %v1571_v5  ;;  %v1554_v59 = vpop.permute.xlu1 %1553  ;;  %v2208_v50 = vsel %vm178_vm0, %v2205_v46, %v2207_v23  ;;  %v2249_v5 = vrot.slane %v2242_v15, 6 }
 0x225   : > { %v1558_v22 = vadd.f32 %v1554_v59, %v1537_v4  ;;  %2167 = vrot.lane.b32.xlu0 %v2164_v42, %s2908_s15  ;;  %v2229_v6 = vsel %vm440_vm7, %v2226_v45, %v2228_v55 }
 0x226   : > { %2127 = vrot.lane.b32.xlu1 %v2122_v54, %s2908_s15  ;;  %v2250_v14 = vsel %vm458_vm8, %v2247_v28, %v2249_v5 }
 0x227   : > { %v1608_v47 = vpop.permute.xlu0 %1607 }
 0x228   : > { %v4614_v49 = vadd.f32 %v1608_v47, %v1592_v26  ;;  %v1568_v18 = vpop.permute.xlu1 %1567 }
 0x229   : > { %v1572_v2 = vadd.f32 %v1568_v18, %v1558_v22  ;;  %2188 = vrot.lane.b32.xlu0 %v2185_v12, %s2908_s15 }
 0x22a   : > { %2148 = vrot.lane.b32.xlu1 %v2145_v33, %s2908_s15 }
 0x22b   : > { %v4623_v30 = vpop.permute.xlu0 %1628 }
 0x22c   : > { %v1589_v58 = vpop.permute.xlu1 %1588  ;;  %v1634_v18 = vadd.f32 %v4623_v30, %v4614_v49 }
 0x22d   : > { %v1593_v34 = vadd.f32 %v1589_v58, %v1572_v2  ;;  %2209 = vrot.lane.b32.xlu0 %v2206_v53, %s2908_s15 }
 0x22e   : > { %2169 = vrot.lane.b32.xlu1 %v2166_v40, %s2908_s15 }
 0x22f   : > { %v1650_v25 = vpop.permute.xlu0 %1649 }
 0x230   : > { %v1610_v35 = vpop.permute.xlu1 %1609  ;;  %v1655_v48 = vadd.f32 %v1650_v25, %v1634_v18 }
 0x231   : > { %v1614_v31 = vadd.f32 %v1610_v35, %v1593_v34  ;;  %2230 = vrot.lane.b32.xlu0 %v2227_v39, %s2908_s15 }
 0x232   : > { %2190 = vrot.lane.b32.xlu1 %v2187_v19, %s2908_s15 }
 0x233   : > { %v1671_v36 = vpop.permute.xlu0 %1670 }
 0x234   : > { %v1631_v11 = vpop.permute.xlu1 %1630  ;;  %v1676_v2 = vadd.f32 %v1671_v36, %v1655_v48 }
 0x235   : > { %2251 = vrot.lane.b32.xlu0 %v2248_v62, %s2908_s15  ;;  %v1635_v58 = vadd.f32 %v1631_v11, %v1614_v31 }
 0x236   : > { %2211 = vrot.lane.b32.xlu1 %v2208_v50, %s2908_s15 }
 0x237   : > { %v1692_v13 = vpop.permute.xlu0 %1691 }
 0x238   : > { %v1652_v17 = vpop.permute.xlu1 %1651  ;;  %v1697_v21 = vadd.f32 %v1692_v13, %v1676_v2 }
 0x239   : > { %v1656_v44 = vadd.f32 %v1652_v17, %v1635_v58 }
 0x23a   : > { %2232 = vrot.lane.b32.xlu1 %v2229_v6, %s2908_s15 }
 0x23b   : > { %v1706_v16 = vpop.permute.xlu0 %1705 }
 0x23c   : > { %v1673_v41 = vpop.permute.xlu1 %1672  ;;  %v1711_v53 = vadd.f32 %v1706_v16, %v1697_v21 }
 0x23d   : > { %v1677_v40 = vadd.f32 %v1673_v41, %v1656_v44 }
 0x23e   : > { %2253 = vrot.lane.b32.xlu1 %v2250_v14, %s2908_s15  ;;  %s2911_s15 = smov 32  }
 0x23f   : > { %v1727_v27 = vpop.permute.xlu0 %1726 }
 0x240   : > { %v1694_v51 = vpop.permute.xlu1 %1693  ;;  %v1732_v45 = vadd.f32 %v1727_v27, %v1711_v53 }
 0x241   : > { %v1698_v39 = vadd.f32 %v1694_v51, %v1677_v40 }
 0x243   : > { %v1748_v61 = vpop.permute.xlu0 %1747 }
 0x244   : > { %v1708_v54 = vpop.permute.xlu1 %1707  ;;  %v1753_v34 = vadd.f32 %v1748_v61, %v1732_v45 }
 0x245   : > { %v1712_v30 = vadd.f32 %v1708_v54, %v1698_v39 }
 0x247   : > { %v1769_v24 = vpop.permute.xlu0 %1768 }
 0x248   : > { %v1729_v4 = vpop.permute.xlu1 %1728  ;;  %v1774_v38 = vadd.f32 %v1769_v24, %v1753_v34 }
 0x249   : > { %v1733_v19 = vadd.f32 %v1729_v4, %v1712_v30 }
 0x24b   : > { %v1790_v32 = vpop.permute.xlu0 %1789 }
 0x24c   : > { %v1750_v43 = vpop.permute.xlu1 %1749  ;;  %v1795_v49 = vadd.f32 %v1790_v32, %v1774_v38 }
 0x24d   : > { %v1754_v7 = vadd.f32 %v1750_v43, %v1733_v19 }
 0x24f   : > { %v1811_v10 = vpop.permute.xlu0 %1810 }
 0x250   : > { %v1771_v1 = vpop.permute.xlu1 %1770  ;;  %v1816_v60 = vadd.f32 %v1811_v10, %v1795_v49 }
 0x251   : > { %v1775_v62 = vadd.f32 %v1771_v1, %v1754_v7 }
 0x253   : > { %v1832_v26 = vpop.permute.xlu0 %1831 }
 0x254   : > { %v1792_v59 = vpop.permute.xlu1 %1791  ;;  %v1837_v23 = vadd.f32 %v1832_v26, %v1816_v60 }
 0x255   : > { %v1796_v55 = vadd.f32 %v1792_v59, %v1775_v62 }
 0x257   : > { %v1846_v42 = vpop.permute.xlu0 %1845 }
 0x258   : > { %v1813_v57 = vpop.permute.xlu1 %1812  ;;  %v1851_v31 = vadd.f32 %v1846_v42, %v1837_v23 }
 0x259   : > { %v1817_v6 = vadd.f32 %v1813_v57, %v1796_v55 }
 0x25b   : > { %v1867_v20 = vpop.permute.xlu0 %1866 }
 0x25c   : > { %v1834_v22 = vpop.permute.xlu1 %1833  ;;  %v1872_v50 = vadd.f32 %v1867_v20, %v1851_v31 }
 0x25d   : > { %v1838_v16 = vadd.f32 %v1834_v22, %v1817_v6 }
 0x25f   : > { %v1888_v8 = vpop.permute.xlu0 %1887 }
 0x260   : > { %v1848_v29 = vpop.permute.xlu1 %1847  ;;  %v1893_v13 = vadd.f32 %v1888_v8, %v1872_v50 }
 0x261   : > { %v1852_v51 = vadd.f32 %v1848_v29, %v1838_v16  ;;  %v2909_v16 = vmov 1966171168  }
 0x263   : > { %v1909_v47 = vpop.permute.xlu0 %1908 }
 0x264   : > { %v1869_v33 = vpop.permute.xlu1 %1868  ;;  %v1914_v5 = vadd.f32 %v1909_v47, %v1893_v13 }
 0x265   : > { %v1873_v54 = vadd.f32 %v1869_v33, %v1852_v51 }
 0x267   : > { %v1930_v56 = vpop.permute.xlu0 %1929 }
 0x268   : > { %v1890_v46 = vpop.permute.xlu1 %1889  ;;  %v1935_v14 = vadd.f32 %v1930_v56, %v1914_v5  ;;  %v2271_v5 = vlaneseq }
 0x269   : > { %v1894_v43 = vadd.f32 %v1890_v46, %v1873_v54 }
 0x26a   : > { %v4649_v51 = vshrl.u32 %v2271_v5, 7  ;;  %vm2273_vm9 = vcmp.lt.s32.totalorder %v2271_v5, 16  ;;  %vm4654_vm10 = vcmp.ge.s32.totalorder %v2271_v5, 16  ;;  %vm4659_vm11 = vcmp.lt.s32.totalorder %v2271_v5, 32 }
 0x26b   : > { %v1951_v12 = vpop.permute.xlu0 %1950  ;;  %vm2304_vm12 = vmand %vm4654_vm10, %vm4659_vm11  ;;  %vm4668_vm13 = vcmp.ge.s32.totalorder %v2271_v5, 32  ;;  %vm4673_vm14 = vcmp.lt.s32.totalorder %v2271_v5, 48  ;;  %vm4687_vm0 = vcmp.ge.s32.totalorder %v2271_v5, 48  ;;  %vm4692_vm1 = vcmp.lt.s32.totalorder %v2271_v5, 64 }
 0x26c   : > { %v1911_v3 = vpop.permute.xlu1 %1910  ;;  %v1956_v61 = vadd.f32 %v1951_v12, %v1935_v14  ;;  %vm2312_vm15 = vmand %vm4668_vm13, %vm4673_vm14  ;;  %vm4697_vm2 = vcmp.ge.s32.totalorder %v2271_v5, 64  ;;  %vm4702_vm3 = vcmp.lt.s32.totalorder %v2271_v5, 80  ;;  %vm4715_vm6 = vcmp.ge.s32.totalorder %v2271_v5, 80 }
 0x26d   : > { %v1915_v1 = vadd.f32 %v1911_v3, %v1894_v43  ;;  %vm2320_vm4 = vmand %vm4687_vm0, %vm4692_vm1  ;;  %vm4720_vm7 = vcmp.lt.s32.totalorder %v2271_v5, 96  ;;  %vm4749_vm10 = vcmp.lt.s32.totalorder %v2271_v5, 112  ;;  %vm2372_vm13 = vcmp.lt.s32.totalorder %v2271_v5, 128 }
 0x26e   : > { %vm2342_vm5 = vmand %vm4697_vm2, %vm4702_vm3 }
 0x26f   : > { %v1972_v63 = vpop.permute.xlu0 %1971  ;;  %vm2357_vm8 = vmand %vm4715_vm6, %vm4720_vm7 }
 0x270   : > { %v1932_v52 = vpop.permute.xlu1 %1931  ;;  %v1977_v4 = vadd.f32 %v1972_v63, %v1956_v61 }
 0x271   : > { %v1936_v20 = vadd.f32 %v1932_v52, %v1915_v1 }
 0x273   : > { %v1986_v0 = vpop.permute.xlu0 %1985 }
 0x274   : > { %v1953_v9 = vpop.permute.xlu1 %1952  ;;  %v1991_v10 = vadd.f32 %v1986_v0, %v1977_v4 }
 0x275   : > { %v1957_v57 = vadd.f32 %v1953_v9, %v1936_v20 }
 0x277   : > { %v2007_v37 = vpop.permute.xlu0 %2006 }
 0x278   : > { %v1974_v35 = vpop.permute.xlu1 %1973  ;;  %v2012_v59 = vadd.f32 %v2007_v37, %v1991_v10 }
 0x279   : > { %v1978_v56 = vadd.f32 %v1974_v35, %v1957_v57 }
 0x27b   : > { %v2028_v25 = vpop.permute.xlu0 %2027 }
 0x27c   : > { %v1988_v28 = vpop.permute.xlu1 %1987  ;;  %v2033_v8 = vadd.f32 %v2028_v25, %v2012_v59 }
 0x27d   : > { %v1992_v29 = vadd.f32 %v1988_v28, %v1978_v56 }
 0x27f   : > { %v2049_v36 = vpop.permute.xlu0 %2048 }
 0x280   : > { %v2009_v11 = vpop.permute.xlu1 %2008  ;;  %v2054_v22 = vadd.f32 %v2049_v36, %v2033_v8 }
 0x281   : > { %v2013_v63 = vadd.f32 %v2009_v11, %v1992_v29 }
 0x283   : > { %v2070_v15 = vpop.permute.xlu0 %2069 }
 0x284   : > { %v2030_v17 = vpop.permute.xlu1 %2029  ;;  %v2075_v48 = vadd.f32 %v2070_v15, %v2054_v22 }
 0x285   : > { %v2034_v46 = vadd.f32 %v2030_v17, %v2013_v63 }
 0x287   : > { %v2091_v41 = vpop.permute.xlu0 %2090 }
 0x288   : > { %v2051_v27 = vpop.permute.xlu1 %2050  ;;  %v2096_v33 = vadd.f32 %v2091_v41, %v2075_v48  ;;  %v2278_v41 = vunpack.c.l.s4 %v2909_v16 }
 0x289   : > { %v2055_v0 = vadd.f32 %v2051_v27, %v2034_v46 }
 0x28a   : > { %v2279_v27 = vunpack.c.0.s8 %v2278_v41 }
 0x28b   : > { %v2112_v24 = vpop.permute.xlu0 %2111 }
 0x28c   : > { %v2072_v32 = vpop.permute.xlu1 %2071  ;;  %v2117_v21 = vadd.f32 %v2112_v24, %v2096_v33  ;;  %v2282_v54 = vsub.s32 %v2279_v27, %v4649_v51  ;;  %v2455_v27 = vld [vmem:[%s3058_s19] sm:$0xff]  ;;  %s2826_s19 = sshll.u32 %s2917_s8, 4  ;;  %s2827_s19 = int_to_ptr.vmem [resolvable:$false] %s2826_s19 }
 0x28d   : > { %v2076_v52 = vadd.f32 %v2072_v32, %v2055_v0  ;;  %s2828_s13 = scalar_lea.vmem %s2827_s19, 256  ;;  %p2829_p2 = scmp.lt.s32.totalorder %s2485_s24, %s2827_s19 }
 0x28e   : > { %p2830_p1 = scmp.lt.s32.totalorder %s2828_s13, %s2822_s20 }
 0x28f   : > { %v2126_v26 = vpop.permute.xlu0 %2125 }
 0x290   : > { %v2093_v42 = vpop.permute.xlu1 %2092  ;;  %v2131_v3 = vadd.f32 %v2126_v26, %v2117_v21  ;;  %p2831_p0 = por %p2830_p1, %p2829_p2 }
 0x291   : > { %v2097_v40 = vadd.f32 %v2093_v42, %v2076_v52 }
 0x292   : > { %p2832_p3 = pnand %p2831_p0, %p2825_p10 }
 0x293   : > { %v2147_v47 = vpop.permute.xlu0 %2146 }
 0x294   : > { %v2114_v18 = vpop.permute.xlu1 %2113  ;;  %v2152_v45 = vadd.f32 %v2147_v47, %v2131_v3 }
 0x295   : > { %v2118_v38 = vadd.f32 %v2114_v18, %v2097_v40 }
 0x297   : > { %v2168_v12 = vpop.permute.xlu0 %2167 }
 0x298   : > { %v2128_v2 = vpop.permute.xlu1 %2127  ;;  %v2173_v9 = vadd.f32 %v2168_v12, %v2152_v45 }
 0x299   : > { %v2132_v30 = vadd.f32 %v2128_v2, %v2118_v38 }
 0x29b   : > { %v2189_v53 = vpop.permute.xlu0 %2188 }
 0x29c   : > { %v2149_v58 = vpop.permute.xlu1 %2148  ;;  %v2194_v37 = vadd.f32 %v2189_v53, %v2173_v9 }
 0x29d   : > { %v2153_v60 = vadd.f32 %v2149_v58, %v2132_v30 }
 0x29f   : > { %v2210_v44 = vpop.permute.xlu0 %2209 }
 0x2a0   : > { %v2170_v34 = vpop.permute.xlu1 %2169  ;;  %v2215_v39 = vadd.f32 %v2210_v44, %v2194_v37 }
 0x2a1   : > { %v2174_v7 = vadd.f32 %v2170_v34, %v2153_v60 }
 0x2a3   : > { %v2231_v35 = vpop.permute.xlu0 %2230 }
 0x2a4   : > { %v2191_v49 = vpop.permute.xlu1 %2190  ;;  %v2236_v25 = vadd.f32 %v2231_v35, %v2215_v39 }
 0x2a5   : > { %v2195_v31 = vadd.f32 %v2191_v49, %v2174_v7 }
 0x2a7   : > { %v2252_v28 = vpop.permute.xlu0 %2251 }
 0x2a8   : > { %v2257_v19 = vadd.f32 %v2252_v28, %v2236_v25  ;;  %v2212_v23 = vpop.permute.xlu1 %2211 }
 0x2a9   : > { %v2216_v62 = vadd.f32 %v2212_v23, %v2195_v31 }
 0x2aa   : > { %v2675_v36 = vmul.f32 -1.442695, %v2257_v19 }
 0x2ac   : > { %2765 = vpow2.f32 %v2675_v36  ;;  %v2233_v11 = vpop.permute.xlu1 %2232 }
 0x2ad   : > { %v2237_v50 = vadd.f32 %v2233_v11, %v2216_v62 }
 0x2b0   : > { %v2254_v55 = vpop.permute.xlu1 %2253 }
 0x2b1   : > { %v2258_v15 = vadd.f32 %v2254_v55, %v2237_v50 }
 0x2b3   : > { %v2676_v13 = vmul.f32 -1.442695, %v2258_v15 }
 0x2b5   : > { %2767 = vpow2.f32 %v2676_v13 }
 0x2b9   : > { %v2766_v17 = vpop.eup %2765 }
 0x2ba   : > { %v2265_v6 = vadd.f32 1.0, %v2766_v17 }
 0x2bc   : > { %2769 = vrcp.f32 %v2265_v6  ;;  %v2459_v6 = vsub.s32 0, %v4649_v51 }
 0x2c2   : > { %v2768_v14 = vpop.eup %2767 }
 0x2c3   : > { %v2266_v61 = vadd.f32 1.0, %v2768_v14 }
 0x2c5   : > { %2771 = vrcp.f32 %v2266_v61 }
 0x2c9   : > { %v2770_v24 = vpop.eup %2769 }
 0x2ca   : > { %v2283_v4 = vrot.slane %v2770_v24, %v2282_v54  ;;  %2275 = vst.msk [vmem:[#allocation4] sm:$0x1] %vm2273_vm9, %v2770_v24  ;;  %v2322_v1 = vcombine.high %v2770_v24, %v2770_v24 }
 0x2cc   : > { %v2284_v32 = vcombine.high %v2283_v4, %v2283_v4  ;;  %v2291_v10 = vrot.slane %v2283_v4, %v2282_v54  ;;  %v2329_v42 = vrot.slane %v2322_v1, %v2282_v54 }
 0x2ce   : > { %v2298_v43 = vrot.slane %v2284_v32, %v2282_v54  ;;  %v2306_v59 = vcombine.high %v2291_v10, %v2291_v10  ;;  %v2336_v57 = vrot.slane %v2329_v42, %v2282_v54  ;;  %v2344_v48 = vcombine.high %v2329_v42, %v2329_v42 }
 0x2d0   : > { %2299 = vrot.lane.b32.xlu0 %v2298_v43, %s2910_s14  ;;  %v2314_v56 = vcombine.high %v2298_v43, %v2298_v43  ;;  %v2351_v33 = vrot.slane %v2344_v48, %v2282_v54  ;;  %v2359_v63 = vcombine.high %v2336_v57, %v2336_v57 }
 0x2d2   : > { %v2772_v26 = vpop.eup %2771  ;;  %v2367_v53 = vcombine.high %v2351_v33, %v2351_v33 }
 0x2d3   : > { %v2383_v20 = vrot.slane %v2772_v26, %v2282_v54  ;;  %2375 = vst.msk [vmem:[#allocation4 + $0x1] sm:$0x1] %vm2273_vm9, %v2772_v26  ;;  %v2413_v18 = vcombine.high %v2772_v26, %v2772_v26  ;;  %vm4744_vm9 = vcmp.ge.s32.totalorder %v2271_v5, 96 }
 0x2d4   : > { %2307 = vrot.lane.b32.xlu0 %v2306_v59, %s2911_s15  ;;  %vm2365_vm11 = vmand %vm4744_vm9, %vm4749_vm10 }
 0x2d5   : > { %v2384_v8 = vcombine.high %v2383_v20, %v2383_v20  ;;  %v2391_v22 = vrot.slane %v2383_v20, %v2282_v54  ;;  %v2420_v12 = vrot.slane %v2413_v18, %v2282_v54 }
 0x2d7   : > { %v2398_v47 = vrot.slane %v2384_v8, %v2282_v54  ;;  %v2403_v29 = vcombine.high %v2391_v22, %v2391_v22  ;;  %v2427_v2 = vrot.slane %v2420_v12, %v2282_v54  ;;  %v2432_v46 = vcombine.high %v2420_v12, %v2420_v12 }
 0x2d8   : > { %2337 = vrot.lane.b32.xlu0 %v2336_v57, %s2912_s23 }
 0x2d9   : > { %2399 = vrot.lane.b32.xlu1 %v2398_v47, %s2910_s14  ;;  %v2408_v21 = vcombine.high %v2398_v47, %v2398_v47  ;;  %v2439_v3 = vrot.slane %v2432_v46, %v2282_v54  ;;  %v2444_v58 = vcombine.high %v2427_v2, %v2427_v2 }
 0x2db   : > { %v2449_v0 = vcombine.high %v2439_v3, %v2439_v3 }
 0x2dc   : > { %2315 = vrot.lane.b32.xlu0 %v2314_v56, %s2913_s3 }
 0x2dd   : > { %2404 = vrot.lane.b32.xlu1 %v2403_v29, %s2911_s15 }
 0x2e0   : > { %2352 = vrot.lane.b32.xlu0 %v2351_v33, %s2914_s25 }
 0x2e1   : > { %2428 = vrot.lane.b32.xlu1 %v2427_v2, %s2912_s23 }
 0x2e4   : > { %2360 = vrot.lane.b32.xlu0 %v2359_v63, %s2915_s26 }
 0x2e5   : > { %2409 = vrot.lane.b32.xlu1 %v2408_v21, %s2913_s3 }
 0x2e8   : > { %2368 = vrot.lane.b32.xlu0 %v2367_v53, %s2916_s30 }
 0x2e9   : > { %2440 = vrot.lane.b32.xlu1 %v2439_v3, %s2914_s25 }
 0x2ed   : > { %2445 = vrot.lane.b32.xlu1 %v2444_v58, %s2915_s26 }
 0x2f1   : > { %2450 = vrot.lane.b32.xlu1 %v2449_v0, %s2916_s30 }
 0x342   : > { %v2300_v34 = vpop.permute.xlu0 %2299 }
 0x343   : > { %2305 = vst.msk [vmem:[#allocation4] sm:$0x1] %vm2304_vm12, %v2300_v34 }
 0x346   : > { %v2308_v40 = vpop.permute.xlu0 %2307 }
 0x347   : > { %2313 = vst.msk [vmem:[#allocation4] sm:$0x1] %vm2312_vm15, %v2308_v40 }
 0x34a   : > { %v2338_v35 = vpop.permute.xlu0 %2337 }
 0x34b   : > { %v2400_v30 = vpop.permute.xlu1 %2399 }
 0x34c   : > { %2402 = vst.msk [vmem:[#allocation4 + $0x1] sm:$0x1] %vm2304_vm12, %v2400_v30  ;;  %vm4763_vm12 = vcmp.ge.s32.totalorder %v2271_v5, 112  ;;  %v2463_v5 = vsub.s32 1, %v4649_v51 }
 0x34d   : > { %vm2373_vm14 = vmand %vm4763_vm12, %vm2372_vm13 }
 0x34e   : > { %v2316_v28 = vpop.permute.xlu0 %2315 }
 0x34f   : > { %2321 = vst.msk [vmem:[#allocation4] sm:$0x1] %vm2320_vm4, %v2316_v28  ;;  %v2405_v19 = vpop.permute.xlu1 %2404 }
 0x350   : > { %2407 = vst.msk [vmem:[#allocation4 + $0x1] sm:$0x1] %vm2312_vm15, %v2405_v19 }
 0x351   : > { %2343 = vst.msk [vmem:[#allocation4] sm:$0x1] %vm2342_vm5, %v2338_v35 }
 0x352   : > { %v2353_v36 = vpop.permute.xlu0 %2352 }
 0x353   : > { %2358 = vst.msk [vmem:[#allocation4] sm:$0x1] %vm2357_vm8, %v2353_v36  ;;  %v2429_v31 = vpop.permute.xlu1 %2428 }
 0x356   : > { %v2361_v62 = vpop.permute.xlu0 %2360 }
 0x357   : > { %2366 = vst.msk [vmem:[#allocation4] sm:$0x1] %vm2365_vm11, %v2361_v62  ;;  %v2410_v50 = vpop.permute.xlu1 %2409 }
 0x358   : > { %2412 = vst.msk [vmem:[#allocation4 + $0x1] sm:$0x1] %vm2320_vm4, %v2410_v50 }
 0x359   : > { %2431 = vst.msk [vmem:[#allocation4 + $0x1] sm:$0x1] %vm2342_vm5, %v2429_v31 }
 0x35a   : > { %v2369_v55 = vpop.permute.xlu0 %2368 }
 0x35b   : > { %2374 = vst.msk [vmem:[#allocation4] sm:$0x1] %vm2373_vm14, %v2369_v55  ;;  %v2441_v15 = vpop.permute.xlu1 %2440 }
 0x35c   : > { %2443 = vst.msk [vmem:[#allocation4 + $0x1] sm:$0x1] %vm2357_vm8, %v2441_v15 }
 0x35f   : > { %v2446_v13 = vpop.permute.xlu1 %2445 }
 0x360   : > { %2448 = vst.msk [vmem:[#allocation4 + $0x1] sm:$0x1] %vm2365_vm11, %v2446_v13 }
 0x363   : > { %v2451_v17 = vpop.permute.xlu1 %2450 }
 0x364   : > { %2453 = vst.msk [vmem:[#allocation4 + $0x1] sm:$0x1] %vm2373_vm14, %v2451_v17 }
 0x36b   : > { %v2454_v16 = vld [vmem:[#allocation4] sm:$0x3] }
 0x36c   : > { %v2460_v41 = vrot.slane %v2454_v16, %v2459_v6  ;;  %v2464_v14 = vrot.slane %v2454_v16, %v2463_v5 }
 0x36e   : > { %v2465_v61 = vcombine.low %v2460_v41, %v2464_v14 }
 0x370   : > { %v2467_v54 = vmul.f32 %v2465_v61, %v2455_v27 }
 0x372   : > { %2468 = vst [vmem:[%s173_s27] sm:$0xff] %v2467_v54 }
 0x373   : > { %2835 = shalt.err (!%p2832_p3)
}
 0x374   : > { %s2836_s14 = scalar_lea.hbm %s2482_s22, 128  ;;  %s2840_s23 = scalar_lea.hbm %s4827_s2, 256 }
 0x375   : > { %p2837_p12 = scmp.ne.s32.totalorder %s2482_s22, %s2836_s14  ;;  %p2841_p4 = scmp.lt.s32.totalorder %s2482_s22, %s4827_s2 }
 0x376   : > { %p2842_p6 = scmp.lt.s32.totalorder %s2840_s23, %s2836_s14 }
 0x377   : > { %p2838_p5 = pnand %p2837_p12, %p4914_p11 }
 0x378   : > { %p2843_p8 = por %p2842_p6, %p2841_p4 }
 0x379   : > { %p2839_p7 = pneg %p2838_p5 }
 0x37b   : > { %p2844_p9 = pnand %p2843_p8, %p2839_p7 }
 0x37d   : > { %2847 = shalt.err (!%p2844_p9)
}
 0x37e   : > { %2690 = dma.vmem_to_hbm [thread:$0]  (%p4914_p11), %s2485_s24, 128, %s2482_s22, %s2470_s4  }
 0x37f PF: > { %s2496_s26 = sand.u32 1, %s2878_s9   ;;  %p4915_p13 = scmp.ne.s32.totalorder %s4840_s16, 0 }
 0x380   : > { %p4916_p10 = scmp.ge.s32.totalorder %s2890_s12, 2  ;;  %s2497_s30 = scalar_lea.sflag [#allocation7], %s2496_s26 }
 0x382   : > { %p2701_p2 = pnand %p4916_p10, %p4915_p13 }
 0x384   : > { %p2702_p1 = pneg %p2701_p2 }
 0x386   : > { %2873 = dma.done.wait (%p2702_p1), %s2497_s30, 128  }
 0x387   : > { %2875 = vsyncadd (%p2702_p1), %s2497_s30, 4294967168  ;;  %p16_p0 = scmp.ge.s32.totalorder %s2984_s21, 4   ;;  %s4917_s9 = smov %s2882_s10 }
 0x388   : > { %s4918_s10 = smov %s2886_s11  ;;  %s4919_s11 = smov %s3008_s28 }
 0x389   : > { %s4920_s12 = smov %s2984_s21  ;;  %18 = sbr.rel (!%p16_p0) target bundleno = 6 (0x6), region = 78 }
 0x38e   :  { %2502 = vsyncpa [#allocation6], 1 }
 0x38f   :  { %2504 = vsyncpa [#allocation6 + $0x1], 1 }
 0x390   :  { %2505 = vsyncpa [#allocation7], 1 }
 0x391   :  { %2507 = vsyncpa [#allocation7 + $0x1], 1 }
 0x392   :  { %2508 = vsyncpa [#allocation8], 1 }
 0x393   :  { %2510 = vsyncpa [#allocation8 + $0x1], 1 }

</bundles_post_ra>
